<compile_context>
chip_gen: v6e
topology: v6e:2x2x1
jax: 0.10.0
libtpu: 0.0.40
codegen_flags: <defaults>
</compile_context>

<pallas_src>
import jax
import jax.numpy as jnp
from jax.experimental import pallas as pl
from jax.experimental.pallas import tpu as pltpu

Z_DIM = 10
NC = 3
IMG = 28
IN_DIM = NC * IMG * IMG          # 2352

H_PAD = 128                      # padded hidden width (64/32/32 -> 128)
Z_PAD = 128                      # padded mu/logvar/z width (10 -> 128)

ENC_DIMS = [IN_DIM, 256, 64, 32, 32, 2 * Z_DIM]
DEC_DIMS = [Z_DIM, 32, 32, 64, 256, IN_DIM]


# ---------------------------------------------------------------------------
# Fused Pallas kernel: encoder + reparametrize + decoder
# ---------------------------------------------------------------------------
def _relu_linear(h, w_ref, b_ref):
    # bf16 inputs to the MXU, f32 accumulation; bias/ReLU in f32.
    y = jnp.dot(h.astype(jnp.bfloat16), w_ref[...],
                preferred_element_type=jnp.float32) + b_ref[...]
    return jnp.maximum(y, 0.0)


def _linear(h, w_ref, b_ref):
    return jnp.dot(h.astype(jnp.bfloat16), w_ref[...],
                   preferred_element_type=jnp.float32) + b_ref[...]


def _vae_kernel(x_ref, eps_ref,
                ew1, eb1, ew2, eb2, ew3, eb3, ew4, eb4,
                wmu, bmu, wlv, blv,
                dw1, db1, dw2, db2, dw3, db3, dw4, db4, dw5, db5,
                xrec_ref, mu_ref, logvar_ref):
    # ---- encoder -----------------------------------------------------------
    h = _relu_linear(x_ref[...], ew1, eb1)          # (TB, 256)
    h = _relu_linear(h, ew2, eb2)                   # (TB, 128)  [64 padded]
    h = _relu_linear(h, ew3, eb3)                   # (TB, 128)  [32 padded]
    h = _relu_linear(h, ew4, eb4)                   # (TB, 128)  [32 padded]
    mu_p = _linear(h, wmu, bmu)                     # (TB, 128), cols >= Z_DIM are 0
    lv_p = _linear(h, wlv, blv)                     # (TB, 128), cols >= Z_DIM are 0
    mu_ref[...] = mu_p[:, :Z_DIM]
    logvar_ref[...] = lv_p[:, :Z_DIM]

    # ---- reparametrize: z = mu + exp(logvar/2) * eps (eps zero-padded) -----
    z = mu_p + jnp.exp(lv_p * 0.5) * eps_ref[...]   # padded cols stay exactly 0

    # ---- decoder ------------------------------------------------------------
    h = _relu_linear(z, dw1, db1)                   # (TB, 128)
    h = _relu_linear(h, dw2, db2)                   # (TB, 128)
    h = _relu_linear(h, dw3, db3)                   # (TB, 128)
    h = _relu_linear(h, dw4, db4)                   # (TB, 256)
    xrec_ref[...] = _linear(h, dw5, db5)            # (TB, 2352)


# ---------------------------------------------------------------------------
# Parameter packing (pad to lane-dense widths, weights -> bf16)
# ---------------------------------------------------------------------------
def _pad_w(w, rows, cols):
    out = jnp.zeros((rows, cols), jnp.float32).at[: w.shape[0], : w.shape[1]].set(w)
    return out.astype(jnp.bfloat16)


def _pad_b(b, cols):
    return jnp.zeros((1, cols), jnp.float32).at[0, : b.shape[0]].set(b)


def pack_kernel_params(enc_params, dec_params):
    (e1w, e1b), (e2w, e2b), (e3w, e3b), (e4w, e4b), (e5w, e5b) = enc_params
    (d1w, d1b), (d2w, d2b), (d3w, d3b), (d4w, d4b), (d5w, d5b) = dec_params
    return [
        _pad_w(e1w, IN_DIM, 256),            _pad_b(e1b, 256),
        _pad_w(e2w, 256, H_PAD),             _pad_b(e2b, H_PAD),
        _pad_w(e3w, H_PAD, H_PAD),           _pad_b(e3b, H_PAD),
        _pad_w(e4w, H_PAD, H_PAD),           _pad_b(e4b, H_PAD),
        _pad_w(e5w[:, :Z_DIM], H_PAD, Z_PAD), _pad_b(e5b[:Z_DIM], Z_PAD),
        _pad_w(e5w[:, Z_DIM:], H_PAD, Z_PAD), _pad_b(e5b[Z_DIM:], Z_PAD),
        _pad_w(d1w, Z_PAD, H_PAD),           _pad_b(d1b, H_PAD),
        _pad_w(d2w, H_PAD, H_PAD),           _pad_b(d2b, H_PAD),
        _pad_w(d3w, H_PAD, H_PAD),           _pad_b(d3b, H_PAD),
        _pad_w(d4w, H_PAD, 256),             _pad_b(d4b, 256),
        _pad_w(d5w, 256, IN_DIM),            _pad_b(d5b, IN_DIM),
    ]


# ---------------------------------------------------------------------------
# Wrapper
# ---------------------------------------------------------------------------
def _cost_estimate(batch):
    mm = [(IN_DIM, 256), (256, H_PAD), (H_PAD, H_PAD), (H_PAD, H_PAD),
          (H_PAD, Z_PAD), (H_PAD, Z_PAD),
          (Z_PAD, H_PAD), (H_PAD, H_PAD), (H_PAD, H_PAD), (H_PAD, 256),
          (256, IN_DIM)]
    flops = 2 * batch * sum(m * n for m, n in mm)
    weight_bytes = sum(2 * m * n + 4 * n for m, n in mm)          # bf16 W + f32 b
    act_bytes = 4 * batch * (2 * IN_DIM + Z_PAD + 2 * Z_DIM)
    return pl.CostEstimate(flops=flops, transcendentals=batch * Z_PAD,
                           bytes_accessed=weight_bytes + act_bytes)


def linear_vae_forward(x, kparams, eps_key, *, tb=512):
    """Mirrors Linear_vae.forward: returns (x_recon, mu, logvar)."""
    B = x.shape[0]
    x_flat = x.reshape(B, IN_DIM)                   # View((-1, 3*28*28))

    # TODO(synk): eps could be drawn in-kernel (pltpu.prng_seed/stateful_normal);
    # kept as a padded input so the jax.random-based reference matches exactly.
    eps = jax.random.normal(eps_key, (B, Z_DIM), dtype=jnp.float32)
    eps_p = jnp.zeros((B, Z_PAD), jnp.float32).at[:, :Z_DIM].set(eps)

    TB = min(tb, B)
    grid = (pl.cdiv(B, TB),)

    act_specs = [
        pl.BlockSpec((TB, IN_DIM), lambda i: (i, 0)),   # x_flat
        pl.BlockSpec((TB, Z_PAD), lambda i: (i, 0)),    # eps (padded)
    ]
    # Weights / biases: full-array blocks, constant index_map -> VMEM-resident.
    w_specs = [pl.BlockSpec(p.shape, lambda i: (0, 0)) for p in kparams]

    out_shape = (
        jax.ShapeDtypeStruct((B, IN_DIM), jnp.float32),  # x_recon (flat)
        jax.ShapeDtypeStruct((B, Z_DIM), jnp.float32),   # mu
        jax.ShapeDtypeStruct((B, Z_DIM), jnp.float32),   # logvar
    )
    out_specs = (
        pl.BlockSpec((TB, IN_DIM), lambda i: (i, 0)),
        pl.BlockSpec((TB, Z_DIM), lambda i: (i, 0)),
        pl.BlockSpec((TB, Z_DIM), lambda i: (i, 0)),
    )

    x_recon_flat, mu, logvar = pl.pallas_call(
        _vae_kernel,
        grid=grid,
        in_specs=act_specs + w_specs,
        out_specs=out_specs,
        out_shape=out_shape,
        compiler_params=pltpu.CompilerParams(
            dimension_semantics=("parallel",),
            vmem_limit_bytes=56 * 1024 * 1024,
        ),
        cost_estimate=_cost_estimate(B),
    )(x_flat, eps_p, *kparams)

    x_recon = x_recon_flat.reshape(B, NC, IMG, IMG)      # View((-1, nc, 28, 28))
    return x_recon, mu, logvar


# ---------------------------------------------------------------------------
# Deterministic parameter init (kaiming-normal weights, zero biases)
# ---------------------------------------------------------------------------
def _init_mlp_params(key, dims):
    params = []
    for fan_in, fan_out in zip(dims[:-1], dims[1:]):
        key, wkey = jax.random.split(key)
        std = (2.0 / fan_in) ** 0.5      # kaiming_normal, fan_in mode
        w = std * jax.random.normal(wkey, (fan_in, fan_out), dtype=jnp.float32)
        b = jnp.zeros((fan_out,), dtype=jnp.float32)
        params.append((w, b))
    return params


# ---------------------------------------------------------------------------
# Pure-JAX, dtype-matched reference (bf16 weights/activations at dot boundary)
# ---------------------------------------------------------------------------
def _ref_mlp(x, params):
    h = x
    n = len(params)
    for i, (w, b) in enumerate(params):
        h = jnp.dot(h.astype(jnp.bfloat16), w.astype(jnp.bfloat16),
                    preferred_element_type=jnp.float32) + b
        if i < n - 1:
            h = jnp.maximum(h, 0.0)
    return h


def _ref_forward(x, enc_params, dec_params, eps_key):
    B = x.shape[0]
    dist = _ref_mlp(x.reshape(B, -1), enc_params)
    mu, logvar = dist[:, :Z_DIM], dist[:, Z_DIM:]
    eps = jax.random.normal(eps_key, mu.shape, dtype=jnp.float32)
    z = mu + jnp.exp(logvar * 0.5) * eps
    x_recon = _ref_mlp(z, dec_params).reshape(B, NC, IMG, IMG)
    return x_recon, mu, logvar


# ---------------------------------------------------------------------------
if __name__ == "__main__":
    key = jax.random.PRNGKey(0)
    k_x, k_enc, k_dec, k_eps = jax.random.split(key, 4)

    B = 2
    x = jax.random.normal(k_x, (B, NC, IMG, IMG), dtype=jnp.float32)

    enc_params = _init_mlp_params(k_enc, ENC_DIMS)
    dec_params = _init_mlp_params(k_dec, DEC_DIMS)
    kparams = pack_kernel_params(enc_params, dec_params)

    fwd = jax.jit(linear_vae_forward)
    x_recon, mu, logvar = fwd(x, kparams, k_eps)
    jax.block_until_ready((x_recon, mu, logvar))

    # sanity check against the dtype-matched pure-JAX reference
    r_recon, r_mu, r_logvar = _ref_forward(x, enc_params, dec_params, k_eps)
    assert x_recon.shape == (B, NC, IMG, IMG)
    assert mu.shape == (B, Z_DIM) and logvar.shape == (B, Z_DIM)
    assert jnp.allclose(mu, r_mu, rtol=1e-3, atol=1e-3)
    assert jnp.allclose(logvar, r_logvar, rtol=1e-3, atol=1e-3)
    assert jnp.allclose(x_recon, r_recon, rtol=1e-2, atol=1e-2)

    print("KERNEL_OK")
</pallas_src>

<mosaic_0001>
module attributes {stable_mosaic.version = 11 : i64} {
  func.func @_vae_kernel(%arg0: i32, %arg1: memref<2x2352xf32, #tpu.memory_space<vmem>>, %arg2: memref<2x128xf32, #tpu.memory_space<vmem>>, %arg3: memref<2352x256xbf16, #tpu.memory_space<vmem>>, %arg4: memref<1x256xf32, #tpu.memory_space<vmem>>, %arg5: memref<256x128xbf16, #tpu.memory_space<vmem>>, %arg6: memref<1x128xf32, #tpu.memory_space<vmem>>, %arg7: memref<128x128xbf16, #tpu.memory_space<vmem>>, %arg8: memref<1x128xf32, #tpu.memory_space<vmem>>, %arg9: memref<128x128xbf16, #tpu.memory_space<vmem>>, %arg10: memref<1x128xf32, #tpu.memory_space<vmem>>, %arg11: memref<128x128xbf16, #tpu.memory_space<vmem>>, %arg12: memref<1x128xf32, #tpu.memory_space<vmem>>, %arg13: memref<128x128xbf16, #tpu.memory_space<vmem>>, %arg14: memref<1x128xf32, #tpu.memory_space<vmem>>, %arg15: memref<128x128xbf16, #tpu.memory_space<vmem>>, %arg16: memref<1x128xf32, #tpu.memory_space<vmem>>, %arg17: memref<128x128xbf16, #tpu.memory_space<vmem>>, %arg18: memref<1x128xf32, #tpu.memory_space<vmem>>, %arg19: memref<128x128xbf16, #tpu.memory_space<vmem>>, %arg20: memref<1x128xf32, #tpu.memory_space<vmem>>, %arg21: memref<128x256xbf16, #tpu.memory_space<vmem>>, %arg22: memref<1x256xf32, #tpu.memory_space<vmem>>, %arg23: memref<256x2352xbf16, #tpu.memory_space<vmem>>, %arg24: memref<1x2352xf32, #tpu.memory_space<vmem>>, %arg25: memref<2x2352xf32, #tpu.memory_space<vmem>>, %arg26: memref<2x10xf32, #tpu.memory_space<vmem>>, %arg27: memref<2x10xf32, #tpu.memory_space<vmem>>) attributes {dimension_semantics = [#tpu.dimension_semantics<parallel>], iteration_bounds = array<i64: 1>, scalar_prefetch = 0 : i64, scratch_operands = 0 : i64, tpu.core_type = #tpu.core_type<tc>, window_params = [{transform_indices = @transform_0, window_bounds = array<i64: 2, 2352>}, {transform_indices = @transform_1, window_bounds = array<i64: 2, 128>}, {pipeline_mode = #tpu.pipeline_mode<synchronous>, transform_indices = @transform_2, window_bounds = array<i64: 2352, 256>}, {pipeline_mode = #tpu.pipeline_mode<synchronous>, transform_indices = @transform_3, window_bounds = array<i64: 1, 256>}, {pipeline_mode = #tpu.pipeline_mode<synchronous>, transform_indices = @transform_4, window_bounds = array<i64: 256, 128>}, {pipeline_mode = #tpu.pipeline_mode<synchronous>, transform_indices = @transform_5, window_bounds = array<i64: 1, 128>}, {pipeline_mode = #tpu.pipeline_mode<synchronous>, transform_indices = @transform_6, window_bounds = array<i64: 128, 128>}, {pipeline_mode = #tpu.pipeline_mode<synchronous>, transform_indices = @transform_7, window_bounds = array<i64: 1, 128>}, {pipeline_mode = #tpu.pipeline_mode<synchronous>, transform_indices = @transform_8, window_bounds = array<i64: 128, 128>}, {pipeline_mode = #tpu.pipeline_mode<synchronous>, transform_indices = @transform_9, window_bounds = array<i64: 1, 128>}, {pipeline_mode = #tpu.pipeline_mode<synchronous>, transform_indices = @transform_10, window_bounds = array<i64: 128, 128>}, {pipeline_mode = #tpu.pipeline_mode<synchronous>, transform_indices = @transform_11, window_bounds = array<i64: 1, 128>}, {pipeline_mode = #tpu.pipeline_mode<synchronous>, transform_indices = @transform_12, window_bounds = array<i64: 128, 128>}, {pipeline_mode = #tpu.pipeline_mode<synchronous>, transform_indices = @transform_13, window_bounds = array<i64: 1, 128>}, {pipeline_mode = #tpu.pipeline_mode<synchronous>, transform_indices = @transform_14, window_bounds = array<i64: 128, 128>}, {pipeline_mode = #tpu.pipeline_mode<synchronous>, transform_indices = @transform_15, window_bounds = array<i64: 1, 128>}, {pipeline_mode = #tpu.pipeline_mode<synchronous>, transform_indices = @transform_16, window_bounds = array<i64: 128, 128>}, {pipeline_mode = #tpu.pipeline_mode<synchronous>, transform_indices = @transform_17, window_bounds = array<i64: 1, 128>}, {pipeline_mode = #tpu.pipeline_mode<synchronous>, transform_indices = @transform_18, window_bounds = array<i64: 128, 128>}, {pipeline_mode = #tpu.pipeline_mode<synchronous>, transform_indices = @transform_19, window_bounds = array<i64: 1, 128>}, {pipeline_mode = #tpu.pipeline_mode<synchronous>, transform_indices = @transform_20, window_bounds = array<i64: 128, 256>}, {pipeline_mode = #tpu.pipeline_mode<synchronous>, transform_indices = @transform_21, window_bounds = array<i64: 1, 256>}, {pipeline_mode = #tpu.pipeline_mode<synchronous>, transform_indices = @transform_22, window_bounds = array<i64: 256, 2352>}, {pipeline_mode = #tpu.pipeline_mode<synchronous>, transform_indices = @transform_23, window_bounds = array<i64: 1, 2352>}, {transform_indices = @transform_24, window_bounds = array<i64: 2, 2352>}, {transform_indices = @transform_25, window_bounds = array<i64: 2, 10>}, {transform_indices = @transform_26, window_bounds = array<i64: 2, 10>}]} {
    %c0 = arith.constant 0 : index
    %c0_0 = arith.constant 0 : index
    %0 = vector.load %arg1[%c0, %c0_0] : memref<2x2352xf32, #tpu.memory_space<vmem>>, vector<2x2352xf32>
    %1 = arith.truncf %0 : vector<2x2352xf32> to vector<2x2352xbf16>
    %c0_1 = arith.constant 0 : index
    %c0_2 = arith.constant 0 : index
    %2 = vector.load %arg3[%c0_1, %c0_2] : memref<2352x256xbf16, #tpu.memory_space<vmem>>, vector<2352x256xbf16>
    %cst = arith.constant dense<0.000000e+00> : vector<2x256xf32>
    %3 = tpu.matmul %1, %2, %cst {dimension_numbers = #tpu.dot_dimension_numbers<[1], [0], [0], [1], [0, 0, 1, 1], [], []>} : vector<2x2352xbf16>, vector<2352x256xbf16>, vector<2x256xf32> -> vector<2x256xf32>
    %c0_3 = arith.constant 0 : index
    %c0_4 = arith.constant 0 : index
    %4 = vector.load %arg4[%c0_3, %c0_4] : memref<1x256xf32, #tpu.memory_space<vmem>>, vector<1x256xf32>
    %5 = vector.broadcast %4 : vector<1x256xf32> to vector<2x256xf32>
    %6 = arith.addf %3, %5 : vector<2x256xf32>
    %cst_5 = arith.constant 0.000000e+00 : f32
    %7 = vector.broadcast %cst_5 : f32 to vector<2x256xf32>
    %8 = arith.maximumf %6, %7 : vector<2x256xf32>
    %9 = arith.truncf %8 : vector<2x256xf32> to vector<2x256xbf16>
    %c0_6 = arith.constant 0 : index
    %c0_7 = arith.constant 0 : index
    %10 = vector.load %arg5[%c0_6, %c0_7] : memref<256x128xbf16, #tpu.memory_space<vmem>>, vector<256x128xbf16>
    %cst_8 = arith.constant dense<0.000000e+00> : vector<2x128xf32>
    %11 = tpu.matmul %9, %10, %cst_8 {dimension_numbers = #tpu.dot_dimension_numbers<[1], [0], [0], [1], [0, 0, 1, 1], [], []>} : vector<2x256xbf16>, vector<256x128xbf16>, vector<2x128xf32> -> vector<2x128xf32>
    %c0_9 = arith.constant 0 : index
    %c0_10 = arith.constant 0 : index
    %12 = vector.load %arg6[%c0_9, %c0_10] : memref<1x128xf32, #tpu.memory_space<vmem>>, vector<1x128xf32>
    %13 = vector.broadcast %12 : vector<1x128xf32> to vector<2x128xf32>
    %14 = arith.addf %11, %13 : vector<2x128xf32>
    %cst_11 = arith.constant 0.000000e+00 : f32
    %15 = vector.broadcast %cst_11 : f32 to vector<2x128xf32>
    %16 = arith.maximumf %14, %15 : vector<2x128xf32>
    %17 = arith.truncf %16 : vector<2x128xf32> to vector<2x128xbf16>
    %c0_12 = arith.constant 0 : index
    %c0_13 = arith.constant 0 : index
    %18 = vector.load %arg7[%c0_12, %c0_13] : memref<128x128xbf16, #tpu.memory_space<vmem>>, vector<128x128xbf16>
    %cst_14 = arith.constant dense<0.000000e+00> : vector<2x128xf32>
    %19 = tpu.matmul %17, %18, %cst_14 {dimension_numbers = #tpu.dot_dimension_numbers<[1], [0], [0], [1], [0, 0, 1, 1], [], []>} : vector<2x128xbf16>, vector<128x128xbf16>, vector<2x128xf32> -> vector<2x128xf32>
    %c0_15 = arith.constant 0 : index
    %c0_16 = arith.constant 0 : index
    %20 = vector.load %arg8[%c0_15, %c0_16] : memref<1x128xf32, #tpu.memory_space<vmem>>, vector<1x128xf32>
    %21 = vector.broadcast %20 : vector<1x128xf32> to vector<2x128xf32>
    %22 = arith.addf %19, %21 : vector<2x128xf32>
    %cst_17 = arith.constant 0.000000e+00 : f32
    %23 = vector.broadcast %cst_17 : f32 to vector<2x128xf32>
    %24 = arith.maximumf %22, %23 : vector<2x128xf32>
    %25 = arith.truncf %24 : vector<2x128xf32> to vector<2x128xbf16>
    %c0_18 = arith.constant 0 : index
    %c0_19 = arith.constant 0 : index
    %26 = vector.load %arg9[%c0_18, %c0_19] : memref<128x128xbf16, #tpu.memory_space<vmem>>, vector<128x128xbf16>
    %cst_20 = arith.constant dense<0.000000e+00> : vector<2x128xf32>
    %27 = tpu.matmul %25, %26, %cst_20 {dimension_numbers = #tpu.dot_dimension_numbers<[1], [0], [0], [1], [0, 0, 1, 1], [], []>} : vector<2x128xbf16>, vector<128x128xbf16>, vector<2x128xf32> -> vector<2x128xf32>
    %c0_21 = arith.constant 0 : index
    %c0_22 = arith.constant 0 : index
    %28 = vector.load %arg10[%c0_21, %c0_22] : memref<1x128xf32, #tpu.memory_space<vmem>>, vector<1x128xf32>
    %29 = vector.broadcast %28 : vector<1x128xf32> to vector<2x128xf32>
    %30 = arith.addf %27, %29 : vector<2x128xf32>
    %cst_23 = arith.constant 0.000000e+00 : f32
    %31 = vector.broadcast %cst_23 : f32 to vector<2x128xf32>
    %32 = arith.maximumf %30, %31 : vector<2x128xf32>
    %33 = arith.truncf %32 : vector<2x128xf32> to vector<2x128xbf16>
    %c0_24 = arith.constant 0 : index
    %c0_25 = arith.constant 0 : index
    %34 = vector.load %arg11[%c0_24, %c0_25] : memref<128x128xbf16, #tpu.memory_space<vmem>>, vector<128x128xbf16>
    %cst_26 = arith.constant dense<0.000000e+00> : vector<2x128xf32>
    %35 = tpu.matmul %33, %34, %cst_26 {dimension_numbers = #tpu.dot_dimension_numbers<[1], [0], [0], [1], [0, 0, 1, 1], [], []>} : vector<2x128xbf16>, vector<128x128xbf16>, vector<2x128xf32> -> vector<2x128xf32>
    %c0_27 = arith.constant 0 : index
    %c0_28 = arith.constant 0 : index
    %36 = vector.load %arg12[%c0_27, %c0_28] : memref<1x128xf32, #tpu.memory_space<vmem>>, vector<1x128xf32>
    %37 = vector.broadcast %36 : vector<1x128xf32> to vector<2x128xf32>
    %38 = arith.addf %35, %37 : vector<2x128xf32>
    %39 = arith.truncf %32 : vector<2x128xf32> to vector<2x128xbf16>
    %c0_29 = arith.constant 0 : index
    %c0_30 = arith.constant 0 : index
    %40 = vector.load %arg13[%c0_29, %c0_30] : memref<128x128xbf16, #tpu.memory_space<vmem>>, vector<128x128xbf16>
    %cst_31 = arith.constant dense<0.000000e+00> : vector<2x128xf32>
    %41 = tpu.matmul %39, %40, %cst_31 {dimension_numbers = #tpu.dot_dimension_numbers<[1], [0], [0], [1], [0, 0, 1, 1], [], []>} : vector<2x128xbf16>, vector<128x128xbf16>, vector<2x128xf32> -> vector<2x128xf32>
    %c0_32 = arith.constant 0 : index
    %c0_33 = arith.constant 0 : index
    %42 = vector.load %arg14[%c0_32, %c0_33] : memref<1x128xf32, #tpu.memory_space<vmem>>, vector<1x128xf32>
    %43 = vector.broadcast %42 : vector<1x128xf32> to vector<2x128xf32>
    %44 = arith.addf %41, %43 : vector<2x128xf32>
    %45 = vector.extract_strided_slice %38 {offsets = [0, 0], sizes = [2, 10], strides = [1, 1]} : vector<2x128xf32> to vector<2x10xf32>
    %c0_34 = arith.constant 0 : index
    %c0_35 = arith.constant 0 : index
    %46 = vector.load %arg26[%c0_34, %c0_35] : memref<2x10xf32, #tpu.memory_space<vmem>>, vector<2x10xf32>
    tpu.vector_store %arg26[%c0_34, %c0_35], %45 {strides = array<i32>} : memref<2x10xf32, #tpu.memory_space<vmem>>, vector<2x10xf32>,
    %47 = vector.extract_strided_slice %44 {offsets = [0, 0], sizes = [2, 10], strides = [1, 1]} : vector<2x128xf32> to vector<2x10xf32>
    %c0_36 = arith.constant 0 : index
    %c0_37 = arith.constant 0 : index
    %48 = vector.load %arg27[%c0_36, %c0_37] : memref<2x10xf32, #tpu.memory_space<vmem>>, vector<2x10xf32>
    tpu.vector_store %arg27[%c0_36, %c0_37], %47 {strides = array<i32>} : memref<2x10xf32, #tpu.memory_space<vmem>>, vector<2x10xf32>,
    %cst_38 = arith.constant 5.000000e-01 : f32
    %49 = vector.broadcast %cst_38 : f32 to vector<2x128xf32>
    %50 = arith.mulf %44, %49 : vector<2x128xf32>
    %51 = math.exp %50 : vector<2x128xf32>
    %c0_39 = arith.constant 0 : index
    %c0_40 = arith.constant 0 : index
    %52 = vector.load %arg2[%c0_39, %c0_40] : memref<2x128xf32, #tpu.memory_space<vmem>>, vector<2x128xf32>
    %53 = arith.mulf %51, %52 : vector<2x128xf32>
    %54 = arith.addf %38, %53 : vector<2x128xf32>
    %55 = arith.truncf %54 : vector<2x128xf32> to vector<2x128xbf16>
    %c0_41 = arith.constant 0 : index
    %c0_42 = arith.constant 0 : index
    %56 = vector.load %arg15[%c0_41, %c0_42] : memref<128x128xbf16, #tpu.memory_space<vmem>>, vector<128x128xbf16>
    %cst_43 = arith.constant dense<0.000000e+00> : vector<2x128xf32>
    %57 = tpu.matmul %55, %56, %cst_43 {dimension_numbers = #tpu.dot_dimension_numbers<[1], [0], [0], [1], [0, 0, 1, 1], [], []>} : vector<2x128xbf16>, vector<128x128xbf16>, vector<2x128xf32> -> vector<2x128xf32>
    %c0_44 = arith.constant 0 : index
    %c0_45 = arith.constant 0 : index
    %58 = vector.load %arg16[%c0_44, %c0_45] : memref<1x128xf32, #tpu.memory_space<vmem>>, vector<1x128xf32>
    %59 = vector.broadcast %58 : vector<1x128xf32> to vector<2x128xf32>
    %60 = arith.addf %57, %59 : vector<2x128xf32>
    %cst_46 = arith.constant 0.000000e+00 : f32
    %61 = vector.broadcast %cst_46 : f32 to vector<2x128xf32>
    %62 = arith.maximumf %60, %61 : vector<2x128xf32>
    %63 = arith.truncf %62 : vector<2x128xf32> to vector<2x128xbf16>
    %c0_47 = arith.constant 0 : index
    %c0_48 = arith.constant 0 : index
    %64 = vector.load %arg17[%c0_47, %c0_48] : memref<128x128xbf16, #tpu.memory_space<vmem>>, vector<128x128xbf16>
    %cst_49 = arith.constant dense<0.000000e+00> : vector<2x128xf32>
    %65 = tpu.matmul %63, %64, %cst_49 {dimension_numbers = #tpu.dot_dimension_numbers<[1], [0], [0], [1], [0, 0, 1, 1], [], []>} : vector<2x128xbf16>, vector<128x128xbf16>, vector<2x128xf32> -> vector<2x128xf32>
    %c0_50 = arith.constant 0 : index
    %c0_51 = arith.constant 0 : index
    %66 = vector.load %arg18[%c0_50, %c0_51] : memref<1x128xf32, #tpu.memory_space<vmem>>, vector<1x128xf32>
    %67 = vector.broadcast %66 : vector<1x128xf32> to vector<2x128xf32>
    %68 = arith.addf %65, %67 : vector<2x128xf32>
    %cst_52 = arith.constant 0.000000e+00 : f32
    %69 = vector.broadcast %cst_52 : f32 to vector<2x128xf32>
    %70 = arith.maximumf %68, %69 : vector<2x128xf32>
    %71 = arith.truncf %70 : vector<2x128xf32> to vector<2x128xbf16>
    %c0_53 = arith.constant 0 : index
    %c0_54 = arith.constant 0 : index
    %72 = vector.load %arg19[%c0_53, %c0_54] : memref<128x128xbf16, #tpu.memory_space<vmem>>, vector<128x128xbf16>
    %cst_55 = arith.constant dense<0.000000e+00> : vector<2x128xf32>
    %73 = tpu.matmul %71, %72, %cst_55 {dimension_numbers = #tpu.dot_dimension_numbers<[1], [0], [0], [1], [0, 0, 1, 1], [], []>} : vector<2x128xbf16>, vector<128x128xbf16>, vector<2x128xf32> -> vector<2x128xf32>
    %c0_56 = arith.constant 0 : index
    %c0_57 = arith.constant 0 : index
    %74 = vector.load %arg20[%c0_56, %c0_57] : memref<1x128xf32, #tpu.memory_space<vmem>>, vector<1x128xf32>
    %75 = vector.broadcast %74 : vector<1x128xf32> to vector<2x128xf32>
    %76 = arith.addf %73, %75 : vector<2x128xf32>
    %cst_58 = arith.constant 0.000000e+00 : f32
    %77 = vector.broadcast %cst_58 : f32 to vector<2x128xf32>
    %78 = arith.maximumf %76, %77 : vector<2x128xf32>
    %79 = arith.truncf %78 : vector<2x128xf32> to vector<2x128xbf16>
    %c0_59 = arith.constant 0 : index
    %c0_60 = arith.constant 0 : index
    %80 = vector.load %arg21[%c0_59, %c0_60] : memref<128x256xbf16, #tpu.memory_space<vmem>>, vector<128x256xbf16>
    %cst_61 = arith.constant dense<0.000000e+00> : vector<2x256xf32>
    %81 = tpu.matmul %79, %80, %cst_61 {dimension_numbers = #tpu.dot_dimension_numbers<[1], [0], [0], [1], [0, 0, 1, 1], [], []>} : vector<2x128xbf16>, vector<128x256xbf16>, vector<2x256xf32> -> vector<2x256xf32>
    %c0_62 = arith.constant 0 : index
    %c0_63 = arith.constant 0 : index
    %82 = vector.load %arg22[%c0_62, %c0_63] : memref<1x256xf32, #tpu.memory_space<vmem>>, vector<1x256xf32>
    %83 = vector.broadcast %82 : vector<1x256xf32> to vector<2x256xf32>
    %84 = arith.addf %81, %83 : vector<2x256xf32>
    %cst_64 = arith.constant 0.000000e+00 : f32
    %85 = vector.broadcast %cst_64 : f32 to vector<2x256xf32>
    %86 = arith.maximumf %84, %85 : vector<2x256xf32>
    %87 = arith.truncf %86 : vector<2x256xf32> to vector<2x256xbf16>
    %c0_65 = arith.constant 0 : index
    %c0_66 = arith.constant 0 : index
    %88 = vector.load %arg23[%c0_65, %c0_66] : memref<256x2352xbf16, #tpu.memory_space<vmem>>, vector<256x2352xbf16>
    %cst_67 = arith.constant dense<0.000000e+00> : vector<2x2352xf32>
    %89 = tpu.matmul %87, %88, %cst_67 {dimension_numbers = #tpu.dot_dimension_numbers<[1], [0], [0], [1], [0, 0, 1, 1], [], []>} : vector<2x256xbf16>, vector<256x2352xbf16>, vector<2x2352xf32> -> vector<2x2352xf32>
    %c0_68 = arith.constant 0 : index
    %c0_69 = arith.constant 0 : index
    %90 = vector.load %arg24[%c0_68, %c0_69] : memref<1x2352xf32, #tpu.memory_space<vmem>>, vector<1x2352xf32>
    %91 = vector.broadcast %90 : vector<1x2352xf32> to vector<2x2352xf32>
    %92 = arith.addf %89, %91 : vector<2x2352xf32>
    %c0_70 = arith.constant 0 : index
    %c0_71 = arith.constant 0 : index
    %93 = vector.load %arg25[%c0_70, %c0_71] : memref<2x2352xf32, #tpu.memory_space<vmem>>, vector<2x2352xf32>
    tpu.vector_store %arg25[%c0_70, %c0_71], %92 {strides = array<i32>} : memref<2x2352xf32, #tpu.memory_space<vmem>>, vector<2x2352xf32>,
    return
  }
  func.func @transform_0(%arg0: i32) -> (i32, i32) {
    %c0_i32 = arith.constant 0 : i32
    %c0_i32_0 = arith.constant 0 : i32
    return %arg0, %c0_i32 : i32, i32
  }
  func.func @transform_1(%arg0: i32) -> (i32, i32) {
    %c0_i32 = arith.constant 0 : i32
    %c0_i32_0 = arith.constant 0 : i32
    return %arg0, %c0_i32 : i32, i32
  }
  func.func @transform_2(%arg0: i32) -> (i32, i32) {
    %c0_i32 = arith.constant 0 : i32
    %c0_i32_0 = arith.constant 0 : i32
    %c0_i32_1 = arith.constant 0 : i32
    return %c0_i32, %c0_i32_0 : i32, i32
  }
  func.func @transform_3(%arg0: i32) -> (i32, i32) {
    %c0_i32 = arith.constant 0 : i32
    %c0_i32_0 = arith.constant 0 : i32
    %c0_i32_1 = arith.constant 0 : i32
    return %c0_i32, %c0_i32_0 : i32, i32
  }
  func.func @transform_4(%arg0: i32) -> (i32, i32) {
    %c0_i32 = arith.constant 0 : i32
    %c0_i32_0 = arith.constant 0 : i32
    %c0_i32_1 = arith.constant 0 : i32
    return %c0_i32, %c0_i32_0 : i32, i32
  }
  func.func @transform_5(%arg0: i32) -> (i32, i32) {
    %c0_i32 = arith.constant 0 : i32
    %c0_i32_0 = arith.constant 0 : i32
    %c0_i32_1 = arith.constant 0 : i32
    return %c0_i32, %c0_i32_0 : i32, i32
  }
  func.func @transform_6(%arg0: i32) -> (i32, i32) {
    %c0_i32 = arith.constant 0 : i32
    %c0_i32_0 = arith.constant 0 : i32
    %c0_i32_1 = arith.constant 0 : i32
    return %c0_i32, %c0_i32_0 : i32, i32
  }
  func.func @transform_7(%arg0: i32) -> (i32, i32) {
    %c0_i32 = arith.constant 0 : i32
    %c0_i32_0 = arith.constant 0 : i32
    %c0_i32_1 = arith.constant 0 : i32
    return %c0_i32, %c0_i32_0 : i32, i32
  }
  func.func @transform_8(%arg0: i32) -> (i32, i32) {
    %c0_i32 = arith.constant 0 : i32
    %c0_i32_0 = arith.constant 0 : i32
    %c0_i32_1 = arith.constant 0 : i32
    return %c0_i32, %c0_i32_0 : i32, i32
  }
  func.func @transform_9(%arg0: i32) -> (i32, i32) {
    %c0_i32 = arith.constant 0 : i32
    %c0_i32_0 = arith.constant 0 : i32
    %c0_i32_1 = arith.constant 0 : i32
    return %c0_i32, %c0_i32_0 : i32, i32
  }
  func.func @transform_10(%arg0: i32) -> (i32, i32) {
    %c0_i32 = arith.constant 0 : i32
    %c0_i32_0 = arith.constant 0 : i32
    %c0_i32_1 = arith.constant 0 : i32
    return %c0_i32, %c0_i32_0 : i32, i32
  }
  func.func @transform_11(%arg0: i32) -> (i32, i32) {
    %c0_i32 = arith.constant 0 : i32
    %c0_i32_0 = arith.constant 0 : i32
    %c0_i32_1 = arith.constant 0 : i32
    return %c0_i32, %c0_i32_0 : i32, i32
  }
  func.func @transform_12(%arg0: i32) -> (i32, i32) {
    %c0_i32 = arith.constant 0 : i32
    %c0_i32_0 = arith.constant 0 : i32
    %c0_i32_1 = arith.constant 0 : i32
    return %c0_i32, %c0_i32_0 : i32, i32
  }
  func.func @transform_13(%arg0: i32) -> (i32, i32) {
    %c0_i32 = arith.constant 0 : i32
    %c0_i32_0 = arith.constant 0 : i32
    %c0_i32_1 = arith.constant 0 : i32
    return %c0_i32, %c0_i32_0 : i32, i32
  }
  func.func @transform_14(%arg0: i32) -> (i32, i32) {
    %c0_i32 = arith.constant 0 : i32
    %c0_i32_0 = arith.constant 0 : i32
    %c0_i32_1 = arith.constant 0 : i32
    return %c0_i32, %c0_i32_0 : i32, i32
  }
  func.func @transform_15(%arg0: i32) -> (i32, i32) {
    %c0_i32 = arith.constant 0 : i32
    %c0_i32_0 = arith.constant 0 : i32
    %c0_i32_1 = arith.constant 0 : i32
    return %c0_i32, %c0_i32_0 : i32, i32
  }
  func.func @transform_16(%arg0: i32) -> (i32, i32) {
    %c0_i32 = arith.constant 0 : i32
    %c0_i32_0 = arith.constant 0 : i32
    %c0_i32_1 = arith.constant 0 : i32
    return %c0_i32, %c0_i32_0 : i32, i32
  }
  func.func @transform_17(%arg0: i32) -> (i32, i32) {
    %c0_i32 = arith.constant 0 : i32
    %c0_i32_0 = arith.constant 0 : i32
    %c0_i32_1 = arith.constant 0 : i32
    return %c0_i32, %c0_i32_0 : i32, i32
  }
  func.func @transform_18(%arg0: i32) -> (i32, i32) {
    %c0_i32 = arith.constant 0 : i32
    %c0_i32_0 = arith.constant 0 : i32
    %c0_i32_1 = arith.constant 0 : i32
    return %c0_i32, %c0_i32_0 : i32, i32
  }
  func.func @transform_19(%arg0: i32) -> (i32, i32) {
    %c0_i32 = arith.constant 0 : i32
    %c0_i32_0 = arith.constant 0 : i32
    %c0_i32_1 = arith.constant 0 : i32
    return %c0_i32, %c0_i32_0 : i32, i32
  }
  func.func @transform_20(%arg0: i32) -> (i32, i32) {
    %c0_i32 = arith.constant 0 : i32
    %c0_i32_0 = arith.constant 0 : i32
    %c0_i32_1 = arith.constant 0 : i32
    return %c0_i32, %c0_i32_0 : i32, i32
  }
  func.func @transform_21(%arg0: i32) -> (i32, i32) {
    %c0_i32 = arith.constant 0 : i32
    %c0_i32_0 = arith.constant 0 : i32
    %c0_i32_1 = arith.constant 0 : i32
    return %c0_i32, %c0_i32_0 : i32, i32
  }
  func.func @transform_22(%arg0: i32) -> (i32, i32) {
    %c0_i32 = arith.constant 0 : i32
    %c0_i32_0 = arith.constant 0 : i32
    %c0_i32_1 = arith.constant 0 : i32
    return %c0_i32, %c0_i32_0 : i32, i32
  }
  func.func @transform_23(%arg0: i32) -> (i32, i32) {
    %c0_i32 = arith.constant 0 : i32
    %c0_i32_0 = arith.constant 0 : i32
    %c0_i32_1 = arith.constant 0 : i32
    return %c0_i32, %c0_i32_0 : i32, i32
  }
  func.func @transform_24(%arg0: i32) -> (i32, i32) {
    %c0_i32 = arith.constant 0 : i32
    %c0_i32_0 = arith.constant 0 : i32
    return %arg0, %c0_i32 : i32, i32
  }
  func.func @transform_25(%arg0: i32) -> (i32, i32) {
    %c0_i32 = arith.constant 0 : i32
    %c0_i32_0 = arith.constant 0 : i32
    return %arg0, %c0_i32 : i32, i32
  }
  func.func @transform_26(%arg0: i32) -> (i32, i32) {
    %c0_i32 = arith.constant 0 : i32
    %c0_i32_0 = arith.constant 0 : i32
    return %arg0, %c0_i32 : i32, i32
  }
}

</mosaic_0001>

<bundles_post_ra>
// kernel: linear_vae_forward.1
= control target key start
LH: loop header
LB: loop body
LE: loop exit
PB: predicated region body
PF: predicated region fallthrough
CT: control target
= control target key end

     0   :  { %s10544_s0 = inlined_call_operand.vmem [shape: f32[2,2352], index: 0, kind: input, shape index: {}]   ;;  %s10545_s1 = inlined_call_operand.vmem [shape: f32[2,128], index: 1, kind: input, shape index: {}]   ;;  %s10546_s2 = inlined_call_operand.vmem [shape: bf16[2352,256], index: 2, kind: input, shape index: {}]   ;;  %s10547_s3 = inlined_call_operand.vmem [shape: f32[1,256], index: 3, kind: input, shape index: {}]   ;;  %s10548_s4 = inlined_call_operand.vmem [shape: bf16[256,128], index: 4, kind: input, shape index: {}]   ;;  %s10549_s5 = inlined_call_operand.vmem [shape: f32[1,128], index: 5, kind: input, shape index: {}]   ;;  %s10550_s6 = inlined_call_operand.vmem [shape: bf16[128,128], index: 6, kind: input, shape index: {}]   ;;  %s10551_s7 = inlined_call_operand.vmem [shape: f32[1,128], index: 7, kind: input, shape index: {}]   ;;  %s10552_s8 = inlined_call_operand.vmem [shape: bf16[128,128], index: 8, kind: input, shape index: {}]   ;;  %s10553_s9 = inlined_call_operand.vmem [shape: f32[1,128], index: 9, kind: input, shape index: {}]   ;;  %s10554_s10 = inlined_call_operand.vmem [shape: bf16[128,128], index: 10, kind: input, shape index: {}]   ;;  %s10555_s11 = inlined_call_operand.vmem [shape: f32[1,128], index: 11, kind: input, shape index: {}]   ;;  %s10556_s12 = inlined_call_operand.vmem [shape: bf16[128,128], index: 12, kind: input, shape index: {}]   ;;  %s10557_s13 = inlined_call_operand.vmem [shape: f32[1,128], index: 13, kind: input, shape index: {}]   ;;  %s10558_s14 = inlined_call_operand.vmem [shape: bf16[128,128], index: 14, kind: input, shape index: {}]   ;;  %s10559_s15 = inlined_call_operand.vmem [shape: f32[1,128], index: 15, kind: input, shape index: {}]   ;;  %s10560_s16 = inlined_call_operand.vmem [shape: bf16[128,128], index: 16, kind: input, shape index: {}]   ;;  %s10561_s17 = inlined_call_operand.vmem [shape: f32[1,128], index: 17, kind: input, shape index: {}]   ;;  %s10562_s18 = inlined_call_operand.vmem [shape: bf16[128,128], index: 18, kind: input, shape index: {}]   ;;  %s10563_s19 = inlined_call_operand.vmem [shape: f32[1,128], index: 19, kind: input, shape index: {}]   ;;  %s10564_s20 = inlined_call_operand.vmem [shape: bf16[128,256], index: 20, kind: input, shape index: {}]   ;;  %s10565_s21 = inlined_call_operand.vmem [shape: f32[1,256], index: 21, kind: input, shape index: {}]   ;;  %s10566_s22 = inlined_call_operand.vmem [shape: bf16[256,2352], index: 22, kind: input, shape index: {}]   ;;  %s10567_s23 = inlined_call_operand.vmem [shape: f32[1,2352], index: 23, kind: input, shape index: {}]   ;;  %s10568_s24 = inlined_call_operand.vmem [shape: f32[2,2352], index: 24, kind: output, shape index: {0}]   ;;  %s10569_s25 = inlined_call_operand.hbm [shape: f32[2,10], index: 25, kind: output, shape index: {1}]   ;;  %s10570_s26 = inlined_call_operand.hbm [shape: f32[2,10], index: 26, kind: output, shape index: {2}]  }
   0x1   :  { %10577 = sst [smem:[#allocation8_spill]] %s10544_s0 }
   0x2   :  { %10578 = sst [smem:[#allocation9_spill]] %s10545_s1 }
   0x3   :  { %10579 = sst [smem:[#allocation10_spill]] %s10546_s2 }
   0x4   :  { %10580 = sst [smem:[#allocation11_spill]] %s10547_s3 }
   0x5   :  { %10581 = sst [smem:[#allocation12_spill]] %s10548_s4 }
   0x6   :  { %10582 = sst [smem:[#allocation13_spill]] %s10549_s5 }
   0x7   :  { %10583 = sst [smem:[#allocation14_spill]] %s10550_s6 }
   0x8   :  { %10584 = sst [smem:[#allocation15_spill]] %s10551_s7 }
   0x9   :  { %10585 = sst [smem:[#allocation16_spill]] %s10552_s8 }
   0xa   :  { %10586 = sst [smem:[#allocation17_spill]] %s10553_s9 }
   0xb   :  { %10587 = sst [smem:[#allocation18_spill]] %s10554_s10 }
   0xc   :  { %32 = vsyncpa [#allocation3], 0  ;;  %s10588_s7 = sld [smem:[#allocation10_spill]]  ;;  %v8036_v35 = vmov 1983009808   ;;  %v97_v37 = vlaneseq  ;;  %vm1991_vm0 = vcmask 392192  }
   0xd   :  { %v95_v36 = vunpack.c.l.s4 %v8036_v35  ;;  %s10589_s5 = sld [smem:[#allocation8_spill]] }
   0xe   :  { %v8294_v43 = vshrl.u32 %v97_v37, 7  ;;  %s10590_s30 = sld [smem:[#allocation11_spill]] }
   0xf   :  { %v96_v42 = vunpack.c.0.s8 %v95_v36  ;;  %s10591_s4 = sld [smem:[#allocation12_spill]] }
  0x11   :  { %v8309_v48 = vsub.s32 %v96_v42, %v8294_v43 }
  0x12   :  { %v7000_v0 = vld [vmem:[%s10588_s7 + $0x74] ss:$8 sps:$4 sm:$0xff]   ;;  %v7002_v1 = vld [vmem:[%s10588_s7 + $0x70] ss:$8 sps:$4 sm:$0xff]   ;;  %v7006_v4 = vld [vmem:[%s10588_s7 + $0x64] ss:$8 sps:$4 sm:$0xff]  }
  0x13   :  { %1995 = vmatprep.subr.bf16.mxu0 %v7000_v0  ;;  %v7003_v2 = vld [vmem:[%s10588_s7 + $0x174] ss:$8 sps:$4 sm:$0xff]   ;;  %v7005_v3 = vld [vmem:[%s10588_s7 + $0x170] ss:$8 sps:$4 sm:$0xff]   ;;  %v7008_v5 = vld [vmem:[%s10588_s7 + $0x60] ss:$8 sps:$4 sm:$0xff]  }
  0x14   :  { %1996 = vmatpush1.bf16.msra.mxu0 %v7002_v1  ;;  %2036 = vmatprep.subr.bf16.mxu1 %v7003_v2  ;;  %v7009_v6 = vld [vmem:[%s10588_s7 + $0x164] ss:$8 sps:$4 sm:$0xff]   ;;  %v7011_v7 = vld [vmem:[%s10588_s7 + $0x160] ss:$8 sps:$4 sm:$0xff]   ;;  %v7012_v8 = vld [vmem:[%s10588_s7 + $0x54] ss:$8 sps:$4 sm:$0xff]  }
  0x15   :  { %2037 = vmatpush1.bf16.msra.mxu1 %v7005_v3  ;;  %1997 = vmatprep.subr.bf16.mxu0 %v7006_v4  ;;  %v7014_v9 = vld [vmem:[%s10588_s7 + $0x50] ss:$8 sps:$4 sm:$0xff]   ;;  %v7015_v10 = vld [vmem:[%s10588_s7 + $0x154] ss:$8 sps:$4 sm:$0xff]   ;;  %v7018_v11 = vld [vmem:[%s10588_s7 + $0x44] ss:$8 sps:$4 sm:$0xff]  }
  0x16   :  { %2038 = vmatprep.subr.bf16.mxu1 %v7009_v6  ;;  %v7017_v12 = vld [vmem:[%s10588_s7 + $0x150] ss:$8 sps:$4 sm:$0xff]   ;;  %v7021_v13 = vld [vmem:[%s10588_s7 + $0x144] ss:$8 sps:$4 sm:$0xff]   ;;  %v7020_v14 = vld [vmem:[%s10588_s7 + $0x40] ss:$8 sps:$4 sm:$0xff]  }
  0x17   :  { %v7024_v15 = vld [vmem:[%s10588_s7 + $0x34] ss:$8 sps:$4 sm:$0xff]   ;;  %v7023_v16 = vld [vmem:[%s10588_s7 + $0x140] ss:$8 sps:$4 sm:$0xff]   ;;  %v7026_v18 = vld [vmem:[%s10588_s7 + $0x30] ss:$8 sps:$4 sm:$0xff]  }
  0x18   :  { %1998 = vmatpush1.bf16.msra.mxu0 %v7008_v5  ;;  %v7027_v17 = vld [vmem:[%s10588_s7 + $0x134] ss:$8 sps:$4 sm:$0xff]   ;;  %v7030_v19 = vld [vmem:[%s10588_s7 + $0x24] ss:$8 sps:$4 sm:$0xff]   ;;  %v7029_v20 = vld [vmem:[%s10588_s7 + $0x130] ss:$8 sps:$4 sm:$0xff]  }
  0x19   :  { %1999 = vmatprep.subr.bf16.mxu0 %v7012_v8  ;;  %2039 = vmatpush1.bf16.msra.mxu1 %v7011_v7  ;;  %v7033_v21 = vld [vmem:[%s10588_s7 + $0x124] ss:$8 sps:$4 sm:$0xff]   ;;  %v7032_v22 = vld [vmem:[%s10588_s7 + $0x20] ss:$8 sps:$4 sm:$0xff]   ;;  %v7036_v23 = vld [vmem:[%s10588_s7 + $0x14] ss:$8 sps:$4 sm:$0xff]  }
  0x1a   :  { %2040 = vmatprep.subr.bf16.mxu1 %v7015_v10  ;;  %v7035_v24 = vld [vmem:[%s10588_s7 + $0x120] ss:$8 sps:$4 sm:$0xff]   ;;  %v7039_v25 = vld [vmem:[%s10588_s7 + $0x114] ss:$8 sps:$4 sm:$0xff]   ;;  %v7038_v26 = vld [vmem:[%s10588_s7 + $0x10] ss:$8 sps:$4 sm:$0xff]  }
  0x1b   :  { %v7042_v27 = vld [vmem:[%s10588_s7 + $0x4] ss:$8 sps:$4 sm:$0xff]   ;;  %v7041_v28 = vld [vmem:[%s10588_s7 + $0x110] ss:$8 sps:$4 sm:$0xff]   ;;  %v7044_v30 = vld [vmem:[%s10588_s7] ss:$8 sps:$4 sm:$0xff]  }
  0x1c   :  { %2000 = vmatpush1.bf16.msra.mxu0 %v7014_v9  ;;  %v7045_v29 = vld [vmem:[%s10588_s7 + $0x104] ss:$8 sps:$4 sm:$0xff]   ;;  %v7048_v31 = vld [vmem:[%s10588_s7 + $0xf4] ss:$8 sps:$4 sm:$0xff]   ;;  %v7047_v32 = vld [vmem:[%s10588_s7 + $0x100] ss:$8 sps:$4 sm:$0xff]  }
  0x1d   :  { %2001 = vmatprep.subr.bf16.mxu0 %v7018_v11  ;;  %2041 = vmatpush1.bf16.msra.mxu1 %v7017_v12  ;;  %v7051_v33 = vld [vmem:[%s10588_s7 + $0x1f4] ss:$8 sps:$4 sm:$0xff]   ;;  %v7050_v34 = vld [vmem:[%s10588_s7 + $0xf0] ss:$8 sps:$4 sm:$0xff]   ;;  %v7054_v38 = vld [vmem:[%s10588_s7 + $0xe4] ss:$8 sps:$4 sm:$0xff]  }
  0x1e   :  { %2042 = vmatprep.subr.bf16.mxu1 %v7021_v13  ;;  %v7053_v39 = vld [vmem:[%s10588_s7 + $0x1f0] ss:$8 sps:$4 sm:$0xff]   ;;  %v7057_v40 = vld [vmem:[%s10588_s7 + $0x1e4] ss:$8 sps:$4 sm:$0xff]   ;;  %v7056_v41 = vld [vmem:[%s10588_s7 + $0xe0] ss:$8 sps:$4 sm:$0xff]  }
  0x1f   :  { %v7060_v44 = vld [vmem:[%s10588_s7 + $0xd4] ss:$8 sps:$4 sm:$0xff]   ;;  %v7059_v45 = vld [vmem:[%s10588_s7 + $0x1e0] ss:$8 sps:$4 sm:$0xff]   ;;  %v7062_v47 = vld [vmem:[%s10588_s7 + $0xd0] ss:$8 sps:$4 sm:$0xff]  }
  0x20   :  { %2002 = vmatpush1.bf16.msra.mxu0 %v7020_v14  ;;  %v7063_v46 = vld [vmem:[%s10588_s7 + $0x1d4] ss:$8 sps:$4 sm:$0xff]   ;;  %v7066_v49 = vld [vmem:[%s10588_s7 + $0xc4] ss:$8 sps:$4 sm:$0xff]   ;;  %v7065_v50 = vld [vmem:[%s10588_s7 + $0x1d0] ss:$8 sps:$4 sm:$0xff]  }
  0x21   :  { %2003 = vmatprep.subr.bf16.mxu0 %v7024_v15  ;;  %2043 = vmatpush1.bf16.msra.mxu1 %v7023_v16  ;;  %v7069_v51 = vld [vmem:[%s10588_s7 + $0x1c4] ss:$8 sps:$4 sm:$0xff]   ;;  %v7068_v53 = vld [vmem:[%s10588_s7 + $0xc0] ss:$8 sps:$4 sm:$0xff]   ;;  %v7072_v56 = vld [vmem:[%s10588_s7 + $0xb4] ss:$8 sps:$4 sm:$0xff]  }
  0x22   :  { %2044 = vmatprep.subr.bf16.mxu1 %v7027_v17  ;;  %v83_v52 = vld [vmem:[%s10589_s5] sm:$0xff]  ;;  %v7075_v60 = vld [vmem:[%s10588_s7 + $0x1b4] ss:$8 sps:$4 sm:$0xff]   ;;  %v7074_v61 = vld [vmem:[%s10588_s7 + $0xb0] ss:$8 sps:$4 sm:$0xff]  }
  0x23   :  { %v100_v54 = vrot.slane %v83_v52, %v8309_v48  ;;  %v93_v55 = vcombine.high %v83_v52, %v83_v52  ;;  %v7071_v57 = vld [vmem:[%s10588_s7 + $0x1c0] ss:$8 sps:$4 sm:$0xff]   ;;  %v7078_v0 = vld [vmem:[%s10588_s7 + $0xa4] ss:$8 sps:$4 sm:$0xff]   ;;  %v7077_v1 = vld [vmem:[%s10588_s7 + $0x1b0] ss:$8 sps:$4 sm:$0xff]  }
  0x24   :  { %2004 = vmatpush1.bf16.msra.mxu0 %v7026_v18  ;;  %v7081_v3 = vld [vmem:[%s10588_s7 + $0x1a4] ss:$8 sps:$4 sm:$0xff]   ;;  %v7080_v4 = vld [vmem:[%s10588_s7 + $0xa0] ss:$8 sps:$4 sm:$0xff]   ;;  %v7084_v5 = vld [vmem:[%s10588_s7 + $0x94] ss:$8 sps:$4 sm:$0xff]  }
  0x25   :  { %2005 = vmatprep.subr.bf16.mxu0 %v7030_v19  ;;  %2045 = vmatpush1.bf16.msra.mxu1 %v7029_v20  ;;  %v108_v58 = vcombine.high %v100_v54, %v100_v54  ;;  %v107_v59 = vrot.slane %v93_v55, %v8309_v48  ;;  %v7083_v6 = vld [vmem:[%s10588_s7 + $0x1a0] ss:$8 sps:$4 sm:$0xff]   ;;  %v7087_v7 = vld [vmem:[%s10588_s7 + $0x194] ss:$8 sps:$4 sm:$0xff]   ;;  %v7086_v8 = vld [vmem:[%s10588_s7 + $0x90] ss:$8 sps:$4 sm:$0xff]   ;;  %v196_v15 = vpack.c.bf16 %v100_v54, %v100_v54 }
  0x26   :  { %2046 = vmatprep.subr.bf16.mxu1 %v7033_v21  ;;  %v7090_v9 = vld [vmem:[%s10588_s7 + $0x84] ss:$8 sps:$4 sm:$0xff]   ;;  %v7089_v10 = vld [vmem:[%s10588_s7 + $0x190] ss:$8 sps:$4 sm:$0xff]   ;;  %v7092_v12 = vld [vmem:[%s10588_s7 + $0x80] ss:$8 sps:$4 sm:$0xff]  }
  0x27   :  { %v197_v62 = vpack.c.bf16 %v108_v58, %v108_v58  ;;  %v109_v63 = vcombine.high %v107_v59, %v107_v59  ;;  %v7093_v11 = vld [vmem:[%s10588_s7 + $0x184] ss:$8 sps:$4 sm:$0xff]   ;;  %v7098_v13 = vld [vmem:[%s10588_s7 + $0x274] ss:$8 sps:$4 sm:$0xff]   ;;  %v7095_v14 = vld [vmem:[%s10588_s7 + $0x180] ss:$8 sps:$4 sm:$0xff]   ;;  %v198_v18 = vpack.c.bf16 %v107_v59, %v107_v59 }
  0x28   :  { %2006 = vmatpush1.bf16.msra.mxu0 %v7032_v22  ;;  %v7102_v16 = vld [vmem:[%s10588_s7 + $0x374] ss:$8 sps:$4 sm:$0xff]   ;;  %v7096_v17 = vld [vmem:[%s10588_s7 + $0x270] ss:$8 sps:$4 sm:$0xff]   ;;  %v7105_v19 = vld [vmem:[%s10588_s7 + $0x264] ss:$8 sps:$4 sm:$0xff]  }
  0x29   :  { %2007 = vmatprep.subr.bf16.mxu0 %v7036_v23  ;;  %2047 = vmatpush1.bf16.msra.mxu1 %v7035_v24  ;;  %v199_v2 = vpack.c.bf16 %v109_v63, %v109_v63  ;;  %v7100_v20 = vld [vmem:[%s10588_s7 + $0x370] ss:$8 sps:$4 sm:$0xff]   ;;  %v7108_v21 = vld [vmem:[%s10588_s7 + $0x364] ss:$8 sps:$4 sm:$0xff]   ;;  %v7103_v22 = vld [vmem:[%s10588_s7 + $0x260] ss:$8 sps:$4 sm:$0xff]  }
  0x2a   :  { %2048 = vmatprep.subr.bf16.mxu1 %v7039_v25  ;;  %2027 = vmatprep.mubr.bf16.mxu0 %v197_v62  ;;  %v7111_v23 = vld [vmem:[%s10588_s7 + $0x254] ss:$8 sps:$4 sm:$0xff]   ;;  %v7106_v24 = vld [vmem:[%s10588_s7 + $0x360] ss:$8 sps:$4 sm:$0xff]   ;;  %v7129_v35 = vld [vmem:[%s10588_s7 + $0x224] ss:$8 sps:$4 sm:$0xff]  }
  0x2b   :  { %2068 = vmatprep.mubr.bf16.mxu1 %v199_v2  ;;  %v7114_v25 = vld [vmem:[%s10588_s7 + $0x354] ss:$8 sps:$4 sm:$0xff]   ;;  %v7124_v36 = vld [vmem:[%s10588_s7 + $0x330] ss:$8 sps:$4 sm:$0xff]   ;;  %v7132_v37 = vld [vmem:[%s10588_s7 + $0x324] ss:$8 sps:$4 sm:$0xff]  }
  0x2c   :  { %2008 = vmatpush1.bf16.msra.mxu0 %v7038_v26  ;;  %v7109_v26 = vld [vmem:[%s10588_s7 + $0x250] ss:$8 sps:$4 sm:$0xff]   ;;  %v7138_v42 = vld [vmem:[%s10588_s7 + $0x314] ss:$8 sps:$4 sm:$0xff]   ;;  %v7144_v52 = vld [vmem:[%s10588_s7 + $0x304] ss:$8 sps:$4 sm:$0xff]  }
  0x2d   :  { %2009 = vmatprep.subr.bf16.mxu0 %v7042_v27  ;;  %2049 = vmatpush1.bf16.msra.mxu1 %v7041_v28  ;;  %v7117_v27 = vld [vmem:[%s10588_s7 + $0x244] ss:$8 sps:$4 sm:$0xff]   ;;  %v7112_v28 = vld [vmem:[%s10588_s7 + $0x350] ss:$8 sps:$4 sm:$0xff]   ;;  %v7139_v55 = vld [vmem:[%s10588_s7 + $0x200] ss:$8 sps:$4 sm:$0xff]  }
  0x2e   :  { %2050 = vmatprep.subr.bf16.mxu1 %v7045_v29  ;;  %v7120_v29 = vld [vmem:[%s10588_s7 + $0x344] ss:$8 sps:$4 sm:$0xff]   ;;  %v7142_v58 = vld [vmem:[%s10588_s7 + $0x300] ss:$8 sps:$4 sm:$0xff]   ;;  %v7150_v59 = vld [vmem:[%s10588_s7 + $0x3f4] ss:$8 sps:$4 sm:$0xff]  }
  0x2f   :  { %v7148_v62 = vld [vmem:[%s10588_s7 + $0x3f0] ss:$8 sps:$4 sm:$0xff]   ;;  %v7156_v63 = vld [vmem:[%s10588_s7 + $0x3e4] ss:$8 sps:$4 sm:$0xff]   ;;  %v7154_v2 = vld [vmem:[%s10588_s7 + $0x3e0] ss:$8 sps:$4 sm:$0xff]  }
  0x30   :  { %2010 = vmatpush1.bf16.msra.mxu0 %v7044_v30  ;;  %v7115_v30 = vld [vmem:[%s10588_s7 + $0x240] ss:$8 sps:$4 sm:$0xff]  }
  0x31   :  { %2011 = vmatprep.subr.bf16.mxu0 %v7048_v31  ;;  %2051 = vmatpush1.bf16.msra.mxu1 %v7047_v32  ;;  %v7123_v31 = vld [vmem:[%s10588_s7 + $0x234] ss:$8 sps:$4 sm:$0xff]   ;;  %v7118_v32 = vld [vmem:[%s10588_s7 + $0x340] ss:$8 sps:$4 sm:$0xff]  }
  0x32   :  { %2052 = vmatprep.subr.bf16.mxu1 %v7051_v33  ;;  %v7126_v33 = vld [vmem:[%s10588_s7 + $0x334] ss:$8 sps:$4 sm:$0xff]  }
  0x34   :  { %2012 = vmatpush2.bf16.msra.mxu0 %v7050_v34  ;;  %v7121_v34 = vld [vmem:[%s10588_s7 + $0x230] ss:$8 sps:$4 sm:$0xff]  }
  0x35   :  { %2013 = vmatprep.subr.bf16.mxu0 %v7054_v38  ;;  %2053 = vmatpush2.bf16.msra.mxu1 %v7053_v39  ;;  %v7127_v38 = vld [vmem:[%s10588_s7 + $0x220] ss:$8 sps:$4 sm:$0xff]   ;;  %v7135_v39 = vld [vmem:[%s10588_s7 + $0x214] ss:$8 sps:$4 sm:$0xff]  }
  0x36   :  { %2054 = vmatprep.subr.bf16.mxu1 %v7057_v40  ;;  %v7130_v40 = vld [vmem:[%s10588_s7 + $0x320] ss:$8 sps:$4 sm:$0xff]  }
  0x38   :  { %2014 = vmatpush2.bf16.msra.mxu0 %v7056_v41  ;;  %v84_v41 = vld [vmem:[%s10589_s5 + $0x8] sm:$0xff] }
  0x39   :  { %2015 = vmatprep.subr.bf16.mxu0 %v7060_v44  ;;  %2055 = vmatpush2.bf16.msra.mxu1 %v7059_v45  ;;  %v8461_v44 = vrot.slane %v84_v41, %v8309_v48  ;;  %v110_v45 = vcombine.high %v84_v41, %v84_v41  ;;  %v7203_v41 = vld [vmem:[%s10588_s7 + $0x560] ss:$8 sps:$4 sm:$0xff]  }
  0x3a   :  { %2056 = vmatprep.subr.bf16.mxu1 %v7063_v46  ;;  %v7133_v46 = vld [vmem:[%s10588_s7 + $0x210] ss:$8 sps:$4 sm:$0xff]  }
  0x3c   :  { %2016 = vmatpush2.bf16.msra.mxu0 %v7062_v47  ;;  %v7141_v47 = vld [vmem:[%s10588_s7 + $0x204] ss:$8 sps:$4 sm:$0xff]  }
  0x3d   :  { %2017 = vmatprep.subr.bf16.mxu0 %v7066_v49  ;;  %2057 = vmatpush2.bf16.msra.mxu1 %v7065_v50  ;;  %v125_v49 = vcombine.high %v8461_v44, %v8461_v44  ;;  %v8472_v50 = vrot.slane %v110_v45, %v8309_v48  ;;  %v7211_v45 = vld [vmem:[%s10588_s7 + $0x554] ss:$8 sps:$4 sm:$0xff]  }
  0x3e   :  { %2058 = vmatprep.subr.bf16.mxu1 %v7069_v51  ;;  %v7136_v51 = vld [vmem:[%s10588_s7 + $0x310] ss:$8 sps:$4 sm:$0xff]  }
  0x3f   :  { %v126_v54 = vcombine.high %v8472_v50, %v8472_v50 }
  0x40   :  { %2018 = vmatpush2.bf16.msra.mxu0 %v7068_v53  ;;  %v201_v53 = vpack.c.bf16 %v125_v49, %v125_v49  ;;  %v7214_v49 = vld [vmem:[%s10588_s7 + $0x444] ss:$8 sps:$4 sm:$0xff]  }
  0x41   :  { %2019 = vmatprep.subr.bf16.mxu0 %v7072_v56  ;;  %2059 = vmatpush2.bf16.msra.mxu1 %v7071_v57  ;;  %v7147_v56 = vld [vmem:[%s10588_s7 + $0x2f4] ss:$8 sps:$4 sm:$0xff]   ;;  %v203_v57 = vpack.c.bf16 %v126_v54, %v126_v54  ;;  %v7215_v54 = vld [vmem:[%s10588_s7 + $0x540] ss:$8 sps:$4 sm:$0xff]  }
  0x42   :  { %2060 = vmatprep.subr.bf16.mxu1 %v7075_v60  ;;  %v7145_v60 = vld [vmem:[%s10588_s7 + $0x2f0] ss:$8 sps:$4 sm:$0xff]  }
  0x44   :  { %2020 = vmatpush2.bf16.msra.mxu0 %v7074_v61  ;;  %v7153_v61 = vld [vmem:[%s10588_s7 + $0x2e4] ss:$8 sps:$4 sm:$0xff]  }
  0x45   :  { %2021 = vmatprep.subr.bf16.mxu0 %v7078_v0  ;;  %2061 = vmatpush2.bf16.msra.mxu1 %v7077_v1  ;;  %v7151_v0 = vld [vmem:[%s10588_s7 + $0x2e0] ss:$8 sps:$4 sm:$0xff]   ;;  %v7159_v1 = vld [vmem:[%s10588_s7 + $0x2d4] ss:$8 sps:$4 sm:$0xff]  }
  0x46   :  { %2062 = vmatprep.subr.bf16.mxu1 %v7081_v3  ;;  %v7162_v3 = vld [vmem:[%s10588_s7 + $0x3d4] ss:$8 sps:$4 sm:$0xff]  }
  0x48   :  { %2022 = vmatpush2.bf16.msra.mxu0 %v7080_v4  ;;  %v7157_v4 = vld [vmem:[%s10588_s7 + $0x2d0] ss:$8 sps:$4 sm:$0xff]  }
  0x49   :  { %2023 = vmatprep.subr.bf16.mxu0 %v7084_v5  ;;  %2063 = vmatpush2.bf16.msra.mxu1 %v7083_v6  ;;  %v7165_v5 = vld [vmem:[%s10588_s7 + $0x2c4] ss:$8 sps:$4 sm:$0xff]   ;;  %v7160_v6 = vld [vmem:[%s10588_s7 + $0x3d0] ss:$8 sps:$4 sm:$0xff]  }
  0x4a   :  { %2064 = vmatprep.subr.bf16.mxu1 %v7087_v7  ;;  %v7168_v7 = vld [vmem:[%s10588_s7 + $0x3c4] ss:$8 sps:$4 sm:$0xff]  }
  0x4c   :  { %2024 = vmatpush2.bf16.msra.mxu0 %v7086_v8  ;;  %v7163_v8 = vld [vmem:[%s10588_s7 + $0x2c0] ss:$8 sps:$4 sm:$0xff]  }
  0x4d   :  { %2025 = vmatprep.subr.bf16.mxu0 %v7090_v9  ;;  %2065 = vmatpush2.bf16.msra.mxu1 %v7089_v10  ;;  %v7171_v9 = vld [vmem:[%s10588_s7 + $0x2b4] ss:$8 sps:$4 sm:$0xff]   ;;  %v7166_v10 = vld [vmem:[%s10588_s7 + $0x3c0] ss:$8 sps:$4 sm:$0xff]  }
  0x4e   :  { %2066 = vmatprep.subr.bf16.mxu1 %v7093_v11  ;;  %v7174_v11 = vld [vmem:[%s10588_s7 + $0x3b4] ss:$8 sps:$4 sm:$0xff]  }
  0x50   :  { %2026 = vmatpush2.bf16.msra.mxu0 %v7092_v12  ;;  %v7169_v12 = vld [vmem:[%s10588_s7 + $0x2b0] ss:$8 sps:$4 sm:$0xff]  }
  0x51   :  { %2077 = vmatprep.subr.bf16.mxu0 %v7098_v13  ;;  %2067 = vmatpush2.bf16.msra.mxu1 %v7095_v14  ;;  %v7177_v13 = vld [vmem:[%s10588_s7 + $0x2a4] ss:$8 sps:$4 sm:$0xff]   ;;  %v7172_v14 = vld [vmem:[%s10588_s7 + $0x3b0] ss:$8 sps:$4 sm:$0xff]  }
  0x52   :  { %2118 = vmatprep.subr.bf16.mxu1 %v7102_v16  ;;  %v7175_v16 = vld [vmem:[%s10588_s7 + $0x2a0] ss:$8 sps:$4 sm:$0xff]  }
  0x53   :  { %2028 = vmatmul.mubr.bf16.vlgmr.msra.gmra.mxu0 %v196_v15  ;;  %v7180_v15 = vld [vmem:[%s10588_s7 + $0x3a4] ss:$8 sps:$4 sm:$0xff]  }
  0x54   :  { %2078 = vmatpush1.bf16.msra.mxu0 %v7096_v17  ;;  %2069 = vmatmul.mubr.bf16.vlgmr.msra.gmra.mxu1 %v198_v18  ;;  %v7183_v17 = vld [vmem:[%s10588_s7 + $0x294] ss:$8 sps:$4 sm:$0xff]   ;;  %v7178_v18 = vld [vmem:[%s10588_s7 + $0x3a0] ss:$8 sps:$4 sm:$0xff]  }
  0x55   :  { %2079 = vmatprep.subr.bf16.mxu0 %v7105_v19  ;;  %2119 = vmatpush1.bf16.msra.mxu1 %v7100_v20  ;;  %v7186_v19 = vld [vmem:[%s10588_s7 + $0x394] ss:$8 sps:$4 sm:$0xff]   ;;  %v7181_v20 = vld [vmem:[%s10588_s7 + $0x290] ss:$8 sps:$4 sm:$0xff]  }
  0x56   :  { %2120 = vmatprep.subr.bf16.mxu1 %v7108_v21  ;;  %2109 = vmatprep.mubr.bf16.mxu0 %v201_v53  ;;  %v7189_v21 = vld [vmem:[%s10588_s7 + $0x284] ss:$8 sps:$4 sm:$0xff]   ;;  %v7220_v53 = vld [vmem:[%s10588_s7 + $0x434] ss:$8 sps:$4 sm:$0xff]  }
  0x57   :  { %2150 = vmatprep.mubr.bf16.mxu1 %v203_v57  ;;  %v7226_v57 = vld [vmem:[%s10588_s7 + $0x424] ss:$8 sps:$4 sm:$0xff]  }
  0x58   :  { %2080 = vmatpush1.bf16.msra.mxu0 %v7103_v22  ;;  %v7184_v22 = vld [vmem:[%s10588_s7 + $0x390] ss:$8 sps:$4 sm:$0xff]  }
  0x59   :  { %2081 = vmatprep.subr.bf16.mxu0 %v7111_v23  ;;  %2121 = vmatpush1.bf16.msra.mxu1 %v7106_v24  ;;  %v7192_v23 = vld [vmem:[%s10588_s7 + $0x384] ss:$8 sps:$4 sm:$0xff]   ;;  %v7187_v24 = vld [vmem:[%s10588_s7 + $0x280] ss:$8 sps:$4 sm:$0xff]  }
  0x5a   :  { %2122 = vmatprep.subr.bf16.mxu1 %v7114_v25  ;;  %v7195_v25 = vld [vmem:[%s10588_s7 + $0x474] ss:$8 sps:$4 sm:$0xff]  }
  0x5c   :  { %2082 = vmatpush1.bf16.msra.mxu0 %v7109_v26  ;;  %v7190_v26 = vld [vmem:[%s10588_s7 + $0x380] ss:$8 sps:$4 sm:$0xff]  }
  0x5d   :  { %2083 = vmatprep.subr.bf16.mxu0 %v7117_v27  ;;  %2123 = vmatpush1.bf16.msra.mxu1 %v7112_v28  ;;  %v200_v27 = vpack.c.bf16 %v8461_v44, %v8461_v44  ;;  %v7199_v28 = vld [vmem:[%s10588_s7 + $0x574] ss:$8 sps:$4 sm:$0xff]  }
  0x5e   :  { %2124 = vmatprep.subr.bf16.mxu1 %v7120_v29  ;;  %v7193_v29 = vld [vmem:[%s10588_s7 + $0x470] ss:$8 sps:$4 sm:$0xff]  }
  0x60   :  { %2084 = vmatpush1.bf16.msra.mxu0 %v7115_v30  ;;  %v202_v30 = vpack.c.bf16 %v8472_v50, %v8472_v50  ;;  %v7209_v50 = vld [vmem:[%s10588_s7 + $0x550] ss:$8 sps:$4 sm:$0xff]  }
  0x61   :  { %2085 = vmatprep.subr.bf16.mxu0 %v7123_v31  ;;  %2125 = vmatpush1.bf16.msra.mxu1 %v7118_v32  ;;  %v7202_v31 = vld [vmem:[%s10588_s7 + $0x464] ss:$8 sps:$4 sm:$0xff]   ;;  %v85_v32 = vld [vmem:[%s10589_s5 + $0x10] sm:$0xff] }
  0x62   :  { %2126 = vmatprep.subr.bf16.mxu1 %v7126_v33  ;;  %v7197_v33 = vld [vmem:[%s10588_s7 + $0x570] ss:$8 sps:$4 sm:$0xff]  }
  0x64   :  { %2086 = vmatpush1.bf16.msra.mxu0 %v7121_v34  ;;  %v8607_v34 = vrot.slane %v85_v32, %v8309_v48 }
  0x65   :  { %2087 = vmatprep.subr.bf16.mxu0 %v7129_v35  ;;  %2127 = vmatpush1.bf16.msra.mxu1 %v7124_v36  ;;  %v127_v35 = vcombine.high %v85_v32, %v85_v32  ;;  %v7205_v36 = vld [vmem:[%s10588_s7 + $0x564] ss:$8 sps:$4 sm:$0xff]  }
  0x66   :  { %2128 = vmatprep.subr.bf16.mxu1 %v7132_v37  ;;  %v7200_v37 = vld [vmem:[%s10588_s7 + $0x460] ss:$8 sps:$4 sm:$0xff]  }
  0x68   :  { %2088 = vmatpush1.bf16.msra.mxu0 %v7127_v38  ;;  %v142_v38 = vcombine.high %v8607_v34, %v8607_v34 }
  0x69   :  { %2089 = vmatprep.subr.bf16.mxu0 %v7135_v39  ;;  %2129 = vmatpush1.bf16.msra.mxu1 %v7130_v40  ;;  %v8618_v39 = vrot.slane %v127_v35, %v8309_v48  ;;  %v7208_v40 = vld [vmem:[%s10588_s7 + $0x454] ss:$8 sps:$4 sm:$0xff]   ;;  %v7278_v35 = vld [vmem:[%s10588_s7 + $0x490] ss:$8 sps:$4 sm:$0xff]  }
  0x6a   :  { %2130 = vmatprep.subr.bf16.mxu1 %v7138_v42  ;;  %v205_v42 = vpack.c.bf16 %v142_v38, %v142_v38  ;;  %v7281_v38 = vld [vmem:[%s10588_s7 + $0x590] ss:$8 sps:$4 sm:$0xff]  }
  0x6b   :  { %v143_v44 = vcombine.high %v8618_v39, %v8618_v39 }
  0x6c   :  { %2090 = vmatpush1.bf16.msra.mxu0 %v7133_v46  ;;  %v7206_v46 = vld [vmem:[%s10588_s7 + $0x450] ss:$8 sps:$4 sm:$0xff]  }
  0x6d   :  { %2091 = vmatprep.subr.bf16.mxu0 %v7141_v47  ;;  %2131 = vmatpush1.bf16.msra.mxu1 %v7136_v51  ;;  %v207_v47 = vpack.c.bf16 %v143_v44, %v143_v44  ;;  %v7217_v51 = vld [vmem:[%s10588_s7 + $0x544] ss:$8 sps:$4 sm:$0xff]  }
  0x6e   :  { %2132 = vmatprep.subr.bf16.mxu1 %v7144_v52  ;;  %v7212_v52 = vld [vmem:[%s10588_s7 + $0x440] ss:$8 sps:$4 sm:$0xff]  }
  0x70   :  { %2092 = vmatpush1.bf16.msra.mxu0 %v7139_v55  ;;  %v7223_v55 = vld [vmem:[%s10588_s7 + $0x534] ss:$8 sps:$4 sm:$0xff]  }
  0x71   :  { %2093 = vmatprep.subr.bf16.mxu0 %v7147_v56  ;;  %2133 = vmatpush1.bf16.msra.mxu1 %v7142_v58  ;;  %v7218_v56 = vld [vmem:[%s10588_s7 + $0x430] ss:$8 sps:$4 sm:$0xff]  }
  0x72   :  { %2134 = vmatprep.subr.bf16.mxu1 %v7150_v59  ;;  %v7221_v58 = vld [vmem:[%s10588_s7 + $0x530] ss:$8 sps:$4 sm:$0xff]   ;;  %v7229_v59 = vld [vmem:[%s10588_s7 + $0x524] ss:$8 sps:$4 sm:$0xff]  }
  0x74   :  { %2094 = vmatpush2.bf16.msra.mxu0 %v7145_v60  ;;  %v7224_v60 = vld [vmem:[%s10588_s7 + $0x420] ss:$8 sps:$4 sm:$0xff]  }
  0x75   :  { %2095 = vmatprep.subr.bf16.mxu0 %v7153_v61  ;;  %2135 = vmatpush2.bf16.msra.mxu1 %v7148_v62  ;;  %v7232_v61 = vld [vmem:[%s10588_s7 + $0x414] ss:$8 sps:$4 sm:$0xff]   ;;  %v7227_v62 = vld [vmem:[%s10588_s7 + $0x520] ss:$8 sps:$4 sm:$0xff]  }
  0x76   :  { %2136 = vmatprep.subr.bf16.mxu1 %v7156_v63  ;;  %v7235_v63 = vld [vmem:[%s10588_s7 + $0x514] ss:$8 sps:$4 sm:$0xff]  }
  0x78   :  { %2096 = vmatpush2.bf16.msra.mxu0 %v7151_v0  ;;  %v7230_v0 = vld [vmem:[%s10588_s7 + $0x410] ss:$8 sps:$4 sm:$0xff]  }
  0x79   :  { %2097 = vmatprep.subr.bf16.mxu0 %v7159_v1  ;;  %2137 = vmatpush2.bf16.msra.mxu1 %v7154_v2  ;;  %v7238_v1 = vld [vmem:[%s10588_s7 + $0x404] ss:$8 sps:$4 sm:$0xff]   ;;  %v7233_v2 = vld [vmem:[%s10588_s7 + $0x510] ss:$8 sps:$4 sm:$0xff]  }
  0x7a   :  { %2138 = vmatprep.subr.bf16.mxu1 %v7162_v3  ;;  %v7241_v3 = vld [vmem:[%s10588_s7 + $0x504] ss:$8 sps:$4 sm:$0xff]  }
  0x7c   :  { %2098 = vmatpush2.bf16.msra.mxu0 %v7157_v4  ;;  %v7236_v4 = vld [vmem:[%s10588_s7 + $0x400] ss:$8 sps:$4 sm:$0xff]  }
  0x7d   :  { %2099 = vmatprep.subr.bf16.mxu0 %v7165_v5  ;;  %2139 = vmatpush2.bf16.msra.mxu1 %v7160_v6  ;;  %v7244_v5 = vld [vmem:[%s10588_s7 + $0x4f4] ss:$8 sps:$4 sm:$0xff]   ;;  %v7239_v6 = vld [vmem:[%s10588_s7 + $0x500] ss:$8 sps:$4 sm:$0xff]  }
  0x7e   :  { %2140 = vmatprep.subr.bf16.mxu1 %v7168_v7  ;;  %v7247_v7 = vld [vmem:[%s10588_s7 + $0x5f4] ss:$8 sps:$4 sm:$0xff]  }
  0x80   :  { %2100 = vmatpush2.bf16.msra.mxu0 %v7163_v8  ;;  %v7242_v8 = vld [vmem:[%s10588_s7 + $0x4f0] ss:$8 sps:$4 sm:$0xff]  }
  0x81   :  { %2101 = vmatprep.subr.bf16.mxu0 %v7171_v9  ;;  %2141 = vmatpush2.bf16.msra.mxu1 %v7166_v10  ;;  %v7250_v9 = vld [vmem:[%s10588_s7 + $0x4e4] ss:$8 sps:$4 sm:$0xff]   ;;  %v7245_v10 = vld [vmem:[%s10588_s7 + $0x5f0] ss:$8 sps:$4 sm:$0xff]  }
  0x82   :  { %2142 = vmatprep.subr.bf16.mxu1 %v7174_v11  ;;  %v7253_v11 = vld [vmem:[%s10588_s7 + $0x5e4] ss:$8 sps:$4 sm:$0xff]  }
  0x84   :  { %2102 = vmatpush2.bf16.msra.mxu0 %v7169_v12  ;;  %v7248_v12 = vld [vmem:[%s10588_s7 + $0x4e0] ss:$8 sps:$4 sm:$0xff]  }
  0x85   :  { %2103 = vmatprep.subr.bf16.mxu0 %v7177_v13  ;;  %2143 = vmatpush2.bf16.msra.mxu1 %v7172_v14  ;;  %v7256_v13 = vld [vmem:[%s10588_s7 + $0x4d4] ss:$8 sps:$4 sm:$0xff]   ;;  %v7251_v14 = vld [vmem:[%s10588_s7 + $0x5e0] ss:$8 sps:$4 sm:$0xff]  }
  0x86   :  { %2144 = vmatprep.subr.bf16.mxu1 %v7180_v15  ;;  %v7259_v15 = vld [vmem:[%s10588_s7 + $0x5d4] ss:$8 sps:$4 sm:$0xff]  }
  0x88   :  { %2104 = vmatpush2.bf16.msra.mxu0 %v7175_v16  ;;  %v7254_v16 = vld [vmem:[%s10588_s7 + $0x4d0] ss:$8 sps:$4 sm:$0xff]  }
  0x89   :  { %2105 = vmatprep.subr.bf16.mxu0 %v7183_v17  ;;  %2145 = vmatpush2.bf16.msra.mxu1 %v7178_v18  ;;  %v7262_v17 = vld [vmem:[%s10588_s7 + $0x4c4] ss:$8 sps:$4 sm:$0xff]   ;;  %v7257_v18 = vld [vmem:[%s10588_s7 + $0x5d0] ss:$8 sps:$4 sm:$0xff]  }
  0x8a   :  { %2146 = vmatprep.subr.bf16.mxu1 %v7186_v19  ;;  %v7265_v19 = vld [vmem:[%s10588_s7 + $0x5c4] ss:$8 sps:$4 sm:$0xff]  }
  0x8c   :  { %2106 = vmatpush2.bf16.msra.mxu0 %v7181_v20  ;;  %v7260_v20 = vld [vmem:[%s10588_s7 + $0x4c0] ss:$8 sps:$4 sm:$0xff]  }
  0x8d   :  { %2107 = vmatprep.subr.bf16.mxu0 %v7189_v21  ;;  %2147 = vmatpush2.bf16.msra.mxu1 %v7184_v22  ;;  %v7268_v21 = vld [vmem:[%s10588_s7 + $0x4b4] ss:$8 sps:$4 sm:$0xff]   ;;  %v7263_v22 = vld [vmem:[%s10588_s7 + $0x5c0] ss:$8 sps:$4 sm:$0xff]  }
  0x8e   :  { %2148 = vmatprep.subr.bf16.mxu1 %v7192_v23  ;;  %v7271_v23 = vld [vmem:[%s10588_s7 + $0x5b4] ss:$8 sps:$4 sm:$0xff]  }
  0x90   :  { %2108 = vmatpush2.bf16.msra.mxu0 %v7187_v24  ;;  %v7266_v24 = vld [vmem:[%s10588_s7 + $0x4b0] ss:$8 sps:$4 sm:$0xff]  }
  0x91   :  { %2159 = vmatprep.subr.bf16.mxu0 %v7195_v25  ;;  %2149 = vmatpush2.bf16.msra.mxu1 %v7190_v26  ;;  %v7274_v25 = vld [vmem:[%s10588_s7 + $0x4a4] ss:$8 sps:$4 sm:$0xff]   ;;  %v7269_v26 = vld [vmem:[%s10588_s7 + $0x5b0] ss:$8 sps:$4 sm:$0xff]  }
  0x92   :  { %2200 = vmatprep.subr.bf16.mxu1 %v7199_v28  ;;  %v86_v28 = vld [vmem:[%s10589_s5 + $0x18] sm:$0xff] }
  0x93   :  { %2110 = vmatmul.mubr.bf16.vlgmr.msra.gmra.mxu0 %v200_v27  ;;  %v7277_v27 = vld [vmem:[%s10588_s7 + $0x5a4] ss:$8 sps:$4 sm:$0xff]   ;;  %v144_v32 = vcombine.high %v86_v28, %v86_v28 }
  0x94   :  { %2160 = vmatpush1.bf16.msra.mxu0 %v7193_v29  ;;  %2151 = vmatmul.mubr.bf16.vlgmr.msra.gmra.mxu1 %v202_v30  ;;  %v7272_v29 = vld [vmem:[%s10588_s7 + $0x4a0] ss:$8 sps:$4 sm:$0xff]   ;;  %v7280_v30 = vld [vmem:[%s10588_s7 + $0x494] ss:$8 sps:$4 sm:$0xff]  }
  0x95   :  { %2161 = vmatprep.subr.bf16.mxu0 %v7202_v31  ;;  %2201 = vmatpush1.bf16.msra.mxu1 %v7197_v33  ;;  %v7275_v31 = vld [vmem:[%s10588_s7 + $0x5a0] ss:$8 sps:$4 sm:$0xff]   ;;  %v7283_v33 = vld [vmem:[%s10588_s7 + $0x594] ss:$8 sps:$4 sm:$0xff]  }
  0x96   :  { %2202 = vmatprep.subr.bf16.mxu1 %v7205_v36  ;;  %2191 = vmatprep.mubr.bf16.mxu0 %v205_v42  ;;  %v8782_v36 = vrot.slane %v86_v28, %v8309_v48  ;;  %v7284_v42 = vld [vmem:[%s10588_s7 + $0x480] ss:$8 sps:$4 sm:$0xff]   ;;  %v7351_v28 = vld [vmem:[%s10588_s7 + $0x6d0] ss:$8 sps:$4 sm:$0xff]  }
  0x97   :  { %2232 = vmatprep.mubr.bf16.mxu1 %v207_v47 }
  0x98   :  { %2162 = vmatpush1.bf16.msra.mxu0 %v7200_v37  ;;  %v7286_v37 = vld [vmem:[%s10588_s7 + $0x484] ss:$8 sps:$4 sm:$0xff]   ;;  %v159_v44 = vcombine.high %v8782_v36, %v8782_v36 }
  0x99   :  { %2163 = vmatprep.subr.bf16.mxu0 %v7208_v40  ;;  %2203 = vmatpush1.bf16.msra.mxu1 %v7203_v41  ;;  %v8791_v40 = vrot.slane %v144_v32, %v8309_v48  ;;  %v7289_v41 = vld [vmem:[%s10588_s7 + $0x584] ss:$8 sps:$4 sm:$0xff]   ;;  %v7357_v32 = vld [vmem:[%s10588_s7 + $0x6c0] ss:$8 sps:$4 sm:$0xff]  }
  0x9a   :  { %2204 = vmatprep.subr.bf16.mxu1 %v7211_v45  ;;  %v7292_v45 = vld [vmem:[%s10588_s7 + $0x674] ss:$8 sps:$4 sm:$0xff]  }
  0x9b   :  { %v160_v47 = vcombine.high %v8791_v40, %v8791_v40 }
  0x9c   :  { %2164 = vmatpush1.bf16.msra.mxu0 %v7206_v46  ;;  %v7287_v46 = vld [vmem:[%s10588_s7 + $0x580] ss:$8 sps:$4 sm:$0xff]  }
  0x9d   :  { %2165 = vmatprep.subr.bf16.mxu0 %v7214_v49  ;;  %2205 = vmatpush1.bf16.msra.mxu1 %v7209_v50  ;;  %v204_v49 = vpack.c.bf16 %v8607_v34, %v8607_v34  ;;  %v7296_v50 = vld [vmem:[%s10588_s7 + $0x774] ss:$8 sps:$4 sm:$0xff]   ;;  %v7294_v34 = vld [vmem:[%s10588_s7 + $0x770] ss:$8 sps:$4 sm:$0xff]  }
  0x9e   :  { %2206 = vmatprep.subr.bf16.mxu1 %v7217_v51  ;;  %v7290_v51 = vld [vmem:[%s10588_s7 + $0x670] ss:$8 sps:$4 sm:$0xff]  }
  0xa0   :  { %2166 = vmatpush1.bf16.msra.mxu0 %v7212_v52  ;;  %v209_v52 = vpack.c.bf16 %v159_v44, %v159_v44  ;;  %v7374_v44 = vld [vmem:[%s10588_s7 + $0x7a4] ss:$8 sps:$4 sm:$0xff]  }
  0xa1   :  { %2167 = vmatprep.subr.bf16.mxu0 %v7220_v53  ;;  %2207 = vmatpush1.bf16.msra.mxu1 %v7215_v54  ;;  %v206_v53 = vpack.c.bf16 %v8618_v39, %v8618_v39  ;;  %v7299_v54 = vld [vmem:[%s10588_s7 + $0x664] ss:$8 sps:$4 sm:$0xff]   ;;  %v7297_v39 = vld [vmem:[%s10588_s7 + $0x660] ss:$8 sps:$4 sm:$0xff]  }
  0xa2   :  { %2208 = vmatprep.subr.bf16.mxu1 %v7223_v55  ;;  %v211_v55 = vpack.c.bf16 %v160_v47, %v160_v47  ;;  %v7372_v47 = vld [vmem:[%s10588_s7 + $0x7a0] ss:$8 sps:$4 sm:$0xff]  }
  0xa4   :  { %2168 = vmatpush1.bf16.msra.mxu0 %v7218_v56  ;;  %v7302_v56 = vld [vmem:[%s10588_s7 + $0x764] ss:$8 sps:$4 sm:$0xff]  }
  0xa5   :  { %2169 = vmatprep.subr.bf16.mxu0 %v7226_v57  ;;  %2209 = vmatpush1.bf16.msra.mxu1 %v7221_v58  ;;  %v7305_v57 = vld [vmem:[%s10588_s7 + $0x654] ss:$8 sps:$4 sm:$0xff]   ;;  %v7300_v58 = vld [vmem:[%s10588_s7 + $0x760] ss:$8 sps:$4 sm:$0xff]  }
  0xa6   :  { %2210 = vmatprep.subr.bf16.mxu1 %v7229_v59  ;;  %v7303_v59 = vld [vmem:[%s10588_s7 + $0x650] ss:$8 sps:$4 sm:$0xff]  }
  0xa8   :  { %2170 = vmatpush1.bf16.msra.mxu0 %v7224_v60  ;;  %v7308_v60 = vld [vmem:[%s10588_s7 + $0x754] ss:$8 sps:$4 sm:$0xff]  }
  0xa9   :  { %2171 = vmatprep.subr.bf16.mxu0 %v7232_v61  ;;  %2211 = vmatpush1.bf16.msra.mxu1 %v7227_v62  ;;  %v7311_v61 = vld [vmem:[%s10588_s7 + $0x644] ss:$8 sps:$4 sm:$0xff]   ;;  %v7306_v62 = vld [vmem:[%s10588_s7 + $0x750] ss:$8 sps:$4 sm:$0xff]  }
  0xaa   :  { %2212 = vmatprep.subr.bf16.mxu1 %v7235_v63  ;;  %v7314_v63 = vld [vmem:[%s10588_s7 + $0x744] ss:$8 sps:$4 sm:$0xff]  }
  0xac   :  { %2172 = vmatpush1.bf16.msra.mxu0 %v7230_v0  ;;  %v7309_v0 = vld [vmem:[%s10588_s7 + $0x640] ss:$8 sps:$4 sm:$0xff]  }
  0xad   :  { %2173 = vmatprep.subr.bf16.mxu0 %v7238_v1  ;;  %2213 = vmatpush1.bf16.msra.mxu1 %v7233_v2  ;;  %v7317_v1 = vld [vmem:[%s10588_s7 + $0x634] ss:$8 sps:$4 sm:$0xff]   ;;  %v7312_v2 = vld [vmem:[%s10588_s7 + $0x740] ss:$8 sps:$4 sm:$0xff]  }
  0xae   :  { %2214 = vmatprep.subr.bf16.mxu1 %v7241_v3  ;;  %v7320_v3 = vld [vmem:[%s10588_s7 + $0x734] ss:$8 sps:$4 sm:$0xff]  }
  0xb0   :  { %2174 = vmatpush1.bf16.msra.mxu0 %v7236_v4  ;;  %v7315_v4 = vld [vmem:[%s10588_s7 + $0x630] ss:$8 sps:$4 sm:$0xff]  }
  0xb1   :  { %2175 = vmatprep.subr.bf16.mxu0 %v7244_v5  ;;  %2215 = vmatpush1.bf16.msra.mxu1 %v7239_v6  ;;  %v7323_v5 = vld [vmem:[%s10588_s7 + $0x624] ss:$8 sps:$4 sm:$0xff]   ;;  %v7318_v6 = vld [vmem:[%s10588_s7 + $0x730] ss:$8 sps:$4 sm:$0xff]  }
  0xb2   :  { %2216 = vmatprep.subr.bf16.mxu1 %v7247_v7  ;;  %v7326_v7 = vld [vmem:[%s10588_s7 + $0x724] ss:$8 sps:$4 sm:$0xff]  }
  0xb4   :  { %2176 = vmatpush2.bf16.msra.mxu0 %v7242_v8  ;;  %v7321_v8 = vld [vmem:[%s10588_s7 + $0x620] ss:$8 sps:$4 sm:$0xff]  }
  0xb5   :  { %2177 = vmatprep.subr.bf16.mxu0 %v7250_v9  ;;  %2217 = vmatpush2.bf16.msra.mxu1 %v7245_v10  ;;  %v7329_v9 = vld [vmem:[%s10588_s7 + $0x614] ss:$8 sps:$4 sm:$0xff]   ;;  %v7324_v10 = vld [vmem:[%s10588_s7 + $0x720] ss:$8 sps:$4 sm:$0xff]  }
  0xb6   :  { %2218 = vmatprep.subr.bf16.mxu1 %v7253_v11  ;;  %v7332_v11 = vld [vmem:[%s10588_s7 + $0x714] ss:$8 sps:$4 sm:$0xff]  }
  0xb8   :  { %2178 = vmatpush2.bf16.msra.mxu0 %v7248_v12  ;;  %v7327_v12 = vld [vmem:[%s10588_s7 + $0x610] ss:$8 sps:$4 sm:$0xff]  }
  0xb9   :  { %2179 = vmatprep.subr.bf16.mxu0 %v7256_v13  ;;  %2219 = vmatpush2.bf16.msra.mxu1 %v7251_v14  ;;  %v7335_v13 = vld [vmem:[%s10588_s7 + $0x604] ss:$8 sps:$4 sm:$0xff]   ;;  %v7330_v14 = vld [vmem:[%s10588_s7 + $0x710] ss:$8 sps:$4 sm:$0xff]  }
  0xba   :  { %2220 = vmatprep.subr.bf16.mxu1 %v7259_v15  ;;  %v7338_v15 = vld [vmem:[%s10588_s7 + $0x704] ss:$8 sps:$4 sm:$0xff]  }
  0xbc   :  { %2180 = vmatpush2.bf16.msra.mxu0 %v7254_v16  ;;  %v7333_v16 = vld [vmem:[%s10588_s7 + $0x600] ss:$8 sps:$4 sm:$0xff]  }
  0xbd   :  { %2181 = vmatprep.subr.bf16.mxu0 %v7262_v17  ;;  %2221 = vmatpush2.bf16.msra.mxu1 %v7257_v18  ;;  %v7341_v17 = vld [vmem:[%s10588_s7 + $0x6f4] ss:$8 sps:$4 sm:$0xff]   ;;  %v7336_v18 = vld [vmem:[%s10588_s7 + $0x700] ss:$8 sps:$4 sm:$0xff]  }
  0xbe   :  { %2222 = vmatprep.subr.bf16.mxu1 %v7265_v19  ;;  %v7344_v19 = vld [vmem:[%s10588_s7 + $0x7f4] ss:$8 sps:$4 sm:$0xff]  }
  0xc0   :  { %2182 = vmatpush2.bf16.msra.mxu0 %v7260_v20  ;;  %v7339_v20 = vld [vmem:[%s10588_s7 + $0x6f0] ss:$8 sps:$4 sm:$0xff]  }
  0xc1   :  { %2183 = vmatprep.subr.bf16.mxu0 %v7268_v21  ;;  %2223 = vmatpush2.bf16.msra.mxu1 %v7263_v22  ;;  %v7347_v21 = vld [vmem:[%s10588_s7 + $0x6e4] ss:$8 sps:$4 sm:$0xff]   ;;  %v7342_v22 = vld [vmem:[%s10588_s7 + $0x7f0] ss:$8 sps:$4 sm:$0xff]  }
  0xc2   :  { %2224 = vmatprep.subr.bf16.mxu1 %v7271_v23  ;;  %v7350_v23 = vld [vmem:[%s10588_s7 + $0x7e4] ss:$8 sps:$4 sm:$0xff]  }
  0xc4   :  { %2184 = vmatpush2.bf16.msra.mxu0 %v7266_v24  ;;  %v7345_v24 = vld [vmem:[%s10588_s7 + $0x6e0] ss:$8 sps:$4 sm:$0xff]  }
  0xc5   :  { %2185 = vmatprep.subr.bf16.mxu0 %v7274_v25  ;;  %2225 = vmatpush2.bf16.msra.mxu1 %v7269_v26  ;;  %v7353_v25 = vld [vmem:[%s10588_s7 + $0x6d4] ss:$8 sps:$4 sm:$0xff]   ;;  %v7348_v26 = vld [vmem:[%s10588_s7 + $0x7e0] ss:$8 sps:$4 sm:$0xff]  }
  0xc6   :  { %2226 = vmatprep.subr.bf16.mxu1 %v7277_v27  ;;  %v7356_v27 = vld [vmem:[%s10588_s7 + $0x7d4] ss:$8 sps:$4 sm:$0xff]  }
  0xc8   :  { %2186 = vmatpush2.bf16.msra.mxu0 %v7272_v29  ;;  %v7359_v29 = vld [vmem:[%s10588_s7 + $0x6c4] ss:$8 sps:$4 sm:$0xff]  }
  0xc9   :  { %2187 = vmatprep.subr.bf16.mxu0 %v7280_v30  ;;  %2227 = vmatpush2.bf16.msra.mxu1 %v7275_v31  ;;  %v7354_v30 = vld [vmem:[%s10588_s7 + $0x7d0] ss:$8 sps:$4 sm:$0xff]   ;;  %v7362_v31 = vld [vmem:[%s10588_s7 + $0x7c4] ss:$8 sps:$4 sm:$0xff]  }
  0xca   :  { %2228 = vmatprep.subr.bf16.mxu1 %v7283_v33  ;;  %v7365_v33 = vld [vmem:[%s10588_s7 + $0x6b4] ss:$8 sps:$4 sm:$0xff]  }
  0xcc   :  { %2188 = vmatpush2.bf16.msra.mxu0 %v7278_v35  ;;  %v7360_v35 = vld [vmem:[%s10588_s7 + $0x7c0] ss:$8 sps:$4 sm:$0xff]  }
  0xcd   :  { %2189 = vmatprep.subr.bf16.mxu0 %v7286_v37  ;;  %2229 = vmatpush2.bf16.msra.mxu1 %v7281_v38  ;;  %v7368_v37 = vld [vmem:[%s10588_s7 + $0x7b4] ss:$8 sps:$4 sm:$0xff]   ;;  %v7363_v38 = vld [vmem:[%s10588_s7 + $0x6b0] ss:$8 sps:$4 sm:$0xff]  }
  0xce   :  { %2230 = vmatprep.subr.bf16.mxu1 %v7289_v41  ;;  %v7371_v41 = vld [vmem:[%s10588_s7 + $0x6a4] ss:$8 sps:$4 sm:$0xff]  }
  0xd0   :  { %2190 = vmatpush2.bf16.msra.mxu0 %v7284_v42  ;;  %v7366_v42 = vld [vmem:[%s10588_s7 + $0x7b0] ss:$8 sps:$4 sm:$0xff]  }
  0xd1   :  { %2241 = vmatprep.subr.bf16.mxu0 %v7292_v45  ;;  %2231 = vmatpush2.bf16.msra.mxu1 %v7287_v46  ;;  %v7369_v45 = vld [vmem:[%s10588_s7 + $0x6a0] ss:$8 sps:$4 sm:$0xff]   ;;  %v7377_v46 = vld [vmem:[%s10588_s7 + $0x694] ss:$8 sps:$4 sm:$0xff]  }
  0xd2   :  { %2282 = vmatprep.subr.bf16.mxu1 %v7296_v50  ;;  %v8987_v50 = vld [vmem:[%s10589_s5 + $0x20] sm:$0x3f] }
  0xd3   :  { %2192 = vmatmul.mubr.bf16.vlgmr.msra.gmra.mxu0 %v204_v49  ;;  %v7380_v49 = vld [vmem:[%s10588_s7 + $0x794] ss:$8 sps:$4 sm:$0xff]  }
  0xd4   :  { %2242 = vmatpush1.bf16.msra.mxu0 %v7290_v51  ;;  %2273 = vmatprep.mubr.bf16.mxu0 %v209_v52  ;;  %v7375_v51 = vld [vmem:[%s10588_s7 + $0x690] ss:$8 sps:$4 sm:$0xff]   ;;  %v7383_v52 = vld [vmem:[%s10588_s7 + $0x684] ss:$8 sps:$4 sm:$0xff]  }
  0xd5   :  { %2233 = vmatmul.mubr.bf16.vlgmr.msra.gmra.mxu1 %v206_v53  ;;  %2243 = vmatprep.subr.bf16.mxu0 %v7299_v54  ;;  %v7378_v53 = vld [vmem:[%s10588_s7 + $0x790] ss:$8 sps:$4 sm:$0xff]   ;;  %v9000_v54 = vrot.slane %v8987_v50, %v8309_v48 }
  0xd6   :  { %2283 = vmatpush1.bf16.msra.mxu1 %v7294_v34  ;;  %2314 = vmatprep.mubr.bf16.mxu1 %v211_v55  ;;  %v7386_v34 = vld [vmem:[%s10588_s7 + $0x784] ss:$8 sps:$4 sm:$0xff]   ;;  %v7381_v55 = vld [vmem:[%s10588_s7 + $0x680] ss:$8 sps:$4 sm:$0xff]  }
  0xd7   :  { %2284 = vmatprep.subr.bf16.mxu1 %v7302_v56  ;;  %v509_v56 = vld [vmem:[%s10590_s30] sm:$0x3] }
  0xd8   :  { %2244 = vmatpush1.bf16.msra.mxu0 %v7297_v39  ;;  %v7389_v39 = vld [vmem:[%s10588_s7 + $0x874] ss:$8 sps:$4 sm:$0xff]  }
  0xd9   :  { %2245 = vmatprep.subr.bf16.mxu0 %v7305_v57  ;;  %v7384_v57 = vld [vmem:[%s10588_s7 + $0x780] ss:$8 sps:$4 sm:$0xff]  }
  0xda   :  { %2285 = vmatpush1.bf16.msra.mxu1 %v7300_v58  ;;  %v9018_v58 = vsub.s32 0, %v8294_v43 }
  0xdb   :  { %2286 = vmatprep.subr.bf16.mxu1 %v7308_v60  ;;  %v7429_v60 = vld [vmem:[%s10588_s7 + $0x924] ss:$8 sps:$4 sm:$0xff]  }
  0xdc   :  { %2246 = vmatpush1.bf16.msra.mxu0 %v7303_v59  ;;  %v176_v59 = vcombine.high %v9000_v54, %v9000_v54 }
  0xdd   :  { %2247 = vmatprep.subr.bf16.mxu0 %v7311_v61  ;;  %v7387_v61 = vld [vmem:[%s10588_s7 + $0x870] ss:$8 sps:$4 sm:$0xff]  }
  0xde   :  { %2287 = vmatpush1.bf16.msra.mxu1 %v7306_v62  ;;  %v9029_v62 = vsub.s32 1, %v8294_v43 }
  0xdf   :  { %2288 = vmatprep.subr.bf16.mxu1 %v7314_v63  ;;  %v208_v63 = vpack.c.bf16 %v8782_v36, %v8782_v36  ;;  %v7435_v36 = vld [vmem:[%s10588_s7 + $0x914] ss:$8 sps:$4 sm:$0xff]  }
  0xe0   :  { %2248 = vmatpush1.bf16.msra.mxu0 %v7309_v0  ;;  %v7393_v0 = vld [vmem:[%s10588_s7 + $0x864] ss:$8 sps:$4 sm:$0xff]  }
  0xe1   :  { %2249 = vmatprep.subr.bf16.mxu0 %v7317_v1  ;;  %v514_v1 = vrot.slane %v509_v56, %v9018_v58 }
  0xe2   :  { %2289 = vmatpush1.bf16.msra.mxu1 %v7312_v2  ;;  %v7427_v2 = vld [vmem:[%s10588_s7 + $0x920] ss:$8 sps:$4 sm:$0xff]  }
  0xe3   :  { %2290 = vmatprep.subr.bf16.mxu1 %v7320_v3  ;;  %v213_v3 = vpack.c.bf16 %v176_v59, %v176_v59  ;;  %v212_v59 = vpack.c.bf16 %v9000_v54, %v9000_v54  ;;  %v7447_v54 = vld [vmem:[%s10591_s4 + $0x38] sm:$0xff]  }
  0xe4   :  { %2250 = vmatpush1.bf16.msra.mxu0 %v7315_v4  ;;  %v210_v4 = vpack.c.bf16 %v8791_v40, %v8791_v40  ;;  %v7433_v40 = vld [vmem:[%s10588_s7 + $0x910] ss:$8 sps:$4 sm:$0xff]  }
  0xe5   :  { %2251 = vmatprep.subr.bf16.mxu0 %v7323_v5  ;;  %v518_v5 = vrot.slane %v509_v56, %v9029_v62  ;;  %v7436_v56 = vld [vmem:[%s10588_s7 + $0x890] ss:$8 sps:$4 sm:$0xff]  }
  0xe6   :  { %2291 = vmatpush1.bf16.msra.mxu1 %v7318_v6  ;;  %v7391_v6 = vld [vmem:[%s10588_s7 + $0x860] ss:$8 sps:$4 sm:$0xff]  }
  0xe7   :  { %2292 = vmatprep.subr.bf16.mxu1 %v7326_v7 }
  0xe8   :  { %2252 = vmatpush1.bf16.msra.mxu0 %v7321_v8  ;;  %v7396_v8 = vld [vmem:[%s10588_s7 + $0x854] ss:$8 sps:$4 sm:$0xff]  }
  0xe9   :  { %2253 = vmatprep.subr.bf16.mxu0 %v7329_v9 }
  0xea   :  { %2293 = vmatpush1.bf16.msra.mxu1 %v7324_v10 }
  0xeb   :  { %2294 = vmatprep.subr.bf16.mxu1 %v7332_v11 }
  0xec   :  { %2254 = vmatpush1.bf16.msra.mxu0 %v7327_v12  ;;  %v7441_v12 = vld [vmem:[%s10588_s7 + $0x904] ss:$8 sps:$4 sm:$0xff]  }
  0xed   :  { %2255 = vmatprep.subr.bf16.mxu0 %v7335_v13  ;;  %v161_v13 = vcombine.high %v8987_v50, %v8987_v50  ;;  %v7421_v50 = vld [vmem:[%s10588_s7 + $0x8c0] ss:$8 sps:$4 sm:$0xff]  }
  0xee   :  { %2295 = vmatpush1.bf16.msra.mxu1 %v7330_v14 }
  0xef   :  { %2296 = vmatprep.subr.bf16.mxu1 %v7338_v15 }
  0xf0   :  { %2256 = vmatpush1.bf16.msra.mxu0 %v7333_v16  ;;  %v7394_v16 = vld [vmem:[%s10588_s7 + $0x850] ss:$8 sps:$4 sm:$0xff]  }
  0xf1   :  { %2257 = vmatprep.subr.bf16.mxu0 %v7341_v17  ;;  %v8037_v17 = vmov 0  }
  0xf2   :  { %2297 = vmatpush1.bf16.msra.mxu1 %v7336_v18 }
  0xf3   :  { %2298 = vmatprep.subr.bf16.mxu1 %v7344_v19 }
  0xf4   :  { %2258 = vmatpush2.bf16.msra.mxu0 %v7339_v20  ;;  %v7399_v20 = vld [vmem:[%s10588_s7 + $0x844] ss:$8 sps:$4 sm:$0xff]  }
  0xf5   :  { %2259 = vmatprep.subr.bf16.mxu0 %v7347_v21 }
  0xf6   :  { %2299 = vmatpush2.bf16.msra.mxu1 %v7342_v22  ;;  %v7439_v22 = vld [vmem:[%s10588_s7 + $0x900] ss:$8 sps:$4 sm:$0xff]  }
  0xf7   :  { %2300 = vmatprep.subr.bf16.mxu1 %v7350_v23 }
  0xf8   :  { %2260 = vmatpush2.bf16.msra.mxu0 %v7345_v24 }
  0xf9   :  { %2261 = vmatprep.subr.bf16.mxu0 %v7353_v25  ;;  %v175_v25 = vrot.slane %v161_v13, %v8309_v48  ;;  %v7453_v13 = vld [vmem:[%s10591_s4 + $0x20] sm:$0xff]  }
  0xfa   :  { %2301 = vmatpush2.bf16.msra.mxu1 %v7348_v26  ;;  %v7397_v26 = vld [vmem:[%s10588_s7 + $0x840] ss:$8 sps:$4 sm:$0xff]  }
  0xfb   :  { %2302 = vmatprep.subr.bf16.mxu1 %v7356_v27  ;;  %v7402_v27 = vld [vmem:[%s10588_s7 + $0x834] ss:$8 sps:$4 sm:$0xff]  }
  0xfc   :  { %2262 = vmatpush2.bf16.msra.mxu0 %v7351_v28 }
  0xfd   :  { %2263 = vmatprep.subr.bf16.mxu0 %v7359_v29  ;;  %v214_v29 = vpack.c.bf16 %v175_v25, %v175_v25 }
  0xfe   :  { %2303 = vmatpush2.bf16.msra.mxu1 %v7354_v30  ;;  %v7400_v30 = vld [vmem:[%s10588_s7 + $0x830] ss:$8 sps:$4 sm:$0xff]  }
  0xff   :  { %2304 = vmatprep.subr.bf16.mxu1 %v7362_v31  ;;  %v7405_v31 = vld [vmem:[%s10588_s7 + $0x824] ss:$8 sps:$4 sm:$0xff]  }
 0x100   :  { %2264 = vmatpush2.bf16.msra.mxu0 %v7357_v32  ;;  %v7403_v32 = vld [vmem:[%s10588_s7 + $0x820] ss:$8 sps:$4 sm:$0xff]  }
 0x101   :  { %2265 = vmatprep.subr.bf16.mxu0 %v7365_v33  ;;  %v7408_v33 = vld [vmem:[%s10588_s7 + $0x814] ss:$8 sps:$4 sm:$0xff]  }
 0x102   :  { %2305 = vmatpush2.bf16.msra.mxu1 %v7360_v35  ;;  %v7406_v35 = vld [vmem:[%s10588_s7 + $0x810] ss:$8 sps:$4 sm:$0xff]  }
 0x103   :  { %2306 = vmatprep.subr.bf16.mxu1 %v7368_v37  ;;  %v7411_v37 = vld [vmem:[%s10588_s7 + $0x804] ss:$8 sps:$4 sm:$0xff]  }
 0x104   :  { %2266 = vmatpush2.bf16.msra.mxu0 %v7363_v38  ;;  %v7409_v38 = vld [vmem:[%s10588_s7 + $0x800] ss:$8 sps:$4 sm:$0xff]  }
 0x105   :  { %2267 = vmatprep.subr.bf16.mxu0 %v7371_v41  ;;  %v7414_v41 = vld [vmem:[%s10588_s7 + $0x8f4] ss:$8 sps:$4 sm:$0xff]  }
 0x106   :  { %2307 = vmatpush2.bf16.msra.mxu1 %v7366_v42  ;;  %v7412_v42 = vld [vmem:[%s10588_s7 + $0x8f0] ss:$8 sps:$4 sm:$0xff]  }
 0x107   :  { %2308 = vmatprep.subr.bf16.mxu1 %v7374_v44  ;;  %v7417_v44 = vld [vmem:[%s10588_s7 + $0x8e4] ss:$8 sps:$4 sm:$0xff]  }
 0x108   :  { %2268 = vmatpush2.bf16.msra.mxu0 %v7369_v45  ;;  %v7415_v45 = vld [vmem:[%s10588_s7 + $0x8e0] ss:$8 sps:$4 sm:$0xff]  }
 0x109   :  { %2269 = vmatprep.subr.bf16.mxu0 %v7377_v46  ;;  %v7420_v46 = vld [vmem:[%s10588_s7 + $0x8d4] ss:$8 sps:$4 sm:$0xff]  }
 0x10a   :  { %2309 = vmatpush2.bf16.msra.mxu1 %v7372_v47  ;;  %v7418_v47 = vld [vmem:[%s10588_s7 + $0x8d0] ss:$8 sps:$4 sm:$0xff]  }
 0x10b   :  { %2310 = vmatprep.subr.bf16.mxu1 %v7380_v49  ;;  %v7423_v49 = vld [vmem:[%s10588_s7 + $0x8c4] ss:$8 sps:$4 sm:$0xff]  }
 0x10c   :  { %2270 = vmatpush2.bf16.msra.mxu0 %v7375_v51  ;;  %v7426_v51 = vld [vmem:[%s10588_s7 + $0x8b4] ss:$8 sps:$4 sm:$0xff]  }
 0x10d   :  { %2271 = vmatprep.subr.bf16.mxu0 %v7383_v52  ;;  %v7424_v52 = vld [vmem:[%s10588_s7 + $0x8b0] ss:$8 sps:$4 sm:$0xff]  }
 0x10e   :  { %2311 = vmatpush2.bf16.msra.mxu1 %v7378_v53  ;;  %v7432_v53 = vld [vmem:[%s10588_s7 + $0x8a4] ss:$8 sps:$4 sm:$0xff]  }
 0x10f   :  { %2312 = vmatprep.subr.bf16.mxu1 %v7386_v34  ;;  %v7430_v34 = vld [vmem:[%s10588_s7 + $0x8a0] ss:$8 sps:$4 sm:$0xff]  }
 0x110   :  { %2272 = vmatpush2.bf16.msra.mxu0 %v7381_v55  ;;  %v7438_v55 = vld [vmem:[%s10588_s7 + $0x894] ss:$8 sps:$4 sm:$0xff]  }
 0x111   :  { %2323 = vmatprep.subr.bf16.mxu0 %v7389_v39  ;;  %v7444_v39 = vld [vmem:[%s10588_s7 + $0x884] ss:$8 sps:$4 sm:$0xff]  }
 0x112   :  { %2313 = vmatpush2.bf16.msra.mxu1 %v7384_v57  ;;  %v7442_v57 = vld [vmem:[%s10588_s7 + $0x880] ss:$8 sps:$4 sm:$0xff]  }
 0x113   :  { %v2029_v7 = vpop.f32.mrf.mxu0  ;;  %2274 = vmatmul.mubr.bf16.vlgmr.msra.gmra.mxu0 %v208_v63  ;;  %2374 = vmatprep.subr.bf16.mxu1 %v7429_v60 }
 0x114   :  { %v2030_v9 = vadd.f32 %v2029_v7, %v514_v1  ;;  %2324 = vmatpush1.bf16.msra.mxu0 %v7387_v61  ;;  %2355 = vmatprep.mubr.bf16.mxu0 %v213_v3  ;;  %v2070_v11 = vpop.f32.mrf.mxu1  ;;  %v7446_v7 = vld [vmem:[%s10591_s4 + $0x78] sm:$0xff]  }
 0x115   :  { %v2031_v10 = vpop.f32.mrf.mxu0  ;;  %2315 = vmatmul.mubr.bf16.vlgmr.msra.gmra.mxu1 %v210_v4  ;;  %2325 = vmatprep.subr.bf16.mxu0 %v7393_v0 }
 0x116   :  { %v2032_v14 = vadd.f32 %v2031_v10, %v518_v5  ;;  %v9060_v15 = vadd.f32 %v2070_v11, %v2030_v9  ;;  %2375 = vmatpush1.bf16.msra.mxu1 %v7427_v2  ;;  %2396 = vmatprep.mubr.bf16.mxu1 %v8037_v17  ;;  %v2072_v19 = vpop.f32.mrf.mxu1  ;;  %v7450_v10 = vld [vmem:[%s10591_s4 + $0x68] sm:$0xff]  }
 0x117   :  { %v2033_v18 = vpop.f32.mrf.mxu0  ;;  %2376 = vmatprep.subr.bf16.mxu1 %v7435_v36  ;;  %v7451_v11 = vld [vmem:[%s10591_s4 + $0x28] sm:$0xff]  }
 0x118   :  { %v9069_v21 = vadd.f32 %v2072_v19, %v2032_v14  ;;  %2326 = vmatpush1.bf16.msra.mxu0 %v7391_v6  ;;  %v2074_v24 = vpop.f32.mrf.mxu1  ;;  %v7454_v14 = vld [vmem:[%s10591_s4 + $0x58] sm:$0xff]  }
 0x119   :  { %v2034_v23 = vpop.f32.mrf.mxu0  ;;  %2327 = vmatprep.subr.bf16.mxu0 %v7396_v8  ;;  %v7448_v8 = vld [vmem:[%s10591_s4 + $0x70] sm:$0xff]  }
 0x11a   :  { %2377 = vmatpush1.bf16.msra.mxu1 %v7433_v40  ;;  %v2075_v28 = vpop.f32.mrf.mxu1  ;;  %v7449_v40 = vld [vmem:[%s10591_s4 + $0x30] sm:$0xff]  }
 0x11b   :  { %2378 = vmatprep.subr.bf16.mxu1 %v7441_v12  ;;  %v7452_v12 = vld [vmem:[%s10591_s4 + $0x60] sm:$0xff]  }
 0x11c   :  { %2328 = vmatpush1.bf16.msra.mxu0 %v7394_v16 }
 0x11d   :  { %2329 = vmatprep.subr.bf16.mxu0 %v7399_v20 }
 0x11e   :  { %2379 = vmatpush1.bf16.msra.mxu1 %v7439_v22 }
 0x11f   :  { %6747 = vmatprep.subr.bf16.mxu1 %v7446_v7 }
 0x120   :  { %2330 = vmatpush1.bf16.msra.mxu0 %v7397_v26 }
 0x121   :  { %2331 = vmatprep.subr.bf16.mxu0 %v7402_v27  ;;  %6346 = vmatmul.mubr.msk.bf16.vlgmr.msra.gmra.mxu1 %vm1991_vm0, %v214_v29 }
 0x122   :  { %6748 = vmatpush3.bf16.msra.mxu1 %v7447_v54 }
 0x123   :  { %6749 = vmatprep.subr.bf16.mxu1 %v7448_v8 }
 0x124   :  { %2332 = vmatpush1.bf16.msra.mxu0 %v7400_v30 }
 0x125   :  { %2333 = vmatprep.subr.bf16.mxu0 %v7405_v31 }
 0x126   :  { %6750 = vmatpush3.bf16.msra.mxu1 %v7449_v40 }
 0x127   :  { %6751 = vmatprep.subr.bf16.mxu1 %v7450_v10 }
 0x128   :  { %2334 = vmatpush1.bf16.msra.mxu0 %v7403_v32 }
 0x129   :  { %2335 = vmatprep.subr.bf16.mxu0 %v7408_v33 }
 0x12a   :  { %6752 = vmatpush3.bf16.msra.mxu1 %v7451_v11 }
 0x12b   :  { %6753 = vmatprep.subr.bf16.mxu1 %v7452_v12 }
 0x12c   :  { %2336 = vmatpush1.bf16.msra.mxu0 %v7406_v35 }
 0x12d   :  { %2337 = vmatprep.subr.bf16.mxu0 %v7411_v37 }
 0x12e   :  { %6754 = vmatpush3.bf16.msra.mxu1 %v7453_v13 }
 0x12f   :  { %6755 = vmatprep.subr.bf16.mxu1 %v7454_v14 }
 0x130   :  { %2338 = vmatpush1.bf16.msra.mxu0 %v7409_v38 }
 0x131   :  { %2339 = vmatprep.subr.bf16.mxu0 %v7414_v41 }
 0x134   :  { %2340 = vmatpush2.bf16.msra.mxu0 %v7412_v42 }
 0x135   :  { %2341 = vmatprep.subr.bf16.mxu0 %v7417_v44 }
 0x138   :  { %2342 = vmatpush2.bf16.msra.mxu0 %v7415_v45 }
 0x139   :  { %2343 = vmatprep.subr.bf16.mxu0 %v7420_v46 }
 0x13c   :  { %2344 = vmatpush2.bf16.msra.mxu0 %v7418_v47 }
 0x13d   :  { %2345 = vmatprep.subr.bf16.mxu0 %v7423_v49 }
 0x140   :  { %2346 = vmatpush2.bf16.msra.mxu0 %v7421_v50 }
 0x141   :  { %2347 = vmatprep.subr.bf16.mxu0 %v7426_v51 }
 0x144   :  { %2348 = vmatpush2.bf16.msra.mxu0 %v7424_v52 }
 0x145   :  { %2349 = vmatprep.subr.bf16.mxu0 %v7432_v53 }
 0x148   :  { %2350 = vmatpush2.bf16.msra.mxu0 %v7430_v34 }
 0x149   :  { %2351 = vmatprep.subr.bf16.mxu0 %v7438_v55 }
 0x14c   :  { %2352 = vmatpush2.bf16.msra.mxu0 %v7436_v56 }
 0x14d   :  { %2353 = vmatprep.subr.bf16.mxu0 %v7444_v39 }
 0x150   :  { %2354 = vmatpush2.bf16.msra.mxu0 %v7442_v57 }
 0x153   :  { %v2111_v60 = vpop.f32.mrf.mxu0  ;;  %2356 = vmatmul.mubr.bf16.vlgmr.msra.gmra.mxu0 %v212_v59 }
 0x154   :  { %v2112_v61 = vadd.f32 %v2111_v60, %v9060_v15  ;;  %v2152_v0 = vpop.f32.mrf.mxu1  ;;  %v7455_v15 = vld [vmem:[%s10591_s4 + $0x18] sm:$0xff]  }
 0x155   :  { %v2113_v63 = vpop.f32.mrf.mxu0  ;;  %6756 = vmatpush3.bf16.msra.mxu1 %v7455_v15 }
 0x156   :  { %v2114_v1 = vadd.f32 %v2113_v63, %v9069_v21  ;;  %v2153_v2 = vadd.f32 %v2152_v0, %v2112_v61  ;;  %v2154_v4 = vpop.f32.mrf.mxu1 }
 0x157   :  { %v2115_v3 = vpop.f32.mrf.mxu0 }
 0x158   :  { %v2155_v36 = vadd.f32 %v2154_v4, %v2114_v1  ;;  %v2156_v6 = vpop.f32.mrf.mxu1 }
 0x159   :  { %v2116_v5 = vpop.f32.mrf.mxu0 }
 0x15a   :  { %v2157_v9 = vpop.f32.mrf.mxu1 }
 0x15b   :  { %33 = vsyncpa [#allocation5], 0  ;;  %v7456_v16 = vld [vmem:[%s10591_s4 + $0x50] sm:$0xff]   ;;  %v7458_v23 = vld [vmem:[%s10591_s4 + $0x48] sm:$0xff]   ;;  %v8038_v37 = vmov 0.0   ;;  %s10592_s30 = sld [smem:[#allocation14_spill]] }
 0x15c   :  { %v7457_v18 = vld [vmem:[%s10591_s4 + $0x10] sm:$0xff]   ;;  %6757 = vmatprep.subr.bf16.mxu1 %v7456_v16  ;;  %v7459_v26 = vld [vmem:[%s10591_s4 + $0x8] sm:$0xff]   ;;  %v7460_v32 = vld [vmem:[%s10591_s4 + $0x40] sm:$0xff]   ;;  %6874 = vmatprep.subr.bf16.mxu0 %v8038_v37  ;;  %vm8039_vm1 = vmmov 0   ;;  %s10593_s6 = sld [smem:[#allocation16_spill]]  ;;  %vm3034_vm2 = vcmask 74752  }
 0x15d   :  { %6758 = vmatpush3.bf16.msra.mxu1 %v7457_v18  ;;  %v7461_v33 = vld [vmem:[%s10591_s4] sm:$0xff]   ;;  %6890 = vmatprep.mubr.msk.bf16.mxu0 %vm8039_vm1, %v8038_v37  ;;  %s10594_s2 = sld [smem:[#allocation13_spill]]  ;;  %s8040_s0 = smov [#allocation2]  }
 0x15e   :  { %6759 = vmatprep.subr.bf16.mxu1 %v7458_v23  ;;  %s10595_s5 = sld [smem:[#allocation18_spill]]  ;;  %s8041_s4 = smov [#allocation4]  }
 0x15f   :  { %s10596_s3 = sld [smem:[#allocation15_spill]]  ;;  %s6038_s9 = sshll.u32 %s8041_s4, 4  ;;  %s6039_s9 = int_to_ptr.vmem [resolvable:$true] %s6038_s9 }
 0x161   :  { %6760 = vmatpush3.bf16.msra.mxu1 %v7459_v26  ;;  %v7462_v5 = vld [vmem:[%s10592_s30 + $0x38] sm:$0xff]   ;;  %v7463_v7 = vld [vmem:[%s10592_s30 + $0x30] sm:$0xff]   ;;  %v7464_v54 = vld [vmem:[%s10592_s30 + $0x28] sm:$0xff]  }
 0x162   :  { %6761 = vmatprep.subr.bf16.mxu1 %v7460_v32  ;;  %v7465_v8 = vld [vmem:[%s10592_s30 + $0x20] sm:$0xff]   ;;  %v7466_v9 = vld [vmem:[%s10592_s30 + $0x18] sm:$0xff]   ;;  %v7467_v40 = vld [vmem:[%s10592_s30 + $0x10] sm:$0xff]  }
 0x163   :  { %v7468_v10 = vld [vmem:[%s10592_s30 + $0x8] sm:$0xff]   ;;  %v7469_v11 = vld [vmem:[%s10592_s30] sm:$0xff]   ;;  %v7470_v12 = vld [vmem:[%s10593_s6 + $0x38] sm:$0xff]  }
 0x164   :  { %6875 = vmatpush3.bf16.msra.mxu0 %v7470_v12  ;;  %v7471_v13 = vld [vmem:[%s10593_s6 + $0x30] sm:$0xff]   ;;  %v7472_v14 = vld [vmem:[%s10593_s6 + $0x28] sm:$0xff]   ;;  %v7473_v15 = vld [vmem:[%s10593_s6 + $0x20] sm:$0xff]  }
 0x165   :  { %6762 = vmatpush3.bf16.msra.mxu1 %v7461_v33  ;;  %6876 = vmatprep.subr.bf16.mxu0 %v8038_v37  ;;  %v7474_v16 = vld [vmem:[%s10593_s6 + $0x18] sm:$0xff]   ;;  %v7475_v18 = vld [vmem:[%s10593_s6 + $0x10] sm:$0xff]   ;;  %v7482_v32 = vld [vmem:[%s10595_s5 + $0x28] sm:$0xff]  }
 0x166   :  { %6854 = vmatprep.subr.bf16.mxu1 %v8038_v37  ;;  %v7484_v33 = vld [vmem:[%s10595_s5 + $0x20] sm:$0xff]   ;;  %v7503_v12 = vld [vmem:[%s10560_s16 + $0x30] sm:$0xff]  }
 0x168   :  { %6877 = vmatpush3.bf16.msra.mxu0 %v7471_v13  ;;  %v7504_v13 = vld [vmem:[%s10560_s16 + $0x28] sm:$0xff]  }
 0x169   :  { %6878 = vmatprep.subr.bf16.mxu0 %v8038_v37 }
 0x16c   :  { %6879 = vmatpush3.bf16.msra.mxu0 %v7472_v14  ;;  %v7505_v14 = vld [vmem:[%s10560_s16 + $0x20] sm:$0xff]  }
 0x16d   :  { %6880 = vmatprep.subr.bf16.mxu0 %v8038_v37 }
 0x170   :  { %6881 = vmatpush3.bf16.msra.mxu0 %v7473_v15  ;;  %v7506_v15 = vld [vmem:[%s10560_s16 + $0x18] sm:$0xff]  }
 0x171   :  { %6882 = vmatprep.subr.bf16.mxu0 %v8038_v37 }
 0x174   :  { %6883 = vmatpush3.bf16.msra.mxu0 %v7474_v16  ;;  %v7507_v16 = vld [vmem:[%s10560_s16 + $0x10] sm:$0xff]  }
 0x175   :  { %6884 = vmatprep.subr.bf16.mxu0 %v8038_v37 }
 0x178   :  { %6885 = vmatpush3.bf16.msra.mxu0 %v7475_v18  ;;  %v6382_v18 = vld [vmem:[%s10555_s11] ss:$0 sm:$0xff] }
 0x179   :  { %6886 = vmatprep.subr.bf16.mxu0 %v8038_v37 }
 0x193   :  { %v2193_v19 = vpop.f32.mrf.mxu0 }
 0x194   :  { %v2194_v20 = vadd.f32 %v2193_v19, %v2153_v2 }
 0x195   :  { %v2195_v21 = vpop.f32.mrf.mxu0  ;;  %v2234_v22 = vpop.f32.mrf.mxu1 }
 0x196   :  { %v2196_v24 = vadd.f32 %v2195_v21, %v2155_v36  ;;  %v2235_v25 = vadd.f32 %v2234_v22, %v2194_v20  ;;  %v6347_v20 = vld [vmem:[%s10594_s2] ss:$0 sm:$0xff]  ;;  %s10597_s2 = sld [smem:[#allocation17_spill]] }
 0x197   :  { %v2197_v27 = vpop.f32.mrf.mxu0  ;;  %v2236_v28 = vpop.f32.mrf.mxu1 }
 0x198   :  { %v2237_v29 = vadd.f32 %v2236_v28, %v2196_v24  ;;  %v7476_v28 = vld [vmem:[%s10593_s6 + $0x8] sm:$0xff]  }
 0x199   :  { %v2198_v30 = vpop.f32.mrf.mxu0  ;;  %v2238_v31 = vpop.f32.mrf.mxu1  ;;  %6887 = vmatpush3.bf16.msra.mxu0 %v7476_v28 }
 0x19a   :  { %6888 = vmatprep.subr.bf16.mxu0 %v8038_v37  ;;  %v7478_v30 = vld [vmem:[%s10595_s5 + $0x38] sm:$0xff]   ;;  %v7480_v31 = vld [vmem:[%s10595_s5 + $0x30] sm:$0xff]  }
 0x19b   :  { %v2239_v35 = vpop.f32.mrf.mxu1 }
 0x19c   :  { %v7486_v35 = vld [vmem:[%s10595_s5 + $0x18] sm:$0xff]  }
 0x1d3   :  { %v2275_v38 = vpop.f32.mrf.mxu0 }
 0x1d4   :  { %v2276_v34 = vadd.f32 %v2275_v38, %v2235_v25  ;;  %v7488_v38 = vld [vmem:[%s10595_s5 + $0x10] sm:$0xff]  }
 0x1d5   :  { %v2277_v41 = vpop.f32.mrf.mxu0  ;;  %v2316_v42 = vpop.f32.mrf.mxu1 }
 0x1d6   :  { %v2278_v55 = vadd.f32 %v2277_v41, %v2237_v29  ;;  %v2317_v56 = vadd.f32 %v2316_v42, %v2276_v34  ;;  %v7477_v29 = vld [vmem:[%s10593_s6] sm:$0xff]   ;;  %s6028_s6 = sshll.u32 %s8040_s0, 4  ;;  %s6029_s6 = int_to_ptr.vmem [resolvable:$true] %s6028_s6 }
 0x1d7   :  { %v2279_v44 = vpop.f32.mrf.mxu0  ;;  %v2318_v45 = vpop.f32.mrf.mxu1  ;;  %6889 = vmatpush3.bf16.msra.mxu0 %v7477_v29  ;;  %v6364_v41 = vld [vmem:[%s10596_s3] ss:$0 sm:$0xff]  ;;  %p7997_p1 = scmp.lt.s32.totalorder %s6029_s6, %s6029_s6 }
 0x1d8   :  { %v2319_v57 = vadd.f32 %v2318_v45, %v2278_v55  ;;  %6914 = vmatprep.subr.bf16.mxu0 %v8038_v37  ;;  %v7485_v34 = vld [vmem:[%s10556_s12 + $0x20] sm:$0xff]   ;;  %v7487_v55 = vld [vmem:[%s10556_s12 + $0x18] sm:$0xff]  }
 0x1d9   :  { %v2280_v46 = vpop.f32.mrf.mxu0  ;;  %v2320_v47 = vpop.f32.mrf.mxu1 }
 0x1db   :  { %v2321_v49 = vpop.f32.mrf.mxu1 }
 0x1dc   :  { %v7479_v49 = vld [vmem:[%s10556_s12 + $0x38] sm:$0xff]  }
 0x1e1   :  { %v2398_v50 = vpop.f32.mrf.mxu1 }
 0x1e3   :  { %v2400_v51 = vpop.f32.mrf.mxu1 }
 0x1e5   :  { %v2402_v52 = vpop.f32.mrf.mxu1 }
 0x1e6   :  { %v7481_v52 = vld [vmem:[%s10556_s12 + $0x30] sm:$0xff]  }
 0x1e7   :  { %v2403_v53 = vpop.f32.mrf.mxu1 }
 0x1e8   :  { %v7483_v53 = vld [vmem:[%s10556_s12 + $0x28] sm:$0xff]  }
 0x213   :  { %v2357_v39 = vpop.f32.mrf.mxu0 }
 0x214   :  { %v2358_v59 = vadd.f32 %v2357_v39, %v2317_v56  ;;  %v7489_v56 = vld [vmem:[%s10556_s12 + $0x10] sm:$0xff]   ;;  %v7490_v39 = vld [vmem:[%s10595_s5 + $0x8] sm:$0xff]  }
 0x215   :  { %v2359_v60 = vpop.f32.mrf.mxu0 }
 0x216   :  { %v2399_v61 = vadd.f32 %v2398_v50, %v2358_v59  ;;  %v2360_v63 = vadd.f32 %v2359_v60, %v2319_v57  ;;  %v7491_v57 = vld [vmem:[%s10556_s12 + $0x8] sm:$0xff]   ;;  %v7492_v59 = vld [vmem:[%s10595_s5] sm:$0xff]   ;;  %s10598_s5 = sld [smem:[#allocation9_spill]] }
 0x217   :  { %v2361_v0 = vpop.f32.mrf.mxu0  ;;  %v7493_v60 = vld [vmem:[%s10556_s12] sm:$0xff]  }
 0x218   :  { %v2401_v1 = vadd.f32 %v2400_v51, %v2360_v63  ;;  %v2405_v2 = vmax.f32 %v2399_v61, 0.0  ;;  %v6373_v61 = vld [vmem:[%s10597_s2] ss:$0 sm:$0xff] }
 0x219   :  { %v2362_v3 = vpop.f32.mrf.mxu0 }
 0x21a   :  { %v2406_v4 = vmax.f32 %v2401_v1, 0.0  ;;  %v2407_v6 = vpack.c.bf16 %v2405_v2, %v2405_v2 }
 0x21c   :  { %v2408_v36 = vpack.c.bf16 %v2406_v4, %v2406_v4  ;;  %v7494_v4 = vld [vmem:[%s10558_s14 + $0x38] sm:$0xff]  }
 0x21e   :  { %2576 = vmatprep.mubr.bf16.mxu1 %v2408_v36 }
 0x21f   :  { %2577 = vmatmul.mubr.bf16.vlgmr.msra.gmra.mxu1 %v2407_v6  ;;  %v7495_v6 = vld [vmem:[%s10558_s14 + $0x30] sm:$0xff]  }
 0x220   :  { %6855 = vmatpush3.bf16.msra.mxu1 %v7462_v5  ;;  %6870 = vmatprep.mubr.msk.bf16.mxu1 %vm8039_vm1, %v8038_v37 }
 0x221   :  { %6856 = vmatprep.subr.bf16.mxu1 %v8038_v37 }
 0x224   :  { %6857 = vmatpush3.bf16.msra.mxu1 %v7463_v7  ;;  %v7496_v7 = vld [vmem:[%s10558_s14 + $0x28] sm:$0xff]  }
 0x225   :  { %6858 = vmatprep.subr.bf16.mxu1 %v8038_v37 }
 0x228   :  { %6859 = vmatpush3.bf16.msra.mxu1 %v7464_v54  ;;  %v7497_v54 = vld [vmem:[%s10558_s14 + $0x20] sm:$0xff]  }
 0x229   :  { %6860 = vmatprep.subr.bf16.mxu1 %v8038_v37 }
 0x22c   :  { %6861 = vmatpush3.bf16.msra.mxu1 %v7465_v8  ;;  %v7498_v8 = vld [vmem:[%s10558_s14 + $0x18] sm:$0xff]  }
 0x22d   :  { %6862 = vmatprep.subr.bf16.mxu1 %v8038_v37 }
 0x230   :  { %6863 = vmatpush3.bf16.msra.mxu1 %v7466_v9  ;;  %v7499_v9 = vld [vmem:[%s10558_s14 + $0x10] sm:$0xff]  }
 0x231   :  { %6864 = vmatprep.subr.bf16.mxu1 %v8038_v37 }
 0x234   :  { %6865 = vmatpush3.bf16.msra.mxu1 %v7467_v40  ;;  %v7500_v40 = vld [vmem:[%s10558_s14 + $0x8] sm:$0xff]  }
 0x235   :  { %6866 = vmatprep.subr.bf16.mxu1 %v8038_v37 }
 0x238   :  { %6867 = vmatpush3.bf16.msra.mxu1 %v7468_v10  ;;  %v7501_v10 = vld [vmem:[%s10558_s14] sm:$0xff]  }
 0x239   :  { %6868 = vmatprep.subr.bf16.mxu1 %v8038_v37 }
 0x23c   :  { %6869 = vmatpush3.bf16.msra.mxu1 %v7469_v11  ;;  %v7502_v11 = vld [vmem:[%s10560_s16 + $0x38] sm:$0xff]  }
 0x23d   :  { %6894 = vmatprep.subr.bf16.mxu1 %v8038_v37 }
 0x2df   :  { %v6763_v19 = vpop.f32.mrf.mxu1 }
 0x2e1   :  { %v6764_v21 = vpop.f32.mrf.mxu1 }
 0x2e2   :  { %v6765_v22 = vadd.f32 %v6764_v21, %v6763_v19  ;;  %v6391_v19 = vld [vmem:[%s10557_s13] ss:$0 sm:$0xff] }
 0x2e3   :  { %v6766_v23 = vpop.f32.mrf.mxu1 }
 0x2e4   :  { %v2579_v24 = vadd.f32 %v6765_v22, %v6347_v20 }
 0x2e5   :  { %v6767_v25 = vpop.f32.mrf.mxu1 }
 0x2e6   :  { %v2584_v26 = vmax.f32 %v2579_v24, 0.0 }
 0x2e8   :  { %v2585_v27 = vpack.c.bf16 %v2584_v26, %v2584_v26 }
 0x2ea   :  { %6871 = vmatmul.mubr.bf16.vlgmr.msra.gmra.mxu1 %v2585_v27 }
 0x2eb   :  { %6910 = vmatprep.mubr.msk.bf16.mxu1 %vm8039_vm1, %v8038_v37  ;;  %6895 = vmatpush3.bf16.msra.mxu1 %v7478_v30 }
 0x2ec   :  { %6896 = vmatprep.subr.bf16.mxu1 %v8038_v37 }
 0x2ef   :  { %6897 = vmatpush3.bf16.msra.mxu1 %v7480_v31 }
 0x2f0   :  { %6898 = vmatprep.subr.bf16.mxu1 %v8038_v37 }
 0x2f3   :  { %6899 = vmatpush3.bf16.msra.mxu1 %v7482_v32  ;;  %v3040_v32 = vld [vmem:[%s10598_s5] sm:$0x3] }
 0x2f4   :  { %6900 = vmatprep.subr.bf16.mxu1 %v8038_v37 }
 0x2f7   :  { %6901 = vmatpush3.bf16.msra.mxu1 %v7484_v33 }
 0x2f8   :  { %6902 = vmatprep.subr.bf16.mxu1 %v8038_v37 }
 0x2fb   :  { %6903 = vmatpush3.bf16.msra.mxu1 %v7486_v35 }
 0x2fc   :  { %6904 = vmatprep.subr.bf16.mxu1 %v8038_v37 }
 0x2ff   :  { %6905 = vmatpush3.bf16.msra.mxu1 %v7488_v38 }
 0x300   :  { %6906 = vmatprep.subr.bf16.mxu1 %v8038_v37 }
 0x303   :  { %6907 = vmatpush3.bf16.msra.mxu1 %v7490_v39 }
 0x304   :  { %6908 = vmatprep.subr.bf16.mxu1 %v8038_v37 }
 0x307   :  { %6909 = vmatpush3.bf16.msra.mxu1 %v7492_v59 }
 0x308   :  { %6934 = vmatprep.subr.bf16.mxu1 %v8038_v37 }
 0x3aa   :  { %v2691_v42 = vpop.f32.mrf.mxu1 }
 0x3ab   :  { %v2692_v44 = vadd.f32 %v6364_v41, %v2691_v42  ;;  %v7508_v42 = vld [vmem:[%s10560_s16 + $0x8] sm:$0xff]  }
 0x3ac   :  { %v6872_v45 = vpop.f32.mrf.mxu1 }
 0x3ad   :  { %v2697_v46 = vmax.f32 %v2692_v44, 0.0  ;;  %v7509_v44 = vld [vmem:[%s10560_s16] sm:$0xff]   ;;  %v7510_v45 = vld [vmem:[%s10562_s18 + $0x38] sm:$0xff]  }
 0x3ae   :  { %v2694_v47 = vpop.f32.mrf.mxu1 }
 0x3af   :  { %v2698_v50 = vpack.c.bf16 %v2697_v46, %v2697_v46  ;;  %v7511_v46 = vld [vmem:[%s10562_s18 + $0x30] sm:$0xff]   ;;  %v7512_v47 = vld [vmem:[%s10562_s18 + $0x28] sm:$0xff]  }
 0x3b0   :  { %v6873_v51 = vpop.f32.mrf.mxu1 }
 0x3b1   :  { %6891 = vmatmul.mubr.bf16.vlgmr.msra.gmra.mxu0 %v2698_v50  ;;  %v7514_v50 = vld [vmem:[%s10562_s18 + $0x18] sm:$0xff]   ;;  %v7515_v51 = vld [vmem:[%s10562_s18 + $0x10] sm:$0xff]  }
 0x3b2   :  { %6915 = vmatpush3.bf16.msra.mxu0 %v7479_v49  ;;  %6930 = vmatprep.mubr.msk.bf16.mxu0 %vm8039_vm1, %v8038_v37  ;;  %v7513_v49 = vld [vmem:[%s10562_s18 + $0x20] sm:$0xff]  }
 0x3b3   :  { %6916 = vmatprep.subr.bf16.mxu0 %v8038_v37 }
 0x3b6   :  { %6917 = vmatpush3.bf16.msra.mxu0 %v7481_v52  ;;  %v6400_v52 = vld [vmem:[%s10559_s15] ss:$0 sm:$0xff] }
 0x3b7   :  { %6918 = vmatprep.subr.bf16.mxu0 %v8038_v37 }
 0x3ba   :  { %6919 = vmatpush3.bf16.msra.mxu0 %v7483_v53 }
 0x3bb   :  { %6920 = vmatprep.subr.bf16.mxu0 %v8038_v37 }
 0x3be   :  { %6921 = vmatpush3.bf16.msra.mxu0 %v7485_v34 }
 0x3bf   :  { %6922 = vmatprep.subr.bf16.mxu0 %v8038_v37 }
 0x3c2   :  { %6923 = vmatpush3.bf16.msra.mxu0 %v7487_v55 }
 0x3c3   :  { %6924 = vmatprep.subr.bf16.mxu0 %v8038_v37 }
 0x3c6   :  { %6925 = vmatpush3.bf16.msra.mxu0 %v7489_v56 }
 0x3c7   :  { %6926 = vmatprep.subr.bf16.mxu0 %v8038_v37 }
 0x3ca   :  { %6927 = vmatpush3.bf16.msra.mxu0 %v7491_v57 }
 0x3cb   :  { %6928 = vmatprep.subr.bf16.mxu0 %v8038_v37 }
 0x3ce   :  { %6929 = vmatpush3.bf16.msra.mxu0 %v7493_v60  ;;  %v7516_v60 = vld [vmem:[%s10562_s18 + $0x8] sm:$0xff]  }
 0x3cf   :  { %6954 = vmatprep.subr.bf16.mxu0 %v8038_v37 }
 0x471   :  { %v2804_v63 = vpop.f32.mrf.mxu0 }
 0x472   :  { %v2805_v0 = vadd.f32 %v6373_v61, %v2804_v63  ;;  %v7517_v61 = vld [vmem:[%s10562_s18] sm:$0xff]   ;;  %v7518_v63 = vld [vmem:[%s10564_s20 + $0x70] ss:$8 sps:$4 sm:$0xff]  }
 0x473   :  { %v6892_v1 = vpop.f32.mrf.mxu0 }
 0x474   :  { %v2810_v2 = vmax.f32 %v2805_v0, 0.0  ;;  %v7523_v0 = vld [vmem:[%s10564_s20 + $0x64] ss:$8 sps:$4 sm:$0xff]   ;;  %v7526_v1 = vld [vmem:[%s10564_s20 + $0x54] ss:$8 sps:$4 sm:$0xff]  }
 0x475   :  { %v2807_v3 = vpop.f32.mrf.mxu0 }
 0x476   :  { %v2811_v36 = vpack.c.bf16 %v2810_v2, %v2810_v2  ;;  %v7524_v2 = vld [vmem:[%s10564_s20 + $0x50] ss:$8 sps:$4 sm:$0xff]   ;;  %v7529_v3 = vld [vmem:[%s10564_s20 + $0x44] ss:$8 sps:$4 sm:$0xff]  }
 0x477   :  { %v6893_v5 = vpop.f32.mrf.mxu0 }
 0x478   :  { %6911 = vmatmul.mubr.bf16.vlgmr.msra.gmra.mxu1 %v2811_v36  ;;  %6931 = vmatmul.mubr.bf16.vlgmr.msra.gmra.mxu0 %v2811_v36  ;;  %v7532_v36 = vld [vmem:[%s10564_s20 + $0x34] ss:$8 sps:$4 sm:$0xff]   ;;  %v7530_v5 = vld [vmem:[%s10564_s20 + $0x30] ss:$8 sps:$4 sm:$0xff]  }
 0x479   :  { %6935 = vmatpush3.bf16.msra.mxu1 %v7494_v4  ;;  %6950 = vmatprep.mubr.msk.bf16.mxu1 %vm8039_vm1, %v8038_v37  ;;  %v7527_v4 = vld [vmem:[%s10564_s20 + $0x40] ss:$8 sps:$4 sm:$0xff]  }
 0x47a   :  { %6936 = vmatprep.subr.bf16.mxu1 %v8038_v37  ;;  %6970 = vmatprep.mubr.msk.bf16.mxu0 %vm8039_vm1, %v8038_v37 }
 0x47b   :  { %6955 = vmatpush3.bf16.msra.mxu0 %v7502_v11 }
 0x47c   :  { %6956 = vmatprep.subr.bf16.mxu0 %v8038_v37 }
 0x47d   :  { %6937 = vmatpush3.bf16.msra.mxu1 %v7495_v6  ;;  %v7535_v6 = vld [vmem:[%s10564_s20 + $0x24] ss:$8 sps:$4 sm:$0xff]  }
 0x47e   :  { %6938 = vmatprep.subr.bf16.mxu1 %v8038_v37 }
 0x47f   :  { %6957 = vmatpush3.bf16.msra.mxu0 %v7503_v12 }
 0x480   :  { %6958 = vmatprep.subr.bf16.mxu0 %v8038_v37 }
 0x481   :  { %6939 = vmatpush3.bf16.msra.mxu1 %v7496_v7  ;;  %v7533_v7 = vld [vmem:[%s10564_s20 + $0x20] ss:$8 sps:$4 sm:$0xff]  }
 0x482   :  { %6940 = vmatprep.subr.bf16.mxu1 %v8038_v37 }
 0x483   :  { %6959 = vmatpush3.bf16.msra.mxu0 %v7504_v13 }
 0x484   :  { %6960 = vmatprep.subr.bf16.mxu0 %v8038_v37 }
 0x485   :  { %6941 = vmatpush3.bf16.msra.mxu1 %v7497_v54  ;;  %v7538_v54 = vld [vmem:[%s10564_s20 + $0x14] ss:$8 sps:$4 sm:$0xff]  }
 0x486   :  { %6942 = vmatprep.subr.bf16.mxu1 %v8038_v37 }
 0x487   :  { %6961 = vmatpush3.bf16.msra.mxu0 %v7505_v14 }
 0x488   :  { %6962 = vmatprep.subr.bf16.mxu0 %v8038_v37 }
 0x489   :  { %6943 = vmatpush3.bf16.msra.mxu1 %v7498_v8  ;;  %v7536_v8 = vld [vmem:[%s10564_s20 + $0x10] ss:$8 sps:$4 sm:$0xff]  }
 0x48a   :  { %6944 = vmatprep.subr.bf16.mxu1 %v8038_v37 }
 0x48b   :  { %6963 = vmatpush3.bf16.msra.mxu0 %v7506_v15 }
 0x48c   :  { %6964 = vmatprep.subr.bf16.mxu0 %v8038_v37 }
 0x48d   :  { %6945 = vmatpush3.bf16.msra.mxu1 %v7499_v9  ;;  %v6409_v9 = vld [vmem:[%s10561_s17] ss:$0 sm:$0xff] }
 0x48e   :  { %6946 = vmatprep.subr.bf16.mxu1 %v8038_v37 }
 0x48f   :  { %6965 = vmatpush3.bf16.msra.mxu0 %v7507_v16  ;;  %v7541_v16 = vld [vmem:[%s10564_s20 + $0x4] ss:$8 sps:$4 sm:$0xff]  }
 0x490   :  { %6966 = vmatprep.subr.bf16.mxu0 %v8038_v37 }
 0x491   :  { %6947 = vmatpush3.bf16.msra.mxu1 %v7500_v40 }
 0x492   :  { %6948 = vmatprep.subr.bf16.mxu1 %v8038_v37 }
 0x493   :  { %6967 = vmatpush3.bf16.msra.mxu0 %v7508_v42  ;;  %v7590_v42 = vld [vmem:[%s10566_s22 + $0x8e8] ss:$76 sps:$4 sm:$0xff]  }
 0x494   :  { %6968 = vmatprep.subr.bf16.mxu0 %v8038_v37 }
 0x495   :  { %6949 = vmatpush3.bf16.msra.mxu1 %v7501_v10 }
 0x496   :  { %6974 = vmatprep.subr.bf16.mxu1 %v8038_v37 }
 0x497   :  { %6969 = vmatpush3.bf16.msra.mxu0 %v7509_v44  ;;  %v7598_v44 = vld [vmem:[%s10566_s22 + $0x854] ss:$76 sps:$4 sm:$0xff]  }
 0x538   :  { %v2917_v20 = vpop.f32.mrf.mxu1  ;;  %v3028_v21 = vpop.f32.mrf.mxu0 }
 0x539   :  { %v2918_v22 = vadd.f32 %v6382_v18, %v2917_v20  ;;  %v3029_v23 = vadd.f32 %v6391_v19, %v3028_v21  ;;  %v7539_v18 = vld [vmem:[%s10564_s20] ss:$8 sps:$4 sm:$0xff]   ;;  %v7544_v20 = vld [vmem:[%s10566_s22 + $0x42c] ss:$76 sps:$4 sm:$0xff]  }
 0x53a   :  { %v6912_v24 = vpop.f32.mrf.mxu1  ;;  %v6932_v25 = vpop.f32.mrf.mxu0  ;;  %v7542_v19 = vld [vmem:[%s10566_s22 + $0x428] ss:$76 sps:$4 sm:$0xff]  }
 0x53b   :  { %v3037_v26 = vmul.f32 0.5, %v3029_v23  ;;  %3035 = vst.msk [vmem:[#allocation2] sm:$0x3] %vm3034_vm2, %v2918_v22  ;;  %3036 = vst.msk [vmem:[#allocation4] sm:$0x3] %vm3034_vm2, %v3029_v23 }
 0x53c   :  { %v2920_v27 = vpop.f32.mrf.mxu1  ;;  %v3031_v28 = vpop.f32.mrf.mxu0  ;;  %v7547_v21 = vld [vmem:[%s10566_s22 + $0x434] ss:$76 sps:$4 sm:$0xff]   ;;  %v7548_v23 = vld [vmem:[%s10566_s22 + $0x390] ss:$76 sps:$4 sm:$0xff]   ;;  %v7554_v25 = vld [vmem:[%s10566_s22 + $0x2f8] ss:$76 sps:$4 sm:$0xff]  }
 0x53d   :  { %v3038_v29 = vmul.f32 1.442695, %v3037_v26  ;;  %v7556_v24 = vld [vmem:[%s10566_s22 + $0x2fc] ss:$76 sps:$4 sm:$0xff]   ;;  %v7562_v26 = vld [vmem:[%s10566_s22 + $0x264] ss:$76 sps:$4 sm:$0xff]  }
 0x53e   :  { %v6913_v30 = vpop.f32.mrf.mxu1  ;;  %v6933_v31 = vpop.f32.mrf.mxu0  ;;  %v7560_v27 = vld [vmem:[%s10566_s22 + $0x260] ss:$76 sps:$4 sm:$0xff]  }
 0x53f   :  { %7990 = vpow2.f32 %v3038_v29  ;;  %v7568_v28 = vld [vmem:[%s10566_s22 + $0x1cc] ss:$76 sps:$4 sm:$0xff]   ;;  %v7566_v29 = vld [vmem:[%s10566_s22 + $0x1c8] ss:$76 sps:$4 sm:$0xff]   ;;  %v7572_v31 = vld [vmem:[%s10566_s22 + $0x130] ss:$76 sps:$4 sm:$0xff]  }
 0x540   :  { %v7574_v30 = vld [vmem:[%s10566_s22 + $0x134] ss:$76 sps:$4 sm:$0xff]  }
 0x54c   :  { %v7991_v33 = vpop.eup %7990 }
 0x54d   :  { %v3041_v35 = vmul.f32 %v7991_v33, %v3040_v32  ;;  %v7580_v32 = vld [vmem:[%s10566_s22 + $0x9c] ss:$76 sps:$4 sm:$0xff]   ;;  %v7578_v33 = vld [vmem:[%s10566_s22 + $0x98] ss:$76 sps:$4 sm:$0xff]  }
 0x54f   :  { %v3042_v38 = vadd.f32 %v3041_v35, %v2918_v22  ;;  %v7550_v22 = vld [vmem:[%s10566_s22 + $0x394] ss:$76 sps:$4 sm:$0xff]   ;;  %v7586_v35 = vld [vmem:[%s10566_s22 + $0x4] ss:$76 sps:$4 sm:$0xff]  }
 0x551   :  { %v3043_v41 = vpack.c.bf16 %v3042_v38, %v3042_v38  ;;  %v7584_v38 = vld [vmem:[%s10566_s22] ss:$76 sps:$4 sm:$0xff]  }
 0x553   :  { %6951 = vmatmul.mubr.bf16.vlgmr.msra.gmra.mxu1 %v3043_v41  ;;  %v7592_v41 = vld [vmem:[%s10566_s22 + $0x8ec] ss:$76 sps:$4 sm:$0xff]  }
 0x554   :  { %6990 = vmatprep.mubr.msk.bf16.mxu1 %vm8039_vm1, %v8038_v37  ;;  %6975 = vmatpush3.bf16.msra.mxu1 %v7510_v45  ;;  %v7596_v45 = vld [vmem:[%s10566_s22 + $0x850] ss:$76 sps:$4 sm:$0xff]  }
 0x555   :  { %6976 = vmatprep.subr.bf16.mxu1 %v8038_v37 }
 0x558   :  { %6977 = vmatpush3.bf16.msra.mxu1 %v7511_v46  ;;  %v7604_v46 = vld [vmem:[%s10566_s22 + $0x7bc] ss:$76 sps:$4 sm:$0xff]  }
 0x559   :  { %6978 = vmatprep.subr.bf16.mxu1 %v8038_v37 }
 0x55c   :  { %6979 = vmatpush3.bf16.msra.mxu1 %v7512_v47  ;;  %v7602_v47 = vld [vmem:[%s10566_s22 + $0x7b8] ss:$76 sps:$4 sm:$0xff]  }
 0x55d   :  { %6980 = vmatprep.subr.bf16.mxu1 %v8038_v37 }
 0x560   :  { %6981 = vmatpush3.bf16.msra.mxu1 %v7513_v49  ;;  %v7610_v49 = vld [vmem:[%s10566_s22 + $0x724] ss:$76 sps:$4 sm:$0xff]  }
 0x561   :  { %6982 = vmatprep.subr.bf16.mxu1 %v8038_v37 }
 0x564   :  { %6983 = vmatpush3.bf16.msra.mxu1 %v7514_v50  ;;  %v7608_v50 = vld [vmem:[%s10566_s22 + $0x720] ss:$76 sps:$4 sm:$0xff]  }
 0x565   :  { %6984 = vmatprep.subr.bf16.mxu1 %v8038_v37 }
 0x568   :  { %6985 = vmatpush3.bf16.msra.mxu1 %v7515_v51  ;;  %v7616_v51 = vld [vmem:[%s10566_s22 + $0x68c] ss:$76 sps:$4 sm:$0xff]  }
 0x569   :  { %6986 = vmatprep.subr.bf16.mxu1 %v8038_v37 }
 0x56c   :  { %6987 = vmatpush3.bf16.msra.mxu1 %v7516_v60 }
 0x56d   :  { %6988 = vmatprep.subr.bf16.mxu1 %v8038_v37  ;;  %v7521_v37 = vld [vmem:[%s10564_s20 + $0x60] ss:$8 sps:$4 sm:$0xff]  }
 0x570   :  { %6989 = vmatpush3.bf16.msra.mxu1 %v7517_v61  ;;  %v7545_v61 = vld [vmem:[%s10566_s22 + $0x430] ss:$76 sps:$4 sm:$0xff]  }
 0x571   :  { %5493 = vmatprep.subr.bf16.mxu1 %v7544_v20  ;;  %v7617_v20 = vld [vmem:[%s10566_s22 + $0x690] ss:$76 sps:$4 sm:$0xff]  }
 0x613   :  { %v3149_v53 = vpop.f32.mrf.mxu1 }
 0x614   :  { %v3150_v34 = vadd.f32 %v6400_v52, %v3149_v53  ;;  %v7614_v52 = vld [vmem:[%s10566_s22 + $0x688] ss:$76 sps:$4 sm:$0xff]  }
 0x615   :  { %v6952_v55 = vpop.f32.mrf.mxu1  ;;  %v7622_v53 = vld [vmem:[%s10566_s22 + $0x5f4] ss:$76 sps:$4 sm:$0xff]  }
 0x616   :  { %v3155_v56 = vmax.f32 %v3150_v34, 0.0  ;;  %v7620_v34 = vld [vmem:[%s10566_s22 + $0x5f0] ss:$76 sps:$4 sm:$0xff]   ;;  %v6418_v55 = vld [vmem:[%s10563_s19] ss:$0 sm:$0xff] }
 0x617   :  { %v3152_v39 = vpop.f32.mrf.mxu1 }
 0x618   :  { %v3156_v57 = vpack.c.bf16 %v3155_v56, %v3155_v56 }
 0x619   :  { %v6953_v59 = vpop.f32.mrf.mxu1 }
 0x61a   :  { %6971 = vmatmul.mubr.bf16.vlgmr.msra.gmra.mxu0 %v3156_v57 }
 0x61b   :  { %3523 = vmatprep.mubr.bf16.mxu0 %v8037_v17  ;;  %v7520_v17 = vld [vmem:[%s10564_s20 + $0x74] ss:$8 sps:$4 sm:$0xff]   ;;  %s7992_s20 = scalar_lea.vmem %s6029_s6, 32 }
 0x61c   :  { %3491 = vmatprep.subr.bf16.mxu0 %v7520_v17  ;;  %v7553_v17 = vld [vmem:[%s10566_s22 + $0x39c] ss:$76 sps:$4 sm:$0xff]   ;;  %p7993_p0 = scmp.ne.s32.totalorder %s6029_s6, %s7992_s20  ;;  %p7998_p2 = scmp.lt.s32.totalorder %s7992_s20, %s7992_s20 }
 0x61d   :  { %3492 = vmatpush1.bf16.msra.mxu0 %v7518_v63 }
 0x61e   :  { %3493 = vmatprep.subr.bf16.mxu0 %v7523_v0  ;;  %p7999_p3 = por %p7998_p2, %p7997_p1 }
 0x620   :  { %p8000_p4 = pnand %p7999_p3, %p7993_p0 }
 0x621   :  { %3494 = vmatpush1.bf16.msra.mxu0 %v7521_v37  ;;  %v7551_v37 = vld [vmem:[%s10566_s22 + $0x398] ss:$76 sps:$4 sm:$0xff]  }
 0x622   :  { %3495 = vmatprep.subr.bf16.mxu0 %v7526_v1  ;;  %v7559_v1 = vld [vmem:[%s10566_s22 + $0x304] ss:$76 sps:$4 sm:$0xff]  }
 0x625   :  { %3496 = vmatpush1.bf16.msra.mxu0 %v7524_v2  ;;  %v7557_v2 = vld [vmem:[%s10566_s22 + $0x300] ss:$76 sps:$4 sm:$0xff]  }
 0x626   :  { %3497 = vmatprep.subr.bf16.mxu0 %v7529_v3  ;;  %v7565_v3 = vld [vmem:[%s10566_s22 + $0x26c] ss:$76 sps:$4 sm:$0xff]  }
 0x629   :  { %3498 = vmatpush1.bf16.msra.mxu0 %v7527_v4  ;;  %v7563_v4 = vld [vmem:[%s10566_s22 + $0x268] ss:$76 sps:$4 sm:$0xff]  }
 0x62a   :  { %3499 = vmatprep.subr.bf16.mxu0 %v7532_v36  ;;  %v7571_v36 = vld [vmem:[%s10566_s22 + $0x1d4] ss:$76 sps:$4 sm:$0xff]  }
 0x62d   :  { %3500 = vmatpush1.bf16.msra.mxu0 %v7530_v5  ;;  %v7569_v5 = vld [vmem:[%s10566_s22 + $0x1d0] ss:$76 sps:$4 sm:$0xff]  }
 0x62e   :  { %3501 = vmatprep.subr.bf16.mxu0 %v7535_v6  ;;  %v7577_v6 = vld [vmem:[%s10566_s22 + $0x13c] ss:$76 sps:$4 sm:$0xff]  }
 0x631   :  { %3502 = vmatpush1.bf16.msra.mxu0 %v7533_v7  ;;  %v7575_v7 = vld [vmem:[%s10566_s22 + $0x138] ss:$76 sps:$4 sm:$0xff]  }
 0x632   :  { %3503 = vmatprep.subr.bf16.mxu0 %v7538_v54  ;;  %v7583_v54 = vld [vmem:[%s10566_s22 + $0xa4] ss:$76 sps:$4 sm:$0xff]  }
 0x635   :  { %3504 = vmatpush1.bf16.msra.mxu0 %v7536_v8  ;;  %v7581_v8 = vld [vmem:[%s10566_s22 + $0xa0] ss:$76 sps:$4 sm:$0xff]  }
 0x636   :  { %3505 = vmatprep.subr.bf16.mxu0 %v7541_v16  ;;  %v7613_v16 = vld [vmem:[%s10566_s22 + $0x72c] ss:$76 sps:$4 sm:$0xff]  }
 0x639   :  { %3506 = vmatpush1.bf16.msra.mxu0 %v7539_v18  ;;  %v7611_v18 = vld [vmem:[%s10566_s22 + $0x728] ss:$76 sps:$4 sm:$0xff]  }
 0x63a   :  { %5534 = vmatprep.subr.bf16.mxu0 %v7547_v21  ;;  %v7625_v21 = vld [vmem:[%s10566_s22 + $0x5fc] ss:$76 sps:$4 sm:$0xff]  }
 0x6da   :  { %v3262_v40 = vpop.f32.mrf.mxu0 }
 0x6db   :  { %v3263_v10 = vadd.f32 %v6409_v9, %v3262_v40  ;;  %v7589_v9 = vld [vmem:[%s10566_s22 + $0xc] ss:$76 sps:$4 sm:$0xff]   ;;  %v7587_v40 = vld [vmem:[%s10566_s22 + $0x8] ss:$76 sps:$4 sm:$0xff]  }
 0x6dc   :  { %v6972_v11 = vpop.f32.mrf.mxu0 }
 0x6dd   :  { %v3268_v12 = vmax.f32 %v3263_v10, 0.0  ;;  %v7595_v10 = vld [vmem:[%s10566_s22 + $0x8f4] ss:$76 sps:$4 sm:$0xff]   ;;  %v7593_v11 = vld [vmem:[%s10566_s22 + $0x8f0] ss:$76 sps:$4 sm:$0xff]  }
 0x6de   :  { %v3265_v13 = vpop.f32.mrf.mxu0 }
 0x6df   :  { %v3269_v14 = vpack.c.bf16 %v3268_v12, %v3268_v12  ;;  %v7601_v12 = vld [vmem:[%s10566_s22 + $0x85c] ss:$76 sps:$4 sm:$0xff]   ;;  %v7599_v13 = vld [vmem:[%s10566_s22 + $0x858] ss:$76 sps:$4 sm:$0xff]  }
 0x6e0   :  { %v6973_v15 = vpop.f32.mrf.mxu0 }
 0x6e1   :  { %6991 = vmatmul.mubr.bf16.vlgmr.msra.gmra.mxu1 %v3269_v14  ;;  %v7607_v14 = vld [vmem:[%s10566_s22 + $0x7c4] ss:$76 sps:$4 sm:$0xff]   ;;  %v7605_v15 = vld [vmem:[%s10566_s22 + $0x7c0] ss:$76 sps:$4 sm:$0xff]  }
 0x6e2   :  { %5494 = vmatpush1.bf16.msra.mxu1 %v7542_v19  ;;  %v7619_v19 = vld [vmem:[%s10566_s22 + $0x694] ss:$76 sps:$4 sm:$0xff]  }
 0x6e3   :  { %5495 = vmatprep.subr.bf16.mxu1 %v7550_v22  ;;  %v7623_v22 = vld [vmem:[%s10566_s22 + $0x5f8] ss:$76 sps:$4 sm:$0xff]  }
 0x6e6   :  { %5496 = vmatpush1.bf16.msra.mxu1 %v7548_v23  ;;  %v7628_v23 = vld [vmem:[%s10566_s22 + $0x55c] ss:$76 sps:$4 sm:$0xff]  }
 0x6e7   :  { %5497 = vmatprep.subr.bf16.mxu1 %v7556_v24  ;;  %v7631_v24 = vld [vmem:[%s10566_s22 + $0x564] ss:$76 sps:$4 sm:$0xff]  }
 0x6ea   :  { %5498 = vmatpush1.bf16.msra.mxu1 %v7554_v25  ;;  %v7626_v25 = vld [vmem:[%s10566_s22 + $0x558] ss:$76 sps:$4 sm:$0xff]  }
 0x6eb   :  { %5499 = vmatprep.subr.bf16.mxu1 %v7562_v26  ;;  %v7629_v26 = vld [vmem:[%s10566_s22 + $0x560] ss:$76 sps:$4 sm:$0xff]  }
 0x6ee   :  { %5500 = vmatpush1.bf16.msra.mxu1 %v7560_v27  ;;  %v7634_v27 = vld [vmem:[%s10566_s22 + $0x4c4] ss:$76 sps:$4 sm:$0xff]  }
 0x6ef   :  { %5501 = vmatprep.subr.bf16.mxu1 %v7568_v28  ;;  %v7637_v28 = vld [vmem:[%s10566_s22 + $0x4cc] ss:$76 sps:$4 sm:$0xff]  }
 0x6f2   :  { %5502 = vmatpush1.bf16.msra.mxu1 %v7566_v29  ;;  %v7632_v29 = vld [vmem:[%s10566_s22 + $0x4c0] ss:$76 sps:$4 sm:$0xff]  }
 0x6f3   :  { %5503 = vmatprep.subr.bf16.mxu1 %v7574_v30  ;;  %v7635_v30 = vld [vmem:[%s10566_s22 + $0x4c8] ss:$76 sps:$4 sm:$0xff]  }
 0x6f6   :  { %5504 = vmatpush1.bf16.msra.mxu1 %v7572_v31  ;;  %v7640_v31 = vld [vmem:[%s10566_s22 + $0x43c] ss:$76 sps:$4 sm:$0xff]  }
 0x6f7   :  { %5505 = vmatprep.subr.bf16.mxu1 %v7580_v32  ;;  %v7643_v32 = vld [vmem:[%s10566_s22 + $0x444] ss:$76 sps:$4 sm:$0xff]  }
 0x6fa   :  { %5506 = vmatpush1.bf16.msra.mxu1 %v7578_v33  ;;  %v3399_v33 = vld [vmem:[%s10565_s21] sm:$0x3] }
 0x6fb   :  { %5507 = vmatprep.subr.bf16.mxu1 %v7586_v35  ;;  %v3404_v35 = vrot.slane %v3399_v33, %v9018_v58 }
 0x6fe   :  { %5508 = vmatpush1.bf16.msra.mxu1 %v7584_v38  ;;  %v3408_v38 = vrot.slane %v3399_v33, %v9029_v62  ;;  %v7715_v33 = vld [vmem:[%s10566_s22 + $0x6a4] ss:$76 sps:$4 sm:$0xff]  }
 0x6ff   :  { %5509 = vmatprep.subr.bf16.mxu1 %v7592_v41 }
 0x702   :  { %5510 = vmatpush2.bf16.msra.mxu1 %v7590_v42 }
 0x703   :  { %5511 = vmatprep.subr.bf16.mxu1 %v7598_v44 }
 0x706   :  { %5512 = vmatpush2.bf16.msra.mxu1 %v7596_v45 }
 0x707   :  { %5513 = vmatprep.subr.bf16.mxu1 %v7604_v46 }
 0x70a   :  { %5514 = vmatpush2.bf16.msra.mxu1 %v7602_v47 }
 0x70b   :  { %5515 = vmatprep.subr.bf16.mxu1 %v7610_v49 }
 0x70e   :  { %5516 = vmatpush2.bf16.msra.mxu1 %v7608_v50 }
 0x70f   :  { %5517 = vmatprep.subr.bf16.mxu1 %v7616_v51 }
 0x712   :  { %5518 = vmatpush2.bf16.msra.mxu1 %v7614_v52  ;;  %v7638_v52 = vld [vmem:[%s10566_s22 + $0x438] ss:$76 sps:$4 sm:$0xff]  }
 0x713   :  { %5519 = vmatprep.subr.bf16.mxu1 %v7622_v53  ;;  %v7641_v53 = vld [vmem:[%s10566_s22 + $0x440] ss:$76 sps:$4 sm:$0xff]  }
 0x716   :  { %5520 = vmatpush2.bf16.msra.mxu1 %v7620_v34 }
 0x717   :  { %5521 = vmatprep.subr.bf16.mxu1 %v7628_v23  ;;  %v7695_v23 = vld [vmem:[%s10566_s22 + $0x868] ss:$76 sps:$4 sm:$0xff]  }
 0x71a   :  { %5522 = vmatpush2.bf16.msra.mxu1 %v7626_v25  ;;  %v7703_v25 = vld [vmem:[%s10566_s22 + $0x7d4] ss:$76 sps:$4 sm:$0xff]  }
 0x71b   :  { %5523 = vmatprep.subr.bf16.mxu1 %v7634_v27  ;;  %v7701_v27 = vld [vmem:[%s10566_s22 + $0x7d0] ss:$76 sps:$4 sm:$0xff]  }
 0x71e   :  { %5524 = vmatpush2.bf16.msra.mxu1 %v7632_v29  ;;  %v7709_v29 = vld [vmem:[%s10566_s22 + $0x73c] ss:$76 sps:$4 sm:$0xff]  }
 0x71f   :  { %5575 = vmatprep.subr.bf16.mxu1 %v7640_v31  ;;  %v7707_v31 = vld [vmem:[%s10566_s22 + $0x738] ss:$76 sps:$4 sm:$0xff]  }
 0x7a1   :  { %v3375_v56 = vpop.f32.mrf.mxu1 }
 0x7a2   :  { %v3376_v39 = vadd.f32 %v6418_v55, %v3375_v56  ;;  %v7646_v55 = vld [vmem:[%s10566_s22 + $0x3a4] ss:$76 sps:$4 sm:$0xff]   ;;  %v7649_v56 = vld [vmem:[%s10566_s22 + $0x3ac] ss:$76 sps:$4 sm:$0xff]  }
 0x7a3   :  { %v6992_v57 = vpop.f32.mrf.mxu1 }
 0x7a4   :  { %v3381_v59 = vmax.f32 %v3376_v39, 0.0  ;;  %v7644_v39 = vld [vmem:[%s10566_s22 + $0x3a0] ss:$76 sps:$4 sm:$0xff]   ;;  %v7647_v57 = vld [vmem:[%s10566_s22 + $0x3a8] ss:$76 sps:$4 sm:$0xff]  }
 0x7a5   :  { %v3378_v60 = vpop.f32.mrf.mxu1 }
 0x7a6   :  { %v3382_v63 = vpack.c.bf16 %v3381_v59, %v3381_v59  ;;  %v7652_v59 = vld [vmem:[%s10566_s22 + $0x30c] ss:$76 sps:$4 sm:$0xff]   ;;  %v7655_v60 = vld [vmem:[%s10566_s22 + $0x314] ss:$76 sps:$4 sm:$0xff]  }
 0x7a7   :  { %v6993_v0 = vpop.f32.mrf.mxu1 }
 0x7a8   :  { %3524 = vmatmul.mubr.bf16.vlgmr.msra.gmra.mxu0 %v3382_v63  ;;  %v7653_v63 = vld [vmem:[%s10566_s22 + $0x310] ss:$76 sps:$4 sm:$0xff]  }
 0x7a9   :  { %5535 = vmatpush1.bf16.msra.mxu0 %v7545_v61  ;;  %v7650_v61 = vld [vmem:[%s10566_s22 + $0x308] ss:$76 sps:$4 sm:$0xff]  }
 0x7aa   :  { %5536 = vmatprep.subr.bf16.mxu0 %v7553_v17  ;;  %v7658_v17 = vld [vmem:[%s10566_s22 + $0x274] ss:$76 sps:$4 sm:$0xff]   ;;  %v7661_v0 = vld [vmem:[%s10566_s22 + $0x27c] ss:$76 sps:$4 sm:$0xff]  }
 0x7ad   :  { %5537 = vmatpush1.bf16.msra.mxu0 %v7551_v37  ;;  %v7656_v37 = vld [vmem:[%s10566_s22 + $0x270] ss:$76 sps:$4 sm:$0xff]  }
 0x7ae   :  { %5538 = vmatprep.subr.bf16.mxu0 %v7559_v1  ;;  %v7659_v1 = vld [vmem:[%s10566_s22 + $0x278] ss:$76 sps:$4 sm:$0xff]  }
 0x7b1   :  { %5539 = vmatpush1.bf16.msra.mxu0 %v7557_v2  ;;  %v7664_v2 = vld [vmem:[%s10566_s22 + $0x1dc] ss:$76 sps:$4 sm:$0xff]  }
 0x7b2   :  { %5540 = vmatprep.subr.bf16.mxu0 %v7565_v3  ;;  %v7667_v3 = vld [vmem:[%s10566_s22 + $0x1e4] ss:$76 sps:$4 sm:$0xff]  }
 0x7b5   :  { %5541 = vmatpush1.bf16.msra.mxu0 %v7563_v4  ;;  %v7662_v4 = vld [vmem:[%s10566_s22 + $0x1d8] ss:$76 sps:$4 sm:$0xff]  }
 0x7b6   :  { %5542 = vmatprep.subr.bf16.mxu0 %v7571_v36  ;;  %v7665_v36 = vld [vmem:[%s10566_s22 + $0x1e0] ss:$76 sps:$4 sm:$0xff]  }
 0x7b9   :  { %5543 = vmatpush1.bf16.msra.mxu0 %v7569_v5  ;;  %v7670_v5 = vld [vmem:[%s10566_s22 + $0x144] ss:$76 sps:$4 sm:$0xff]  }
 0x7ba   :  { %5544 = vmatprep.subr.bf16.mxu0 %v7577_v6  ;;  %v7673_v6 = vld [vmem:[%s10566_s22 + $0x14c] ss:$76 sps:$4 sm:$0xff]  }
 0x7bd   :  { %5545 = vmatpush1.bf16.msra.mxu0 %v7575_v7  ;;  %v7668_v7 = vld [vmem:[%s10566_s22 + $0x140] ss:$76 sps:$4 sm:$0xff]  }
 0x7be   :  { %5546 = vmatprep.subr.bf16.mxu0 %v7583_v54  ;;  %v7671_v54 = vld [vmem:[%s10566_s22 + $0x148] ss:$76 sps:$4 sm:$0xff]  }
 0x7c1   :  { %5547 = vmatpush1.bf16.msra.mxu0 %v7581_v8  ;;  %v7676_v8 = vld [vmem:[%s10566_s22 + $0xac] ss:$76 sps:$4 sm:$0xff]  }
 0x7c2   :  { %5548 = vmatprep.subr.bf16.mxu0 %v7589_v9  ;;  %v7679_v9 = vld [vmem:[%s10566_s22 + $0xb4] ss:$76 sps:$4 sm:$0xff]  }
 0x7c5   :  { %5549 = vmatpush1.bf16.msra.mxu0 %v7587_v40  ;;  %v7674_v40 = vld [vmem:[%s10566_s22 + $0xa8] ss:$76 sps:$4 sm:$0xff]  }
 0x7c6   :  { %5550 = vmatprep.subr.bf16.mxu0 %v7595_v10  ;;  %v7677_v10 = vld [vmem:[%s10566_s22 + $0xb0] ss:$76 sps:$4 sm:$0xff]  }
 0x7c9   :  { %5551 = vmatpush2.bf16.msra.mxu0 %v7593_v11  ;;  %v7682_v11 = vld [vmem:[%s10566_s22 + $0x14] ss:$76 sps:$4 sm:$0xff]  }
 0x7ca   :  { %5552 = vmatprep.subr.bf16.mxu0 %v7601_v12  ;;  %v7685_v12 = vld [vmem:[%s10566_s22 + $0x1c] ss:$76 sps:$4 sm:$0xff]  }
 0x7cd   :  { %5553 = vmatpush2.bf16.msra.mxu0 %v7599_v13  ;;  %v7680_v13 = vld [vmem:[%s10566_s22 + $0x10] ss:$76 sps:$4 sm:$0xff]  }
 0x7ce   :  { %5554 = vmatprep.subr.bf16.mxu0 %v7607_v14  ;;  %v7683_v14 = vld [vmem:[%s10566_s22 + $0x18] ss:$76 sps:$4 sm:$0xff]  }
 0x7d1   :  { %5555 = vmatpush2.bf16.msra.mxu0 %v7605_v15  ;;  %v7688_v15 = vld [vmem:[%s10566_s22 + $0x8fc] ss:$76 sps:$4 sm:$0xff]  }
 0x7d2   :  { %5556 = vmatprep.subr.bf16.mxu0 %v7613_v16  ;;  %v7691_v16 = vld [vmem:[%s10566_s22 + $0x904] ss:$76 sps:$4 sm:$0xff]  }
 0x7d5   :  { %5557 = vmatpush2.bf16.msra.mxu0 %v7611_v18  ;;  %v7686_v18 = vld [vmem:[%s10566_s22 + $0x8f8] ss:$76 sps:$4 sm:$0xff]  }
 0x7d6   :  { %5558 = vmatprep.subr.bf16.mxu0 %v7619_v19  ;;  %v7689_v19 = vld [vmem:[%s10566_s22 + $0x900] ss:$76 sps:$4 sm:$0xff]  }
 0x7d9   :  { %5559 = vmatpush2.bf16.msra.mxu0 %v7617_v20  ;;  %v7694_v20 = vld [vmem:[%s10566_s22 + $0x864] ss:$76 sps:$4 sm:$0xff]  }
 0x7da   :  { %5560 = vmatprep.subr.bf16.mxu0 %v7625_v21  ;;  %v7697_v21 = vld [vmem:[%s10566_s22 + $0x86c] ss:$76 sps:$4 sm:$0xff]  }
 0x7dd   :  { %5561 = vmatpush2.bf16.msra.mxu0 %v7623_v22  ;;  %v7692_v22 = vld [vmem:[%s10566_s22 + $0x860] ss:$76 sps:$4 sm:$0xff]  }
 0x7de   :  { %5562 = vmatprep.subr.bf16.mxu0 %v7631_v24  ;;  %v7700_v24 = vld [vmem:[%s10566_s22 + $0x7cc] ss:$76 sps:$4 sm:$0xff]  }
 0x7e1   :  { %5563 = vmatpush2.bf16.msra.mxu0 %v7629_v26  ;;  %v7698_v26 = vld [vmem:[%s10566_s22 + $0x7c8] ss:$76 sps:$4 sm:$0xff]  }
 0x7e2   :  { %5564 = vmatprep.subr.bf16.mxu0 %v7637_v28  ;;  %v7706_v28 = vld [vmem:[%s10566_s22 + $0x734] ss:$76 sps:$4 sm:$0xff]  }
 0x7e5   :  { %5565 = vmatpush2.bf16.msra.mxu0 %v7635_v30  ;;  %v7704_v30 = vld [vmem:[%s10566_s22 + $0x730] ss:$76 sps:$4 sm:$0xff]  }
 0x7e6   :  { %5616 = vmatprep.subr.bf16.mxu0 %v7643_v32  ;;  %v7712_v32 = vld [vmem:[%s10566_s22 + $0x69c] ss:$76 sps:$4 sm:$0xff]  }
 0x868   :  { %v3525_v41 = vpop.f32.mrf.mxu0 }
 0x869   :  { %v3526_v42 = vadd.f32 %v3525_v41, %v3404_v35  ;;  %v7710_v35 = vld [vmem:[%s10566_s22 + $0x698] ss:$76 sps:$4 sm:$0xff]  }
 0x86a   :  { %v3527_v44 = vpop.f32.mrf.mxu0  ;;  %v7718_v41 = vld [vmem:[%s10566_s22 + $0x604] ss:$76 sps:$4 sm:$0xff]  }
 0x86b   :  { %v3528_v45 = vadd.f32 %v3527_v44, %v3408_v38  ;;  %v3532_v46 = vmax.f32 %v3526_v42, 0.0  ;;  %v7713_v38 = vld [vmem:[%s10566_s22 + $0x6a0] ss:$76 sps:$4 sm:$0xff]  }
 0x86c   :  { %v3529_v47 = vpop.f32.mrf.mxu0  ;;  %v7721_v42 = vld [vmem:[%s10566_s22 + $0x60c] ss:$76 sps:$4 sm:$0xff]  }
 0x86d   :  { %v3533_v49 = vmax.f32 %v3528_v45, 0.0  ;;  %v9727_v34 = vpack.c.bf16 %v3532_v46, %v3532_v46  ;;  %v7716_v44 = vld [vmem:[%s10566_s22 + $0x600] ss:$76 sps:$4 sm:$0xff]   ;;  %v7719_v45 = vld [vmem:[%s10566_s22 + $0x608] ss:$76 sps:$4 sm:$0xff]  }
 0x86e   :  { %v3530_v50 = vpop.f32.mrf.mxu0  ;;  %v7724_v46 = vld [vmem:[%s10566_s22 + $0x56c] ss:$76 sps:$4 sm:$0xff]   ;;  %v7727_v47 = vld [vmem:[%s10566_s22 + $0x574] ss:$76 sps:$4 sm:$0xff]  }
 0x86f   :  { %v9719_v51 = vpack.c.bf16 %v3533_v49, %v3533_v49  ;;  %v7722_v49 = vld [vmem:[%s10566_s22 + $0x568] ss:$76 sps:$4 sm:$0xff]   ;;  %v7725_v50 = vld [vmem:[%s10566_s22 + $0x570] ss:$76 sps:$4 sm:$0xff]  }
 0x871   :  { %5525 = vmatprep.mubr.bf16.mxu1 %v9719_v51  ;;  %5566 = vmatprep.mubr.bf16.mxu0 %v9719_v51 }
 0x872   :  { %5526 = vmatmul.mubr.bf16.vlgmr.msra.gmra.mxu1 %v9727_v34  ;;  %5567 = vmatmul.mubr.bf16.vlgmr.msra.gmra.mxu0 %v9727_v34 }
 0x873   :  { %5576 = vmatpush1.bf16.msra.mxu1 %v7638_v52  ;;  %5617 = vmatpush1.bf16.msra.mxu0 %v7641_v53  ;;  %v7730_v52 = vld [vmem:[%s10566_s22 + $0x4d4] ss:$76 sps:$4 sm:$0xff]   ;;  %v7733_v53 = vld [vmem:[%s10566_s22 + $0x4dc] ss:$76 sps:$4 sm:$0xff]  }
 0x874   :  { %5607 = vmatprep.mubr.bf16.mxu1 %v9719_v51  ;;  %5648 = vmatprep.mubr.bf16.mxu0 %v9719_v51 }
 0x875   :  { %5577 = vmatprep.subr.bf16.mxu1 %v7646_v55  ;;  %5618 = vmatprep.subr.bf16.mxu0 %v7649_v56  ;;  %v7728_v55 = vld [vmem:[%s10566_s22 + $0x4d0] ss:$76 sps:$4 sm:$0xff]   ;;  %v7731_v56 = vld [vmem:[%s10566_s22 + $0x4d8] ss:$76 sps:$4 sm:$0xff]  }
 0x877   :  { %5578 = vmatpush1.bf16.msra.mxu1 %v7644_v39  ;;  %5619 = vmatpush1.bf16.msra.mxu0 %v7647_v57  ;;  %v7736_v39 = vld [vmem:[%s10566_s22 + $0x44c] ss:$76 sps:$4 sm:$0xff]   ;;  %v7739_v57 = vld [vmem:[%s10566_s22 + $0x454] ss:$76 sps:$4 sm:$0xff]  }
 0x878   :  { %5579 = vmatprep.subr.bf16.mxu1 %v7652_v59  ;;  %5620 = vmatprep.subr.bf16.mxu0 %v7655_v60  ;;  %v7734_v59 = vld [vmem:[%s10566_s22 + $0x448] ss:$76 sps:$4 sm:$0xff]   ;;  %v7737_v60 = vld [vmem:[%s10566_s22 + $0x450] ss:$76 sps:$4 sm:$0xff]  }
 0x87b   :  { %5580 = vmatpush1.bf16.msra.mxu1 %v7650_v61  ;;  %5621 = vmatpush1.bf16.msra.mxu0 %v7653_v63  ;;  %v7742_v61 = vld [vmem:[%s10566_s22 + $0x3b4] ss:$76 sps:$4 sm:$0xff]   ;;  %v7745_v63 = vld [vmem:[%s10566_s22 + $0x3bc] ss:$76 sps:$4 sm:$0xff]  }
 0x87c   :  { %5581 = vmatprep.subr.bf16.mxu1 %v7658_v17  ;;  %5622 = vmatprep.subr.bf16.mxu0 %v7661_v0  ;;  %v7740_v17 = vld [vmem:[%s10566_s22 + $0x3b0] ss:$76 sps:$4 sm:$0xff]   ;;  %v7743_v0 = vld [vmem:[%s10566_s22 + $0x3b8] ss:$76 sps:$4 sm:$0xff]  }
 0x87f   :  { %5582 = vmatpush1.bf16.msra.mxu1 %v7656_v37  ;;  %5623 = vmatpush1.bf16.msra.mxu0 %v7659_v1  ;;  %v7748_v37 = vld [vmem:[%s10566_s22 + $0x31c] ss:$76 sps:$4 sm:$0xff]   ;;  %v7751_v1 = vld [vmem:[%s10566_s22 + $0x324] ss:$76 sps:$4 sm:$0xff]  }
 0x880   :  { %5583 = vmatprep.subr.bf16.mxu1 %v7664_v2  ;;  %5624 = vmatprep.subr.bf16.mxu0 %v7667_v3  ;;  %v7746_v2 = vld [vmem:[%s10566_s22 + $0x318] ss:$76 sps:$4 sm:$0xff]   ;;  %v7749_v3 = vld [vmem:[%s10566_s22 + $0x320] ss:$76 sps:$4 sm:$0xff]  }
 0x883   :  { %5584 = vmatpush1.bf16.msra.mxu1 %v7662_v4  ;;  %5625 = vmatpush1.bf16.msra.mxu0 %v7665_v36  ;;  %v7754_v4 = vld [vmem:[%s10566_s22 + $0x284] ss:$76 sps:$4 sm:$0xff]   ;;  %v7757_v36 = vld [vmem:[%s10566_s22 + $0x28c] ss:$76 sps:$4 sm:$0xff]  }
 0x884   :  { %5585 = vmatprep.subr.bf16.mxu1 %v7670_v5  ;;  %5626 = vmatprep.subr.bf16.mxu0 %v7673_v6  ;;  %v7752_v5 = vld [vmem:[%s10566_s22 + $0x280] ss:$76 sps:$4 sm:$0xff]   ;;  %v7755_v6 = vld [vmem:[%s10566_s22 + $0x288] ss:$76 sps:$4 sm:$0xff]  }
 0x887   :  { %5586 = vmatpush1.bf16.msra.mxu1 %v7668_v7  ;;  %5627 = vmatpush1.bf16.msra.mxu0 %v7671_v54  ;;  %v7760_v7 = vld [vmem:[%s10566_s22 + $0x1ec] ss:$76 sps:$4 sm:$0xff]   ;;  %v7763_v54 = vld [vmem:[%s10566_s22 + $0x1f4] ss:$76 sps:$4 sm:$0xff]  }
 0x888   :  { %5587 = vmatprep.subr.bf16.mxu1 %v7676_v8  ;;  %5628 = vmatprep.subr.bf16.mxu0 %v7679_v9  ;;  %v7758_v8 = vld [vmem:[%s10566_s22 + $0x1e8] ss:$76 sps:$4 sm:$0xff]   ;;  %v7761_v9 = vld [vmem:[%s10566_s22 + $0x1f0] ss:$76 sps:$4 sm:$0xff]  }
 0x88b   :  { %5588 = vmatpush1.bf16.msra.mxu1 %v7674_v40  ;;  %5629 = vmatpush1.bf16.msra.mxu0 %v7677_v10  ;;  %v7766_v40 = vld [vmem:[%s10566_s22 + $0x154] ss:$76 sps:$4 sm:$0xff]   ;;  %v7769_v10 = vld [vmem:[%s10566_s22 + $0x15c] ss:$76 sps:$4 sm:$0xff]  }
 0x88c   :  { %5589 = vmatprep.subr.bf16.mxu1 %v7682_v11  ;;  %5630 = vmatprep.subr.bf16.mxu0 %v7685_v12  ;;  %v7764_v11 = vld [vmem:[%s10566_s22 + $0x150] ss:$76 sps:$4 sm:$0xff]   ;;  %v7767_v12 = vld [vmem:[%s10566_s22 + $0x158] ss:$76 sps:$4 sm:$0xff]  }
 0x88f   :  { %5590 = vmatpush1.bf16.msra.mxu1 %v7680_v13  ;;  %5631 = vmatpush1.bf16.msra.mxu0 %v7683_v14  ;;  %v7772_v13 = vld [vmem:[%s10566_s22 + $0xbc] ss:$76 sps:$4 sm:$0xff]   ;;  %v7775_v14 = vld [vmem:[%s10566_s22 + $0xc4] ss:$76 sps:$4 sm:$0xff]  }
 0x890   :  { %5591 = vmatprep.subr.bf16.mxu1 %v7688_v15  ;;  %5632 = vmatprep.subr.bf16.mxu0 %v7691_v16  ;;  %v7770_v15 = vld [vmem:[%s10566_s22 + $0xb8] ss:$76 sps:$4 sm:$0xff]   ;;  %v7773_v16 = vld [vmem:[%s10566_s22 + $0xc0] ss:$76 sps:$4 sm:$0xff]  }
 0x893   :  { %5592 = vmatpush2.bf16.msra.mxu1 %v7686_v18  ;;  %5633 = vmatpush2.bf16.msra.mxu0 %v7689_v19  ;;  %v7778_v18 = vld [vmem:[%s10566_s22 + $0x24] ss:$76 sps:$4 sm:$0xff]   ;;  %v7781_v19 = vld [vmem:[%s10566_s22 + $0x2c] ss:$76 sps:$4 sm:$0xff]  }
 0x894   :  { %5593 = vmatprep.subr.bf16.mxu1 %v7694_v20  ;;  %5634 = vmatprep.subr.bf16.mxu0 %v7697_v21  ;;  %v7776_v20 = vld [vmem:[%s10566_s22 + $0x20] ss:$76 sps:$4 sm:$0xff]   ;;  %v7779_v21 = vld [vmem:[%s10566_s22 + $0x28] ss:$76 sps:$4 sm:$0xff]  }
 0x897   :  { %5594 = vmatpush2.bf16.msra.mxu1 %v7692_v22  ;;  %5635 = vmatpush2.bf16.msra.mxu0 %v7695_v23  ;;  %v7784_v22 = vld [vmem:[%s10566_s22 + $0x90c] ss:$76 sps:$4 sm:$0xff]   ;;  %v7787_v23 = vld [vmem:[%s10566_s22 + $0x914] ss:$76 sps:$4 sm:$0xff]  }
 0x898   :  { %5595 = vmatprep.subr.bf16.mxu1 %v7700_v24  ;;  %5636 = vmatprep.subr.bf16.mxu0 %v7703_v25  ;;  %v7782_v24 = vld [vmem:[%s10566_s22 + $0x908] ss:$76 sps:$4 sm:$0xff]   ;;  %v7785_v25 = vld [vmem:[%s10566_s22 + $0x910] ss:$76 sps:$4 sm:$0xff]  }
 0x89b   :  { %5596 = vmatpush2.bf16.msra.mxu1 %v7698_v26  ;;  %5637 = vmatpush2.bf16.msra.mxu0 %v7701_v27  ;;  %v7790_v26 = vld [vmem:[%s10566_s22 + $0x874] ss:$76 sps:$4 sm:$0xff]   ;;  %v7793_v27 = vld [vmem:[%s10566_s22 + $0x87c] ss:$76 sps:$4 sm:$0xff]  }
 0x89c   :  { %5597 = vmatprep.subr.bf16.mxu1 %v7706_v28  ;;  %5638 = vmatprep.subr.bf16.mxu0 %v7709_v29  ;;  %v7788_v28 = vld [vmem:[%s10566_s22 + $0x870] ss:$76 sps:$4 sm:$0xff]   ;;  %v7791_v29 = vld [vmem:[%s10566_s22 + $0x878] ss:$76 sps:$4 sm:$0xff]  }
 0x89f   :  { %5598 = vmatpush2.bf16.msra.mxu1 %v7704_v30  ;;  %5639 = vmatpush2.bf16.msra.mxu0 %v7707_v31  ;;  %v7796_v30 = vld [vmem:[%s10566_s22 + $0x7dc] ss:$76 sps:$4 sm:$0xff]   ;;  %v7799_v31 = vld [vmem:[%s10566_s22 + $0x7e4] ss:$76 sps:$4 sm:$0xff]  }
 0x8a0   :  { %5599 = vmatprep.subr.bf16.mxu1 %v7712_v32  ;;  %5640 = vmatprep.subr.bf16.mxu0 %v7715_v33  ;;  %v7794_v32 = vld [vmem:[%s10566_s22 + $0x7d8] ss:$76 sps:$4 sm:$0xff]   ;;  %v7797_v33 = vld [vmem:[%s10566_s22 + $0x7e0] ss:$76 sps:$4 sm:$0xff]  }
 0x8a3   :  { %5600 = vmatpush2.bf16.msra.mxu1 %v7710_v35  ;;  %5641 = vmatpush2.bf16.msra.mxu0 %v7713_v38  ;;  %v7802_v35 = vld [vmem:[%s10566_s22 + $0x744] ss:$76 sps:$4 sm:$0xff]   ;;  %v7805_v38 = vld [vmem:[%s10566_s22 + $0x74c] ss:$76 sps:$4 sm:$0xff]  }
 0x8a4   :  { %5601 = vmatprep.subr.bf16.mxu1 %v7718_v41  ;;  %5642 = vmatprep.subr.bf16.mxu0 %v7721_v42  ;;  %v7800_v41 = vld [vmem:[%s10566_s22 + $0x740] ss:$76 sps:$4 sm:$0xff]   ;;  %v7803_v42 = vld [vmem:[%s10566_s22 + $0x748] ss:$76 sps:$4 sm:$0xff]  }
 0x8a7   :  { %5602 = vmatpush2.bf16.msra.mxu1 %v7716_v44  ;;  %5643 = vmatpush2.bf16.msra.mxu0 %v7719_v45  ;;  %v7808_v44 = vld [vmem:[%s10566_s22 + $0x6ac] ss:$76 sps:$4 sm:$0xff]   ;;  %v7811_v45 = vld [vmem:[%s10566_s22 + $0x6b4] ss:$76 sps:$4 sm:$0xff]  }
 0x8a8   :  { %5603 = vmatprep.subr.bf16.mxu1 %v7724_v46  ;;  %5644 = vmatprep.subr.bf16.mxu0 %v7727_v47  ;;  %v7806_v46 = vld [vmem:[%s10566_s22 + $0x6a8] ss:$76 sps:$4 sm:$0xff]   ;;  %v7809_v47 = vld [vmem:[%s10566_s22 + $0x6b0] ss:$76 sps:$4 sm:$0xff]  }
 0x8ab   :  { %5604 = vmatpush2.bf16.msra.mxu1 %v7722_v49  ;;  %5645 = vmatpush2.bf16.msra.mxu0 %v7725_v50  ;;  %v7814_v49 = vld [vmem:[%s10566_s22 + $0x614] ss:$76 sps:$4 sm:$0xff]   ;;  %v7817_v50 = vld [vmem:[%s10566_s22 + $0x61c] ss:$76 sps:$4 sm:$0xff]  }
 0x8ac   :  { %5605 = vmatprep.subr.bf16.mxu1 %v7730_v52  ;;  %5646 = vmatprep.subr.bf16.mxu0 %v7733_v53  ;;  %v7812_v52 = vld [vmem:[%s10566_s22 + $0x610] ss:$76 sps:$4 sm:$0xff]   ;;  %v7815_v53 = vld [vmem:[%s10566_s22 + $0x618] ss:$76 sps:$4 sm:$0xff]  }
 0x8af   :  { %5606 = vmatpush2.bf16.msra.mxu1 %v7728_v55  ;;  %5647 = vmatpush2.bf16.msra.mxu0 %v7731_v56  ;;  %v7820_v55 = vld [vmem:[%s10566_s22 + $0x57c] ss:$76 sps:$4 sm:$0xff]   ;;  %v7823_v56 = vld [vmem:[%s10566_s22 + $0x584] ss:$76 sps:$4 sm:$0xff]  }
 0x8b0   :  { %5657 = vmatprep.subr.bf16.mxu1 %v7736_v39  ;;  %5698 = vmatprep.subr.bf16.mxu0 %v7739_v57  ;;  %v7818_v39 = vld [vmem:[%s10566_s22 + $0x578] ss:$76 sps:$4 sm:$0xff]   ;;  %v7821_v57 = vld [vmem:[%s10566_s22 + $0x580] ss:$76 sps:$4 sm:$0xff]  }
 0x8b2   :  { %5608 = vmatmul.mubr.bf16.vlgmr.msra.gmra.mxu1 %v9727_v34  ;;  %5649 = vmatmul.mubr.bf16.vlgmr.msra.gmra.mxu0 %v9727_v34 }
 0x8b3   :  { %5658 = vmatpush1.bf16.msra.mxu1 %v7734_v59  ;;  %5689 = vmatprep.mubr.bf16.mxu1 %v9719_v51  ;;  %v7826_v59 = vld [vmem:[%s10566_s22 + $0x4e4] ss:$76 sps:$4 sm:$0xff]  }
 0x8b4   :  { %5699 = vmatpush1.bf16.msra.mxu0 %v7737_v60  ;;  %5730 = vmatprep.mubr.bf16.mxu0 %v9719_v51  ;;  %v7829_v60 = vld [vmem:[%s10566_s22 + $0x4ec] ss:$76 sps:$4 sm:$0xff]  }
 0x8b5   :  { %5659 = vmatprep.subr.bf16.mxu1 %v7742_v61  ;;  %5700 = vmatprep.subr.bf16.mxu0 %v7745_v63  ;;  %v7824_v61 = vld [vmem:[%s10566_s22 + $0x4e0] ss:$76 sps:$4 sm:$0xff]   ;;  %v7827_v63 = vld [vmem:[%s10566_s22 + $0x4e8] ss:$76 sps:$4 sm:$0xff]  }
 0x8b7   :  { %5660 = vmatpush1.bf16.msra.mxu1 %v7740_v17  ;;  %v7832_v17 = vld [vmem:[%s10566_s22 + $0x45c] ss:$76 sps:$4 sm:$0xff]  }
 0x8b8   :  { %5701 = vmatpush1.bf16.msra.mxu0 %v7743_v0  ;;  %5661 = vmatprep.subr.bf16.mxu1 %v7748_v37  ;;  %v7835_v0 = vld [vmem:[%s10566_s22 + $0x464] ss:$76 sps:$4 sm:$0xff]  }
 0x8b9   :  { %5702 = vmatprep.subr.bf16.mxu0 %v7751_v1  ;;  %v7830_v37 = vld [vmem:[%s10566_s22 + $0x458] ss:$76 sps:$4 sm:$0xff]   ;;  %v7833_v1 = vld [vmem:[%s10566_s22 + $0x460] ss:$76 sps:$4 sm:$0xff]  }
 0x8bb   :  { %5662 = vmatpush1.bf16.msra.mxu1 %v7746_v2  ;;  %v7838_v2 = vld [vmem:[%s10566_s22 + $0x3c4] ss:$76 sps:$4 sm:$0xff]  }
 0x8bc   :  { %5703 = vmatpush1.bf16.msra.mxu0 %v7749_v3  ;;  %5663 = vmatprep.subr.bf16.mxu1 %v7754_v4  ;;  %v7841_v3 = vld [vmem:[%s10566_s22 + $0x3cc] ss:$76 sps:$4 sm:$0xff]  }
 0x8bd   :  { %5704 = vmatprep.subr.bf16.mxu0 %v7757_v36  ;;  %v7836_v4 = vld [vmem:[%s10566_s22 + $0x3c0] ss:$76 sps:$4 sm:$0xff]   ;;  %v7839_v36 = vld [vmem:[%s10566_s22 + $0x3c8] ss:$76 sps:$4 sm:$0xff]  }
 0x8bf   :  { %5664 = vmatpush1.bf16.msra.mxu1 %v7752_v5  ;;  %v7844_v5 = vld [vmem:[%s10566_s22 + $0x32c] ss:$76 sps:$4 sm:$0xff]  }
 0x8c0   :  { %5705 = vmatpush1.bf16.msra.mxu0 %v7755_v6  ;;  %5665 = vmatprep.subr.bf16.mxu1 %v7760_v7  ;;  %v7847_v6 = vld [vmem:[%s10566_s22 + $0x334] ss:$76 sps:$4 sm:$0xff]  }
 0x8c1   :  { %5706 = vmatprep.subr.bf16.mxu0 %v7763_v54  ;;  %v7842_v7 = vld [vmem:[%s10566_s22 + $0x328] ss:$76 sps:$4 sm:$0xff]   ;;  %v7845_v54 = vld [vmem:[%s10566_s22 + $0x330] ss:$76 sps:$4 sm:$0xff]  }
 0x8c3   :  { %5666 = vmatpush1.bf16.msra.mxu1 %v7758_v8  ;;  %v7850_v8 = vld [vmem:[%s10566_s22 + $0x294] ss:$76 sps:$4 sm:$0xff]  }
 0x8c4   :  { %5707 = vmatpush1.bf16.msra.mxu0 %v7761_v9  ;;  %5667 = vmatprep.subr.bf16.mxu1 %v7766_v40  ;;  %v7853_v9 = vld [vmem:[%s10566_s22 + $0x29c] ss:$76 sps:$4 sm:$0xff]  }
 0x8c5   :  { %5708 = vmatprep.subr.bf16.mxu0 %v7769_v10  ;;  %v7848_v40 = vld [vmem:[%s10566_s22 + $0x290] ss:$76 sps:$4 sm:$0xff]   ;;  %v7851_v10 = vld [vmem:[%s10566_s22 + $0x298] ss:$76 sps:$4 sm:$0xff]  }
 0x8c7   :  { %5668 = vmatpush1.bf16.msra.mxu1 %v7764_v11  ;;  %v7856_v11 = vld [vmem:[%s10566_s22 + $0x1fc] ss:$76 sps:$4 sm:$0xff]  }
 0x8c8   :  { %5709 = vmatpush1.bf16.msra.mxu0 %v7767_v12  ;;  %5669 = vmatprep.subr.bf16.mxu1 %v7772_v13  ;;  %v7859_v12 = vld [vmem:[%s10566_s22 + $0x204] ss:$76 sps:$4 sm:$0xff]  }
 0x8c9   :  { %5710 = vmatprep.subr.bf16.mxu0 %v7775_v14  ;;  %v7854_v13 = vld [vmem:[%s10566_s22 + $0x1f8] ss:$76 sps:$4 sm:$0xff]   ;;  %v7857_v14 = vld [vmem:[%s10566_s22 + $0x200] ss:$76 sps:$4 sm:$0xff]  }
 0x8cb   :  { %5670 = vmatpush1.bf16.msra.mxu1 %v7770_v15  ;;  %v7862_v15 = vld [vmem:[%s10566_s22 + $0x164] ss:$76 sps:$4 sm:$0xff]  }
 0x8cc   :  { %5711 = vmatpush1.bf16.msra.mxu0 %v7773_v16  ;;  %5671 = vmatprep.subr.bf16.mxu1 %v7778_v18  ;;  %v7865_v16 = vld [vmem:[%s10566_s22 + $0x16c] ss:$76 sps:$4 sm:$0xff]  }
 0x8cd   :  { %5712 = vmatprep.subr.bf16.mxu0 %v7781_v19  ;;  %v7860_v18 = vld [vmem:[%s10566_s22 + $0x160] ss:$76 sps:$4 sm:$0xff]   ;;  %v7863_v19 = vld [vmem:[%s10566_s22 + $0x168] ss:$76 sps:$4 sm:$0xff]  }
 0x8cf   :  { %5672 = vmatpush1.bf16.msra.mxu1 %v7776_v20  ;;  %v7868_v20 = vld [vmem:[%s10566_s22 + $0xcc] ss:$76 sps:$4 sm:$0xff]  }
 0x8d0   :  { %5713 = vmatpush1.bf16.msra.mxu0 %v7779_v21  ;;  %5673 = vmatprep.subr.bf16.mxu1 %v7784_v22  ;;  %v7871_v21 = vld [vmem:[%s10566_s22 + $0xd4] ss:$76 sps:$4 sm:$0xff]  }
 0x8d1   :  { %5714 = vmatprep.subr.bf16.mxu0 %v7787_v23  ;;  %v7866_v22 = vld [vmem:[%s10566_s22 + $0xc8] ss:$76 sps:$4 sm:$0xff]   ;;  %v7869_v23 = vld [vmem:[%s10566_s22 + $0xd0] ss:$76 sps:$4 sm:$0xff]  }
 0x8d3   :  { %5674 = vmatpush2.bf16.msra.mxu1 %v7782_v24  ;;  %v7874_v24 = vld [vmem:[%s10566_s22 + $0x34] ss:$76 sps:$4 sm:$0xff]  }
 0x8d4   :  { %5715 = vmatpush2.bf16.msra.mxu0 %v7785_v25  ;;  %5675 = vmatprep.subr.bf16.mxu1 %v7790_v26  ;;  %v7877_v25 = vld [vmem:[%s10566_s22 + $0x3c] ss:$76 sps:$4 sm:$0xff]  }
 0x8d5   :  { %5716 = vmatprep.subr.bf16.mxu0 %v7793_v27  ;;  %v7872_v26 = vld [vmem:[%s10566_s22 + $0x30] ss:$76 sps:$4 sm:$0xff]   ;;  %v7875_v27 = vld [vmem:[%s10566_s22 + $0x38] ss:$76 sps:$4 sm:$0xff]  }
 0x8d7   :  { %5676 = vmatpush2.bf16.msra.mxu1 %v7788_v28  ;;  %v7880_v28 = vld [vmem:[%s10566_s22 + $0x91c] ss:$76 sps:$4 sm:$0xff]  }
 0x8d8   :  { %5717 = vmatpush2.bf16.msra.mxu0 %v7791_v29  ;;  %5677 = vmatprep.subr.bf16.mxu1 %v7796_v30  ;;  %v7883_v29 = vld [vmem:[%s10566_s22 + $0x924] ss:$76 sps:$4 sm:$0xff]  }
 0x8d9   :  { %5718 = vmatprep.subr.bf16.mxu0 %v7799_v31  ;;  %v7878_v30 = vld [vmem:[%s10566_s22 + $0x918] ss:$76 sps:$4 sm:$0xff]   ;;  %v7881_v31 = vld [vmem:[%s10566_s22 + $0x920] ss:$76 sps:$4 sm:$0xff]  }
 0x8db   :  { %5678 = vmatpush2.bf16.msra.mxu1 %v7794_v32  ;;  %v7886_v32 = vld [vmem:[%s10566_s22 + $0x884] ss:$76 sps:$4 sm:$0xff]  }
 0x8dc   :  { %5719 = vmatpush2.bf16.msra.mxu0 %v7797_v33  ;;  %5679 = vmatprep.subr.bf16.mxu1 %v7802_v35  ;;  %v7889_v33 = vld [vmem:[%s10566_s22 + $0x88c] ss:$76 sps:$4 sm:$0xff]  }
 0x8dd   :  { %5720 = vmatprep.subr.bf16.mxu0 %v7805_v38  ;;  %v7884_v35 = vld [vmem:[%s10566_s22 + $0x880] ss:$76 sps:$4 sm:$0xff]   ;;  %v7887_v38 = vld [vmem:[%s10566_s22 + $0x888] ss:$76 sps:$4 sm:$0xff]  }
 0x8df   :  { %5680 = vmatpush2.bf16.msra.mxu1 %v7800_v41  ;;  %v7892_v41 = vld [vmem:[%s10566_s22 + $0x7ec] ss:$76 sps:$4 sm:$0xff]  }
 0x8e0   :  { %5721 = vmatpush2.bf16.msra.mxu0 %v7803_v42  ;;  %5681 = vmatprep.subr.bf16.mxu1 %v7808_v44  ;;  %v7895_v42 = vld [vmem:[%s10566_s22 + $0x7f4] ss:$76 sps:$4 sm:$0xff]  }
 0x8e1   :  { %5722 = vmatprep.subr.bf16.mxu0 %v7811_v45  ;;  %v7890_v44 = vld [vmem:[%s10566_s22 + $0x7e8] ss:$76 sps:$4 sm:$0xff]   ;;  %v7893_v45 = vld [vmem:[%s10566_s22 + $0x7f0] ss:$76 sps:$4 sm:$0xff]  }
 0x8e3   :  { %5682 = vmatpush2.bf16.msra.mxu1 %v7806_v46  ;;  %v7898_v46 = vld [vmem:[%s10566_s22 + $0x754] ss:$76 sps:$4 sm:$0xff]  }
 0x8e4   :  { %5723 = vmatpush2.bf16.msra.mxu0 %v7809_v47  ;;  %5683 = vmatprep.subr.bf16.mxu1 %v7814_v49  ;;  %v7901_v47 = vld [vmem:[%s10566_s22 + $0x75c] ss:$76 sps:$4 sm:$0xff]  }
 0x8e5   :  { %5724 = vmatprep.subr.bf16.mxu0 %v7817_v50  ;;  %v7896_v49 = vld [vmem:[%s10566_s22 + $0x750] ss:$76 sps:$4 sm:$0xff]   ;;  %v7899_v50 = vld [vmem:[%s10566_s22 + $0x758] ss:$76 sps:$4 sm:$0xff]  }
 0x8e7   :  { %5684 = vmatpush2.bf16.msra.mxu1 %v7812_v52  ;;  %v7904_v52 = vld [vmem:[%s10566_s22 + $0x6bc] ss:$76 sps:$4 sm:$0xff]  }
 0x8e8   :  { %5725 = vmatpush2.bf16.msra.mxu0 %v7815_v53  ;;  %5685 = vmatprep.subr.bf16.mxu1 %v7820_v55  ;;  %v7907_v53 = vld [vmem:[%s10566_s22 + $0x6c4] ss:$76 sps:$4 sm:$0xff]  }
 0x8e9   :  { %5726 = vmatprep.subr.bf16.mxu0 %v7823_v56  ;;  %v7902_v55 = vld [vmem:[%s10566_s22 + $0x6b8] ss:$76 sps:$4 sm:$0xff]   ;;  %v7905_v56 = vld [vmem:[%s10566_s22 + $0x6c0] ss:$76 sps:$4 sm:$0xff]  }
 0x8eb   :  { %5686 = vmatpush2.bf16.msra.mxu1 %v7818_v39  ;;  %v7910_v39 = vld [vmem:[%s10566_s22 + $0x624] ss:$76 sps:$4 sm:$0xff]  }
 0x8ec   :  { %5727 = vmatpush2.bf16.msra.mxu0 %v7821_v57  ;;  %5687 = vmatprep.subr.bf16.mxu1 %v7826_v59  ;;  %v7913_v57 = vld [vmem:[%s10566_s22 + $0x62c] ss:$76 sps:$4 sm:$0xff]  }
 0x8ed   :  { %5728 = vmatprep.subr.bf16.mxu0 %v7829_v60  ;;  %v7908_v59 = vld [vmem:[%s10566_s22 + $0x620] ss:$76 sps:$4 sm:$0xff]   ;;  %v7911_v60 = vld [vmem:[%s10566_s22 + $0x628] ss:$76 sps:$4 sm:$0xff]  }
 0x8ef   :  { %5688 = vmatpush2.bf16.msra.mxu1 %v7824_v61  ;;  %v7916_v61 = vld [vmem:[%s10566_s22 + $0x58c] ss:$76 sps:$4 sm:$0xff]  }
 0x8f0   :  { %5729 = vmatpush2.bf16.msra.mxu0 %v7827_v63  ;;  %5739 = vmatprep.subr.bf16.mxu1 %v7832_v17  ;;  %v7919_v63 = vld [vmem:[%s10566_s22 + $0x594] ss:$76 sps:$4 sm:$0xff]  }
 0x8f1   :  { %5780 = vmatprep.subr.bf16.mxu0 %v7835_v0  ;;  %v7914_v17 = vld [vmem:[%s10566_s22 + $0x588] ss:$76 sps:$4 sm:$0xff]   ;;  %v7917_v0 = vld [vmem:[%s10566_s22 + $0x590] ss:$76 sps:$4 sm:$0xff]  }
 0x8f2   :  { %5690 = vmatmul.mubr.bf16.vlgmr.msra.gmra.mxu1 %v9727_v34 }
 0x8f3   :  { %5731 = vmatmul.mubr.bf16.vlgmr.msra.gmra.mxu0 %v9727_v34  ;;  %5740 = vmatpush1.bf16.msra.mxu1 %v7830_v37  ;;  %v7922_v37 = vld [vmem:[%s10566_s22 + $0x4f4] ss:$76 sps:$4 sm:$0xff]  }
 0x8f4   :  { %5771 = vmatprep.mubr.bf16.mxu1 %v9719_v51  ;;  %5781 = vmatpush1.bf16.msra.mxu0 %v7833_v1  ;;  %v7925_v1 = vld [vmem:[%s10566_s22 + $0x4fc] ss:$76 sps:$4 sm:$0xff]  }
 0x8f5   :  { %5812 = vmatprep.mubr.bf16.mxu0 %v9719_v51  ;;  %5741 = vmatprep.subr.bf16.mxu1 %v7838_v2  ;;  %v7920_v2 = vld [vmem:[%s10566_s22 + $0x4f0] ss:$76 sps:$4 sm:$0xff]  }
 0x8f6   :  { %5782 = vmatprep.subr.bf16.mxu0 %v7841_v3  ;;  %v7923_v3 = vld [vmem:[%s10566_s22 + $0x4f8] ss:$76 sps:$4 sm:$0xff]  }
 0x8f7   :  { %5742 = vmatpush1.bf16.msra.mxu1 %v7836_v4  ;;  %v7928_v4 = vld [vmem:[%s10566_s22 + $0x46c] ss:$76 sps:$4 sm:$0xff]  }
 0x8f8   :  { %5783 = vmatpush1.bf16.msra.mxu0 %v7839_v36  ;;  %5743 = vmatprep.subr.bf16.mxu1 %v7844_v5  ;;  %v7929_v36 = vld [vmem:[%s10566_s22 + $0x930] ss:$76 sps:$4 sm:$0xff]   ;;  %v10316_v5 = vld [vmem:[%s10567_s23] sm:$0xff] }
 0x8f9   :  { %5784 = vmatprep.subr.bf16.mxu0 %v7847_v6  ;;  %v10319_v6 = vsub.s32 2, %v8294_v43 }
 0x8fb   :  { %5744 = vmatpush1.bf16.msra.mxu1 %v7842_v7  ;;  %v3876_v7 = vsub.s32 3, %v8294_v43 }
 0x8fc   :  { %5785 = vmatpush1.bf16.msra.mxu0 %v7845_v54  ;;  %5745 = vmatprep.subr.bf16.mxu1 %v7850_v8  ;;  %v7926_v54 = vld [vmem:[%s10566_s22 + $0x468] ss:$76 sps:$4 sm:$0xff]   ;;  %v3865_v8 = vrot.slane %v10316_v5, %v9018_v58 }
 0x8fd   :  { %5786 = vmatprep.subr.bf16.mxu0 %v7853_v9  ;;  %v7930_v9 = vld [vmem:[%s10566_s22 + $0x470] ss:$76 sps:$4 sm:$0xff]  }
 0x8ff   :  { %5746 = vmatpush1.bf16.msra.mxu1 %v7848_v40  ;;  %v3873_v40 = vrot.slane %v10316_v5, %v10319_v6 }
 0x900   :  { %5787 = vmatpush1.bf16.msra.mxu0 %v7851_v10  ;;  %5747 = vmatprep.subr.bf16.mxu1 %v7856_v11  ;;  %v3869_v10 = vrot.slane %v10316_v5, %v9029_v62  ;;  %v3877_v11 = vrot.slane %v10316_v5, %v3876_v7 }
 0x901   :  { %5788 = vmatprep.subr.bf16.mxu0 %v7859_v12  ;;  %v7933_v12 = vld [vmem:[%s10566_s22 + $0x3d4] ss:$76 sps:$4 sm:$0xff]  }
 0x903   :  { %5748 = vmatpush1.bf16.msra.mxu1 %v7854_v13 }
 0x904   :  { %5789 = vmatpush1.bf16.msra.mxu0 %v7857_v14  ;;  %5749 = vmatprep.subr.bf16.mxu1 %v7862_v15  ;;  %v7934_v15 = vld [vmem:[%s10566_s22 + $0x898] ss:$76 sps:$4 sm:$0xff]  }
 0x905   :  { %5790 = vmatprep.subr.bf16.mxu0 %v7865_v16  ;;  %v7931_v16 = vld [vmem:[%s10566_s22 + $0x3d0] ss:$76 sps:$4 sm:$0xff]  }
 0x907   :  { %5750 = vmatpush1.bf16.msra.mxu1 %v7860_v18 }
 0x908   :  { %5791 = vmatpush1.bf16.msra.mxu0 %v7863_v19  ;;  %5751 = vmatprep.subr.bf16.mxu1 %v7868_v20 }
 0x909   :  { %5792 = vmatprep.subr.bf16.mxu0 %v7871_v21  ;;  %v7935_v21 = vld [vmem:[%s10566_s22 + $0x3d8] ss:$76 sps:$4 sm:$0xff]  }
 0x90b   :  { %5752 = vmatpush1.bf16.msra.mxu1 %v7866_v22  ;;  %v7938_v22 = vld [vmem:[%s10566_s22 + $0x33c] ss:$76 sps:$4 sm:$0xff]  }
 0x90c   :  { %5793 = vmatpush1.bf16.msra.mxu0 %v7869_v23  ;;  %5753 = vmatprep.subr.bf16.mxu1 %v7874_v24 }
 0x90d   :  { %5794 = vmatprep.subr.bf16.mxu0 %v7877_v25 }
 0x90f   :  { %5754 = vmatpush1.bf16.msra.mxu1 %v7872_v26  ;;  %v7939_v26 = vld [vmem:[%s10566_s22 + $0x800] ss:$76 sps:$4 sm:$0xff]  }
 0x910   :  { %5795 = vmatpush1.bf16.msra.mxu0 %v7875_v27  ;;  %5755 = vmatprep.subr.bf16.mxu1 %v7880_v28 }
 0x911   :  { %5796 = vmatprep.subr.bf16.mxu0 %v7883_v29 }
 0x913   :  { %5756 = vmatpush2.bf16.msra.mxu1 %v7878_v30 }
 0x914   :  { %5797 = vmatpush2.bf16.msra.mxu0 %v7881_v31  ;;  %5757 = vmatprep.subr.bf16.mxu1 %v7886_v32  ;;  %v7936_v31 = vld [vmem:[%s10566_s22 + $0x338] ss:$76 sps:$4 sm:$0xff]  }
 0x915   :  { %5798 = vmatprep.subr.bf16.mxu0 %v7889_v33  ;;  %v7940_v33 = vld [vmem:[%s10566_s22 + $0x340] ss:$76 sps:$4 sm:$0xff]  }
 0x917   :  { %5758 = vmatpush2.bf16.msra.mxu1 %v7884_v35  ;;  %v7943_v35 = vld [vmem:[%s10566_s22 + $0x2a4] ss:$76 sps:$4 sm:$0xff]  }
 0x918   :  { %5799 = vmatpush2.bf16.msra.mxu0 %v7887_v38  ;;  %5759 = vmatprep.subr.bf16.mxu1 %v7892_v41 }
 0x919   :  { %5800 = vmatprep.subr.bf16.mxu0 %v7895_v42  ;;  %v7944_v42 = vld [vmem:[%s10566_s22 + $0x768] ss:$76 sps:$4 sm:$0xff]  }
 0x91b   :  { %5760 = vmatpush2.bf16.msra.mxu1 %v7890_v44 }
 0x91c   :  { %5801 = vmatpush2.bf16.msra.mxu0 %v7893_v45  ;;  %5761 = vmatprep.subr.bf16.mxu1 %v7898_v46  ;;  %v7941_v45 = vld [vmem:[%s10566_s22 + $0x2a0] ss:$76 sps:$4 sm:$0xff]   ;;  %v7945_v46 = vld [vmem:[%s10566_s22 + $0x2a8] ss:$76 sps:$4 sm:$0xff]  }
 0x91d   :  { %5802 = vmatprep.subr.bf16.mxu0 %v7901_v47  ;;  %v7948_v47 = vld [vmem:[%s10566_s22 + $0x20c] ss:$76 sps:$4 sm:$0xff]  }
 0x91f   :  { %5762 = vmatpush2.bf16.msra.mxu1 %v7896_v49  ;;  %v7949_v49 = vld [vmem:[%s10566_s22 + $0x6d0] ss:$76 sps:$4 sm:$0xff]  }
 0x920   :  { %5803 = vmatpush2.bf16.msra.mxu0 %v7899_v50  ;;  %5763 = vmatprep.subr.bf16.mxu1 %v7904_v52  ;;  %v7946_v50 = vld [vmem:[%s10566_s22 + $0x208] ss:$76 sps:$4 sm:$0xff]   ;;  %v7950_v52 = vld [vmem:[%s10566_s22 + $0x210] ss:$76 sps:$4 sm:$0xff]  }
 0x921   :  { %5804 = vmatprep.subr.bf16.mxu0 %v7907_v53  ;;  %v7953_v53 = vld [vmem:[%s10566_s22 + $0x174] ss:$76 sps:$4 sm:$0xff]  }
 0x923   :  { %5764 = vmatpush2.bf16.msra.mxu1 %v7902_v55  ;;  %v7954_v55 = vld [vmem:[%s10566_s22 + $0x638] ss:$76 sps:$4 sm:$0xff]  }
 0x924   :  { %5805 = vmatpush2.bf16.msra.mxu0 %v7905_v56  ;;  %5765 = vmatprep.subr.bf16.mxu1 %v7910_v39  ;;  %v7951_v56 = vld [vmem:[%s10566_s22 + $0x170] ss:$76 sps:$4 sm:$0xff]   ;;  %v7955_v39 = vld [vmem:[%s10566_s22 + $0x178] ss:$76 sps:$4 sm:$0xff]  }
 0x925   :  { %5806 = vmatprep.subr.bf16.mxu0 %v7913_v57  ;;  %v7958_v57 = vld [vmem:[%s10566_s22 + $0xdc] ss:$76 sps:$4 sm:$0xff]  }
 0x927   :  { %5766 = vmatpush2.bf16.msra.mxu1 %v7908_v59  ;;  %v7959_v59 = vld [vmem:[%s10566_s22 + $0x5a0] ss:$76 sps:$4 sm:$0xff]  }
 0x928   :  { %5807 = vmatpush2.bf16.msra.mxu0 %v7911_v60  ;;  %5767 = vmatprep.subr.bf16.mxu1 %v7916_v61  ;;  %v7956_v60 = vld [vmem:[%s10566_s22 + $0xd8] ss:$76 sps:$4 sm:$0xff]   ;;  %v7960_v61 = vld [vmem:[%s10566_s22 + $0xe0] ss:$76 sps:$4 sm:$0xff]  }
 0x929   :  { %5808 = vmatprep.subr.bf16.mxu0 %v7919_v63  ;;  %v7963_v63 = vld [vmem:[%s10566_s22 + $0x44] ss:$76 sps:$4 sm:$0xff]  }
 0x92b   :  { %5768 = vmatpush2.bf16.msra.mxu1 %v7914_v17  ;;  %v7964_v17 = vld [vmem:[%s10566_s22 + $0x508] ss:$76 sps:$4 sm:$0xff]  }
 0x92c   :  { %5809 = vmatpush2.bf16.msra.mxu0 %v7917_v0  ;;  %5769 = vmatprep.subr.bf16.mxu1 %v7922_v37  ;;  %v7961_v0 = vld [vmem:[%s10566_s22 + $0x40] ss:$76 sps:$4 sm:$0xff]   ;;  %v7965_v37 = vld [vmem:[%s10566_s22 + $0x48] ss:$76 sps:$4 sm:$0xff]  }
 0x92d   :  { %5810 = vmatprep.subr.bf16.mxu0 %v7925_v1  ;;  %v7968_v1 = vld [vmem:[%s10566_s22 + $0x92c] ss:$76 sps:$4 sm:$0xff]  }
 0x92f   :  { %5770 = vmatpush2.bf16.msra.mxu1 %v7920_v2  ;;  %v7966_v2 = vld [vmem:[%s10566_s22 + $0x928] ss:$76 sps:$4 sm:$0xff]  }
 0x930   :  { %5811 = vmatpush2.bf16.msra.mxu0 %v7923_v3  ;;  %5821 = vmatprep.subr.bf16.mxu1 %v7928_v4  ;;  %v7971_v3 = vld [vmem:[%s10566_s22 + $0x894] ss:$76 sps:$4 sm:$0xff]   ;;  %v7969_v4 = vld [vmem:[%s10566_s22 + $0x890] ss:$76 sps:$4 sm:$0xff]  }
 0x931   :  { %6832 = vmatprep.subr.bf16.mxu0 %v7929_v36  ;;  %v7974_v36 = vld [vmem:[%s10566_s22 + $0x7fc] ss:$76 sps:$4 sm:$0xff]  }
 0x932   :  { %5772 = vmatmul.mubr.bf16.vlgmr.msra.gmra.mxu1 %v9727_v34  ;;  %v5527_v13 = vpop.f32.mrf.mxu1  ;;  %v5568_v14 = vpop.f32.mrf.mxu0 }
 0x933   :  { %5813 = vmatmul.mubr.bf16.vlgmr.msra.gmra.mxu0 %v9727_v34  ;;  %5822 = vmatpush1.bf16.msra.mxu1 %v7926_v54  ;;  %v5528_v18 = vadd.f32 %v5527_v13, %v3865_v8  ;;  %v5569_v23 = vadd.f32 %v5568_v14, %v3873_v40  ;;  %v7972_v54 = vld [vmem:[%s10566_s22 + $0x7f8] ss:$76 sps:$4 sm:$0xff]   ;;  %v7986_v13 = vld [vmem:[%s10566_s22 + $0x59c] ss:$76 sps:$4 sm:$0xff]  }
 0x934   :  { %5853 = vmatprep.mubr.bf16.mxu1 %v9719_v51  ;;  %6833 = vmatpush3.bf16.msra.mxu0 %v7930_v9  ;;  %v5529_v19 = vpop.f32.mrf.mxu1  ;;  %v5570_v20 = vpop.f32.mrf.mxu0  ;;  %v7977_v8 = vld [vmem:[%s10566_s22 + $0x764] ss:$76 sps:$4 sm:$0xff]   ;;  %v7975_v9 = vld [vmem:[%s10566_s22 + $0x760] ss:$76 sps:$4 sm:$0xff]  }
 0x935   :  { %5894 = vmatprep.mubr.bf16.mxu0 %v9719_v51  ;;  %v5530_v24 = vadd.f32 %v5529_v19, %v3869_v10  ;;  %v5571_v25 = vadd.f32 %v5570_v20, %v3877_v11  ;;  %5823 = vmatprep.subr.bf16.mxu1 %v7933_v12  ;;  %v7980_v40 = vld [vmem:[%s10566_s22 + $0x6cc] ss:$76 sps:$4 sm:$0xff]   ;;  %v7978_v10 = vld [vmem:[%s10566_s22 + $0x6c8] ss:$76 sps:$4 sm:$0xff]   ;;  %v7981_v12 = vld [vmem:[%s10566_s22 + $0x630] ss:$76 sps:$4 sm:$0xff]  }
 0x936   :  { %6834 = vmatprep.subr.bf16.mxu0 %v7934_v15  ;;  %v5531_v27 = vpop.f32.mrf.mxu1  ;;  %v5572_v28 = vpop.f32.mrf.mxu0  ;;  %v7983_v11 = vld [vmem:[%s10566_s22 + $0x634] ss:$76 sps:$4 sm:$0xff]   ;;  %v7984_v14 = vld [vmem:[%s10566_s22 + $0x598] ss:$76 sps:$4 sm:$0xff]   ;;  %v3888_v19 = vsub.s32 6, %v8294_v43  ;;  %v3884_v20 = vsub.s32 5, %v8294_v43 }
 0x937   :  { %v5921_v29 = vcombine.low %v5528_v18, %v5530_v24  ;;  %v5922_v30 = vcombine.low %v5569_v23, %v5571_v25  ;;  %5824 = vmatpush1.bf16.msra.mxu1 %v7931_v16  ;;  %v7989_v15 = vld [vmem:[%s10566_s22 + $0x504] ss:$76 sps:$4 sm:$0xff]   ;;  %v7987_v16 = vld [vmem:[%s10566_s22 + $0x500] ss:$76 sps:$4 sm:$0xff]   ;;  %v3880_v18 = vsub.s32 4, %v8294_v43 }
 0x938   :  { %6835 = vmatpush3.bf16.msra.mxu0 %v7935_v21  ;;  %v5532_v32 = vpop.f32.mrf.mxu1  ;;  %v5573_v51 = vpop.f32.mrf.mxu0  ;;  %5825 = vmatprep.subr.bf16.mxu1 %v7938_v22  ;;  %v3892_v21 = vsub.s32 7, %v8294_v43  ;;  %v3889_v23 = vrot.slane %v10316_v5, %v3888_v19  ;;  %v3885_v24 = vrot.slane %v10316_v5, %v3884_v20 }
 0x939   :  { %v5929_v38 = vrot.slane %v5921_v29, %v8309_v48  ;;  %v5936_v41 = vrot.slane %v5922_v30, %v8309_v48  ;;  %6836 = vmatprep.subr.bf16.mxu0 %v7939_v26  ;;  %v3881_v22 = vrot.slane %v10316_v5, %v3880_v18 }
 0x93a   :  { %v3893_v25 = vrot.slane %v10316_v5, %v3892_v21 }
 0x93b   :  { %v5937_v44 = vcombine.low %v5929_v38, %v5936_v41  ;;  %5826 = vmatpush1.bf16.msra.mxu1 %v7936_v31 }
 0x93c   :  { %6837 = vmatpush3.bf16.msra.mxu0 %v7940_v33  ;;  %5827 = vmatprep.subr.bf16.mxu1 %v7943_v35 }
 0x93d   :  { %6010 = vst [vmem:[%s10568_s24] sm:$0xff] %v5937_v44  ;;  %6838 = vmatprep.subr.bf16.mxu0 %v7944_v42 }
 0x93f   :  { %5828 = vmatpush1.bf16.msra.mxu1 %v7941_v45 }
 0x940   :  { %6839 = vmatpush3.bf16.msra.mxu0 %v7945_v46  ;;  %5829 = vmatprep.subr.bf16.mxu1 %v7948_v47 }
 0x941   :  { %6840 = vmatprep.subr.bf16.mxu0 %v7949_v49 }
 0x943   :  { %5830 = vmatpush1.bf16.msra.mxu1 %v7946_v50 }
 0x944   :  { %6841 = vmatpush3.bf16.msra.mxu0 %v7950_v52  ;;  %5831 = vmatprep.subr.bf16.mxu1 %v7953_v53 }
 0x945   :  { %6842 = vmatprep.subr.bf16.mxu0 %v7954_v55 }
 0x947   :  { %5832 = vmatpush1.bf16.msra.mxu1 %v7951_v56 }
 0x948   :  { %6843 = vmatpush3.bf16.msra.mxu0 %v7955_v39  ;;  %5833 = vmatprep.subr.bf16.mxu1 %v7958_v57 }
 0x949   :  { %6844 = vmatprep.subr.bf16.mxu0 %v7959_v59 }
 0x94b   :  { %5834 = vmatpush1.bf16.msra.mxu1 %v7956_v60 }
 0x94c   :  { %6845 = vmatpush3.bf16.msra.mxu0 %v7960_v61  ;;  %5835 = vmatprep.subr.bf16.mxu1 %v7963_v63 }
 0x94d   :  { %6846 = vmatprep.subr.bf16.mxu0 %v7964_v17 }
 0x94f   :  { %5836 = vmatpush1.bf16.msra.mxu1 %v7961_v0 }
 0x950   :  { %6847 = vmatpush3.bf16.msra.mxu0 %v7965_v37  ;;  %5837 = vmatprep.subr.bf16.mxu1 %v7968_v1 }
 0x953   :  { %5895 = vmatmul.mubr.bf16.vlgmr.msra.gmra.mxu0 %v9727_v34  ;;  %5838 = vmatpush2.bf16.msra.mxu1 %v7966_v2 }
 0x954   :  { %5839 = vmatprep.subr.bf16.mxu1 %v7971_v3 }
 0x957   :  { %5840 = vmatpush2.bf16.msra.mxu1 %v7969_v4 }
 0x958   :  { %5841 = vmatprep.subr.bf16.mxu1 %v7974_v36 }
 0x95b   :  { %5842 = vmatpush2.bf16.msra.mxu1 %v7972_v54 }
 0x95c   :  { %5843 = vmatprep.subr.bf16.mxu1 %v7977_v8 }
 0x95f   :  { %5844 = vmatpush2.bf16.msra.mxu1 %v7975_v9 }
 0x960   :  { %5845 = vmatprep.subr.bf16.mxu1 %v7980_v40 }
 0x963   :  { %5846 = vmatpush2.bf16.msra.mxu1 %v7978_v10 }
 0x964   :  { %5847 = vmatprep.subr.bf16.mxu1 %v7983_v11 }
 0x967   :  { %5848 = vmatpush2.bf16.msra.mxu1 %v7981_v12 }
 0x968   :  { %5849 = vmatprep.subr.bf16.mxu1 %v7986_v13 }
 0x96b   :  { %5850 = vmatpush2.bf16.msra.mxu1 %v7984_v14 }
 0x96c   :  { %5851 = vmatprep.subr.bf16.mxu1 %v7989_v15 }
 0x96f   :  { %5852 = vmatpush2.bf16.msra.mxu1 %v7987_v16 }
 0x972   :  { %v5609_v26 = vpop.f32.mrf.mxu1  ;;  %v5650_v27 = vpop.f32.mrf.mxu0  ;;  %5854 = vmatmul.mubr.bf16.vlgmr.msra.gmra.mxu1 %v9727_v34  ;;  %v3857_v34 = vld [vmem:[%s10567_s23 + $0x8] sm:$0xff] }
 0x973   :  { %v5610_v30 = vadd.f32 %v5609_v26, %v3881_v22  ;;  %v5651_v31 = vadd.f32 %v5650_v27, %v3889_v23  ;;  %v3897_v47 = vrot.slane %v3857_v34, %v9018_v58  ;;  %v3901_v49 = vrot.slane %v3857_v34, %v9029_v62 }
 0x974   :  { %v5611_v28 = vpop.f32.mrf.mxu1  ;;  %v5652_v29 = vpop.f32.mrf.mxu0  ;;  %v3905_v52 = vrot.slane %v3857_v34, %v10319_v6  ;;  %v3909_v53 = vrot.slane %v3857_v34, %v3876_v7 }
 0x975   :  { %v5612_v32 = vadd.f32 %v5611_v28, %v3885_v24  ;;  %v5653_v51 = vadd.f32 %v5652_v29, %v3893_v25 }
 0x976   :  { %v5613_v33 = vpop.f32.mrf.mxu1  ;;  %v5654_v35 = vpop.f32.mrf.mxu0 }
 0x977   :  { %v5938_v38 = vcombine.low %v5610_v30, %v5612_v32  ;;  %v5939_v41 = vcombine.low %v5651_v31, %v5653_v51 }
 0x978   :  { %v5614_v42 = vpop.f32.mrf.mxu1  ;;  %v5655_v44 = vpop.f32.mrf.mxu0 }
 0x979   :  { %v5946_v45 = vrot.slane %v5938_v38, %v8309_v48  ;;  %v5953_v5 = vrot.slane %v5939_v41, %v8309_v48 }
 0x97b   :  { %v5954_v46 = vcombine.low %v5946_v45, %v5953_v5 }
 0x97d   :  { %6011 = vst [vmem:[%s10568_s24 + $0x8] sm:$0xff] %v5954_v46 }
 0x9b2   :  { %v5691_v50 = vpop.f32.mrf.mxu1 }
 0x9b3   :  { %v5732_v55 = vpop.f32.mrf.mxu0  ;;  %v5692_v39 = vadd.f32 %v5691_v50, %v3897_v47 }
 0x9b4   :  { %v5693_v56 = vpop.f32.mrf.mxu1  ;;  %v5733_v60 = vadd.f32 %v5732_v55, %v3905_v52 }
 0x9b5   :  { %v5694_v57 = vadd.f32 %v5693_v56, %v3901_v49  ;;  %v5734_v59 = vpop.f32.mrf.mxu0 }
 0x9b6   :  { %v5735_v61 = vadd.f32 %v5734_v59, %v3909_v53  ;;  %v5695_v63 = vpop.f32.mrf.mxu1 }
 0x9b7   :  { %v5955_v17 = vcombine.low %v5692_v39, %v5694_v57  ;;  %v5736_v0 = vpop.f32.mrf.mxu0 }
 0x9b8   :  { %v5956_v37 = vcombine.low %v5733_v60, %v5735_v61  ;;  %v5696_v1 = vpop.f32.mrf.mxu1 }
 0x9b9   :  { %v5963_v2 = vrot.slane %v5955_v17, %v8309_v48  ;;  %v5737_v3 = vpop.f32.mrf.mxu0 }
 0x9ba   :  { %v5970_v4 = vrot.slane %v5956_v37, %v8309_v48 }
 0x9bc   :  { %v5971_v36 = vcombine.low %v5963_v2, %v5970_v4 }
 0x9be   :  { %6012 = vst [vmem:[%s10568_s24 + $0x10] sm:$0xff] %v5971_v36 }
 0x9bf   :  { %8003 = shalt.err (!%p8000_p4)
}
 0x9c0   :  { %6031 = dma.vmem_to_hbm [thread:$0]  %s6029_s6, 32, %s10569_s25, [#allocation3]  }
 0x9c1   :  { %s8012_s10 = scalar_lea.vmem %s6039_s9, 32  ;;  %p8017_p6 = scmp.lt.s32.totalorder %s6039_s9, %s6039_s9 }
 0x9c2   :  { %p8013_p5 = scmp.ne.s32.totalorder %s6039_s9, %s8012_s10  ;;  %p8018_p7 = scmp.lt.s32.totalorder %s8012_s10, %s8012_s10 }
 0x9c4   :  { %p8019_p8 = por %p8018_p7, %p8017_p6 }
 0x9c6   :  { %p8020_p9 = pnand %p8019_p8, %p8013_p5 }
 0x9c8   :  { %8023 = shalt.err (!%p8020_p9)
}
 0x9c9   :  { %6041 = dma.vmem_to_hbm [thread:$0]  %s6039_s9, 32, %s10570_s26, [#allocation5]   ;;  %v3913_v7 = vrot.slane %v3857_v34, %v3880_v18  ;;  %v3917_v54 = vrot.slane %v3857_v34, %v3884_v20  ;;  %v3921_v9 = vrot.slane %v3857_v34, %v3888_v19  ;;  %v3925_v40 = vrot.slane %v3857_v34, %v3892_v21  ;;  %v3858_v30 = vld [vmem:[%s10567_s23 + $0x10] sm:$0x7] }
 0x9ca   :  { %v3937_v31 = vrot.slane %v3858_v30, %v10319_v6  ;;  %v3929_v51 = vrot.slane %v3858_v30, %v9018_v58  ;;  %v3933_v33 = vrot.slane %v3858_v30, %v9029_v62  ;;  %vm6014_vm3 = vcmask 1041408  }
 0x9cb   :  { %vm6015_vm4 = vcmask 1043458   ;;  %vm6017_vm6 = vcmask 390148  }
 0x9cc   :  { %vm6016_vm5 = vmor %vm6015_vm4, %vm6014_vm3 }
 0x9cd   :  { %vm6018_vm7 = vmor %vm6017_vm6, %vm6016_vm5 }
 0x9f2   :  { %v5773_v8 = vpop.f32.mrf.mxu1 }
 0x9f3   :  { %v5814_v10 = vpop.f32.mrf.mxu0  ;;  %v5774_v12 = vadd.f32 %v5773_v8, %v3913_v7 }
 0x9f4   :  { %v5775_v11 = vpop.f32.mrf.mxu1  ;;  %v5815_v15 = vadd.f32 %v5814_v10, %v3921_v9 }
 0x9f5   :  { %v5776_v13 = vadd.f32 %v5775_v11, %v3917_v54  ;;  %v5816_v14 = vpop.f32.mrf.mxu0 }
 0x9f6   :  { %v5817_v16 = vadd.f32 %v5816_v14, %v3925_v40  ;;  %v5777_v22 = vpop.f32.mrf.mxu1 }
 0x9f7   :  { %v5972_v23 = vcombine.low %v5774_v12, %v5776_v13  ;;  %v5818_v18 = vpop.f32.mrf.mxu0 }
 0x9f8   :  { %v5973_v24 = vcombine.low %v5815_v15, %v5817_v16  ;;  %v5778_v25 = vpop.f32.mrf.mxu1 }
 0x9f9   :  { %v5980_v20 = vrot.slane %v5972_v23, %v8309_v48  ;;  %v5819_v26 = vpop.f32.mrf.mxu0 }
 0x9fa   :  { %v5987_v19 = vrot.slane %v5973_v24, %v8309_v48 }
 0x9fc   :  { %v5988_v27 = vcombine.low %v5980_v20, %v5987_v19 }
 0x9fe   :  { %6013 = vst [vmem:[%s10568_s24 + $0x18] sm:$0xff] %v5988_v27 }
 0xa13   :  { %v6848_v43 = vpop.f32.mrf.mxu0 }
 0xa15   :  { %v6849_v21 = vpop.f32.mrf.mxu0 }
 0xa16   :  { %v6850_v32 = vadd.f32 %v6849_v21, %v6848_v43 }
 0xa17   :  { %v6851_v28 = vpop.f32.mrf.mxu0 }
 0xa18   :  { %v5897_v41 = vadd.f32 %v6850_v32, %v3937_v31 }
 0xa19   :  { %v6852_v29 = vpop.f32.mrf.mxu0 }
 0xa1a   :  { %v6003_v34 = vrot.slane %v5897_v41, %v8309_v48 }
 0xa32   :  { %v5855_v35 = vpop.f32.mrf.mxu1 }
 0xa33   :  { %v5856_v42 = vadd.f32 %v5855_v35, %v3929_v51 }
 0xa34   :  { %v5857_v38 = vpop.f32.mrf.mxu1 }
 0xa35   :  { %v5858_v44 = vadd.f32 %v5857_v38, %v3933_v33 }
 0xa36   :  { %v5859_v45 = vpop.f32.mrf.mxu1 }
 0xa37   :  { %v5989_v5 = vcombine.low %v5856_v42, %v5858_v44 }
 0xa38   :  { %v5860_v46 = vpop.f32.mrf.mxu1 }
 0xa39   :  { %v5996_v6 = vrot.slane %v5989_v5, %v8309_v48 }
 0xa3b   :  { %v6004_v58 = vcombine.low %v5996_v6, %v6003_v34 }
 0xa3d   :  { %6019 = vst.msk [vmem:[%s10568_s24 + $0x20] sm:$0x3f] %vm6018_vm7, %v6004_v58 }
 0xa3e   :  { %8032 = dma.done.wait [#allocation3], 32  }
 0xa3f   :  { %8033 = vsyncadd [#allocation3], 4294967264 }
 0xa40   :  { %8034 = dma.done.wait [#allocation5], 32  }
 0xa41   :  { %8035 = vsyncadd [#allocation5], 4294967264 }
 0xa42   :  { %6050 = vsyncpa [#allocation3], 1 }
 0xa43   :  { %6051 = vsyncpa [#allocation5], 1 }

</bundles_post_ra>
